<compile_context>
chip_gen: v7x
topology: tpu7x:2x2x1
jax: 0.10.0
libtpu: 0.0.40
codegen_flags: <defaults>
</compile_context>

<pallas_src>
import functools

import jax
import jax.numpy as jnp
from jax.experimental import pallas as pl
from jax.experimental.pallas import tpu as pltpu


def _round_up(x, m):
    return ((x + m - 1) // m) * m


def _pick_block(n, cap, min_blocks):
    """Largest divisor of n that is <= cap and leaves at least min_blocks blocks."""
    best = 1
    for d in range(1, n + 1):
        if d > cap:
            break
        if n % d == 0 and (n // d) >= min_blocks:
            best = d
    return best


def _sigmoid(x):
    # Exact identity; one EUP tanh instead of exp + divide.
    return 0.5 * jnp.tanh(0.5 * x) + 0.5


# ----------------------------------------------------------------------------
# Pallas kernel 1a: input->gates projection, layer 0 (input pre-im2col'd)
# ----------------------------------------------------------------------------
def _xgates_dot_kernel(xim_ref, wxf_ref, b_ref, xg_ref, *, H, W):
    """xim_ref: (fblk, H, W, kh*kw*Cin) bf16   host-side im2col of x
       wxf_ref: (kh*kw*Cin, 4*hid_p)    bf16
       b_ref:   (1, 4*hid_p)            f32
       xg_ref:  (fblk, H, W, 4*hid_p)   f32
    """
    fblk = xim_ref.shape[0]
    K = xim_ref.shape[-1]
    C4 = wxf_ref.shape[-1]
    M = fblk * H * W
    acc = jnp.dot(xim_ref[...].reshape(M, K), wxf_ref[...],
                  preferred_element_type=jnp.float32)
    acc = acc + b_ref[...]
    xg_ref[...] = acc.reshape(fblk, H, W, C4)


# ----------------------------------------------------------------------------
# Pallas kernel 1b: input->gates projection, layers >= 1 (in-kernel im2col)
# ----------------------------------------------------------------------------
def _xgates_im2col_kernel(xp_ref, wxf_ref, b_ref, xg_ref, xim_ref,
                          *, kh, kw, H, W):
    """xp_ref:  (fblk, H+kh-1, W+kw-1, Cin) bf16, Cin multiple of 128
       wxf_ref: (kh*kw*Cin, 4*hid_p) bf16
       b_ref:   (1, 4*hid_p) f32
       xg_ref:  (fblk, H, W, 4*hid_p) f32
       xim_ref: (fblk*H*W, kh*kw*Cin) bf16 scratch (im2col buffer)
    """
    fblk = xp_ref.shape[0]
    cin = xp_ref.shape[-1]
    C4 = wxf_ref.shape[-1]
    M = fblk * H * W
    # Build the im2col matrix (lane-aligned column blocks) -> one big-K matmul.
    for dh in range(kh):
        for dw in range(kw):
            tap = dh * kw + dw
            xim_ref[:, tap * cin:(tap + 1) * cin] = (
                xp_ref[:, dh:dh + H, dw:dw + W, :].reshape(M, cin))
    acc = jnp.dot(xim_ref[...], wxf_ref[...], preferred_element_type=jnp.float32)
    acc = acc + b_ref[...]
    xg_ref[...] = acc.reshape(fblk, H, W, C4)


# ----------------------------------------------------------------------------
# Pallas kernel 2: fused ConvLSTM recurrence (one (b-block, t) per grid step)
# ----------------------------------------------------------------------------
def _convlstm_step_kernel(xg_ref, whf_ref, hout_ref, c_ref, hpad_ref, him_ref,
                          *, kh, kw, H, W, hid_p, oph, opw):
    """xg_ref:   (bblk, H, W, 4*hid_p) f32   precomputed x->gates + bias
       whf_ref:  (kh*kw*hid_p, 4*hid_p) bf16 folded hidden->gates weights
       hout_ref: (bblk, H+2*oph, W+2*opw, hid_p) bf16  next-layer input (halo-padded)
       c_ref:    (bblk, H, W, hid_p) f32     cell state (VMEM-resident over t)
       hpad_ref: (bblk, H+kh-1, W+kw-1, hid_p) bf16 scratch (own-halo padded h)
       him_ref:  (bblk*H*W, kh*kw*hid_p) bf16 scratch (im2col of h)
    """
    t = pl.program_id(1)
    ph, pw = kh // 2, kw // 2
    bblk = xg_ref.shape[0]
    M = bblk * H * W
    C4 = 4 * hid_p

    # Reset the recurrent state at the start of each batch block's sequence.
    # Correctness relies on t being the innermost, sequentially iterated axis.
    @pl.when(t == 0)
    def _():
        hpad_ref[...] = jnp.zeros_like(hpad_ref)
        c_ref[...] = jnp.zeros_like(c_ref)

    # im2col of the halo-padded hidden state -> one K = kh*kw*hid_p matmul.
    for dh in range(kh):
        for dw in range(kw):
            tap = dh * kw + dw
            him_ref[:, tap * hid_p:(tap + 1) * hid_p] = (
                hpad_ref[:, dh:dh + H, dw:dw + W, :].reshape(M, hid_p))

    acc = xg_ref[...].reshape(M, C4)                      # x->gates + bias (f32)
    acc = acc + jnp.dot(him_ref[...], whf_ref[...],
                        preferred_element_type=jnp.float32)

    # Gates (PyTorch channel order: i, f, o, g); hid_p multiple of 128 =>
    # lane-aligned slices.
    i_g = _sigmoid(acc[:, 0 * hid_p:1 * hid_p])
    f_g = _sigmoid(acc[:, 1 * hid_p:2 * hid_p])
    o_g = _sigmoid(acc[:, 2 * hid_p:3 * hid_p])
    g_g = jnp.tanh(acc[:, 3 * hid_p:4 * hid_p])

    c_next = f_g * c_ref[...].reshape(M, hid_p) + i_g * g_g   # f32 state update
    h_next = o_g * jnp.tanh(c_next)

    c_ref[...] = c_next.reshape(bblk, H, W, hid_p)
    h_bf = h_next.reshape(bblk, H, W, hid_p).astype(jnp.bfloat16)
    hpad_ref[:, ph:ph + H, pw:pw + W, :] = h_bf

    # Emit the next layer's input directly: bf16, already halo-padded for the
    # consumer (no wrapper-side astype / jnp.pad HBM passes between layers).
    if oph == 0 and opw == 0:
        hout_ref[...] = h_bf
    elif (oph, opw) == (ph, pw):
        hout_ref[...] = hpad_ref[...]
    else:
        hout_ref[...] = jnp.zeros_like(hout_ref)
        hout_ref[:, oph:oph + H, opw:opw + W, :] = h_bf


# ----------------------------------------------------------------------------
# Wrappers around pallas_call
# ----------------------------------------------------------------------------
def _xgates_layer0(xim_seq, wxf, bias, H, W):
    """xim_seq: (B, T, H, W, kh*kw*Cin) bf16 -> (B, T, H, W, 4*hid_p) f32."""
    B, T = xim_seq.shape[:2]
    K = xim_seq.shape[-1]
    C4 = wxf.shape[-1]
    BT = B * T
    fblk = _pick_block(BT, cap=4, min_blocks=2 if BT >= 2 else 1)
    xim = xim_seq.reshape(BT, H, W, K)
    kern = functools.partial(_xgates_dot_kernel, H=H, W=W)
    xg = pl.pallas_call(
        kern,
        grid=(BT // fblk,),
        in_specs=[
            pl.BlockSpec((fblk, H, W, K), lambda f: (f, 0, 0, 0)),
            pl.BlockSpec((K, C4), lambda f: (0, 0)),
            pl.BlockSpec((1, C4), lambda f: (0, 0)),
        ],
        out_specs=pl.BlockSpec((fblk, H, W, C4), lambda f: (f, 0, 0, 0)),
        out_shape=jax.ShapeDtypeStruct((BT, H, W, C4), jnp.float32),
        compiler_params=pltpu.CompilerParams(dimension_semantics=("parallel",)),
    )(xim, wxf, bias)
    return xg.reshape(B, T, H, W, C4)


def _xgates_padded(xp_seq, wxf, bias, kernel_size, H, W):
    """xp_seq: (B, T, H+kh-1, W+kw-1, Cin) bf16 -> (B, T, H, W, 4*hid_p) f32."""
    B, T, Hp, Wp, Cin = xp_seq.shape
    kh, kw = kernel_size
    C4 = wxf.shape[-1]
    BT = B * T
    fblk = _pick_block(BT, cap=4, min_blocks=2 if BT >= 2 else 1)
    xp = xp_seq.reshape(BT, Hp, Wp, Cin)
    kern = functools.partial(_xgates_im2col_kernel, kh=kh, kw=kw, H=H, W=W)
    xg = pl.pallas_call(
        kern,
        grid=(BT // fblk,),
        in_specs=[
            pl.BlockSpec((fblk, Hp, Wp, Cin), lambda f: (f, 0, 0, 0)),
            pl.BlockSpec((kh * kw * Cin, C4), lambda f: (0, 0)),
            pl.BlockSpec((1, C4), lambda f: (0, 0)),
        ],
        out_specs=pl.BlockSpec((fblk, H, W, C4), lambda f: (f, 0, 0, 0)),
        out_shape=jax.ShapeDtypeStruct((BT, H, W, C4), jnp.float32),
        scratch_shapes=[pltpu.VMEM((fblk * H * W, kh * kw * Cin), jnp.bfloat16)],
        compiler_params=pltpu.CompilerParams(dimension_semantics=("parallel",)),
    )(xp, wxf, bias)
    return xg.reshape(B, T, H, W, C4)


def _convlstm_recurrence(xg, whf, kernel_size, hid_p, out_halo):
    """xg: (B, T, H, W, 4*hid_p) f32 precomputed gates.
    Returns (h_pad (B,T,H+2oph,W+2opw,hid_p) bf16, c_last (B,H,W,hid_p) f32).
    """
    B, T, H, W, C4 = xg.shape
    kh, kw = kernel_size
    oph, opw = out_halo
    Hop, Wop = H + 2 * oph, W + 2 * opw
    bblk = _pick_block(B, cap=4, min_blocks=2 if B >= 2 else 1)
    kern = functools.partial(_convlstm_step_kernel, kh=kh, kw=kw, H=H, W=W,
                             hid_p=hid_p, oph=oph, opw=opw)
    h_pad, c_last = pl.pallas_call(
        kern,
        grid=(B // bblk, T),
        in_specs=[
            pl.BlockSpec((bblk, None, H, W, C4), lambda b, t: (b, t, 0, 0, 0)),
            # weights: constant index map -> DMA'd once, VMEM-resident
            pl.BlockSpec((kh * kw * hid_p, C4), lambda b, t: (0, 0)),
        ],
        out_specs=(
            # per-timestep, halo-padded bf16 hidden sequence (next layer input)
            pl.BlockSpec((bblk, None, Hop, Wop, hid_p),
                         lambda b, t: (b, t, 0, 0, 0)),
            # cell state: constant over t -> VMEM-resident accumulator
            pl.BlockSpec((bblk, H, W, hid_p), lambda b, t: (b, 0, 0, 0)),
        ),
        out_shape=(
            jax.ShapeDtypeStruct((B, T, Hop, Wop, hid_p), jnp.bfloat16),
            jax.ShapeDtypeStruct((B, H, W, hid_p), jnp.float32),
        ),
        scratch_shapes=[
            pltpu.VMEM((bblk, H + kh - 1, W + kw - 1, hid_p), jnp.bfloat16),
            pltpu.VMEM((bblk * H * W, kh * kw * hid_p), jnp.bfloat16),
        ],
        compiler_params=pltpu.CompilerParams(
            dimension_semantics=("parallel", "arbitrary")),
    )(xg, whf)
    return h_pad, c_last


# ----------------------------------------------------------------------------
# ConvLSTM module (thin JAX glue around the Pallas kernels)
# ----------------------------------------------------------------------------
def _pad_gate_cols(w, hid, hid_p):
    """Pad each of the 4 gate column blocks from hid to hid_p (zeros)."""
    if hid_p == hid:
        return w
    parts = []
    for k in range(4):
        g = w[..., k * hid:(k + 1) * hid]
        g = jnp.pad(g, [(0, 0)] * (w.ndim - 1) + [(0, hid_p - hid)])
        parts.append(g)
    return jnp.concatenate(parts, axis=-1)


class ConvLSTMPallas:
    def __init__(self, input_dim, hidden_dim, kernel_size, num_layers,
                 batch_first=False, bias=True, return_all_layers=False,
                 key=None):
        hidden_dim = self._extend(hidden_dim, num_layers)
        kernel_size = self._extend(kernel_size, num_layers)
        assert len(hidden_dim) == len(kernel_size) == num_layers

        self.input_dim = input_dim
        self.hidden_dim = hidden_dim
        self.hidden_pad = [_round_up(h, 128) for h in hidden_dim]
        self.kernel_size = kernel_size
        self.num_layers = num_layers
        self.batch_first = batch_first
        self.bias = bias
        self.return_all_layers = return_all_layers

        for (kh, kw) in kernel_size:
            assert kh % 2 == 1 and kw % 2 == 1, "odd kernels only ('same' pad)"

        if key is None:
            key = jax.random.PRNGKey(0)

        # Conv2d-style uniform(-1/sqrt(fan_in), 1/sqrt(fan_in)) init.
        self.kernel_params = []   # (wxf bf16, whf bf16, bias f32) per layer
        self.ref_params = []      # (combined w f32 HWIO, bias f32) per layer
        for i in range(num_layers):
            cin_true = input_dim if i == 0 else hidden_dim[i - 1]
            cin_kernel = input_dim if i == 0 else self.hidden_pad[i - 1]
            hid, hid_p = hidden_dim[i], self.hidden_pad[i]
            kh, kw = kernel_size[i]
            ctot = cin_true + hid
            fan_in = ctot * kh * kw
            bound = 1.0 / float(fan_in) ** 0.5
            key, wk, bk = jax.random.split(key, 3)
            w = jax.random.uniform(wk, (kh, kw, ctot, 4 * hid),
                                   minval=-bound, maxval=bound,
                                   dtype=jnp.float32)
            if bias:
                b = jax.random.uniform(bk, (4 * hid,), minval=-bound,
                                       maxval=bound, dtype=jnp.float32)
            else:
                b = jnp.zeros((4 * hid,), jnp.float32)
            self.ref_params.append((w, b))

            # Split into Wx / Wh, pad gate columns to hid_p (inert zeros),
            # pad Wh input rows to hid_p and Wx input rows to the channel-
            # padded incoming width, then fold taps into the contraction dim
            # (row order (dh, dw, channel) matches the im2col column order).
            wx = _pad_gate_cols(w[:, :, :cin_true, :], hid, hid_p)
            wh = _pad_gate_cols(w[:, :, cin_true:, :], hid, hid_p)
            wx = jnp.pad(wx, ((0, 0), (0, 0), (0, cin_kernel - cin_true), (0, 0)))
            wh = jnp.pad(wh, ((0, 0), (0, 0), (0, hid_p - hid), (0, 0)))
            wxf = wx.reshape(kh * kw * cin_kernel, 4 * hid_p).astype(jnp.bfloat16)
            whf = wh.reshape(kh * kw * hid_p, 4 * hid_p).astype(jnp.bfloat16)
            b_p = _pad_gate_cols(b[None, :], hid, hid_p).astype(jnp.float32)
            self.kernel_params.append((wxf, whf, b_p))

    @staticmethod
    def _extend(param, num_layers):
        if not isinstance(param, list):
            param = [param] * num_layers
        return param

    def __call__(self, x, hidden_state=None):
        """x: (B,T,C,H,W) if batch_first else (T,B,C,H,W) — NCHW per frame."""
        # TODO(synk): stateful hidden_state input not implemented (the PyTorch
        # reference also only supports hidden_state=None).
        assert hidden_state is None

        if not self.batch_first:
            x = jnp.transpose(x, (1, 0, 2, 3, 4))
        B, T, C, H, W = x.shape
        assert C == self.input_dim

        kh0, kw0 = self.kernel_size[0]
        ph0, pw0 = kh0 // 2, kw0 // 2

        # One NCHW->NHWC transpose + halo pad + host-side im2col of the small
        # layer-0 input (contraction width becomes kh*kw*Cin instead of Cin).
        xn = jnp.transpose(x, (0, 1, 3, 4, 2)).astype(jnp.bfloat16)
        xn = jnp.pad(xn, ((0, 0), (0, 0), (ph0, ph0), (pw0, pw0), (0, 0)))
        cols = []
        for dh in range(kh0):
            for dw in range(kw0):
                cols.append(xn[:, :, dh:dh + H, dw:dw + W, :])
        xim0 = jnp.concatenate(cols, axis=-1)   # (B, T, H, W, kh0*kw0*C)

        layer_output_list = []
        last_state_list = []
        cur_pad = None
        for li in range(self.num_layers):
            hid, hid_p = self.hidden_dim[li], self.hidden_pad[li]
            wxf, whf, b = self.kernel_params[li]
            ks = self.kernel_size[li]
            if li + 1 < self.num_layers:
                nkh, nkw = self.kernel_size[li + 1]
                out_halo = (nkh // 2, nkw // 2)     # halo the next layer needs
            else:
                out_halo = (0, 0)

            # 1) fully parallel x->gates precompute for the whole sequence.
            if li == 0:
                xg = _xgates_layer0(xim0, wxf, b, H, W)
            else:
                xg = _xgates_padded(cur_pad, wxf, b, ks, H, W)
            # 2) serial recurrence (h, c stay VMEM-resident across t).
            h_pad, c_last = _convlstm_recurrence(xg, whf, ks, hid_p, out_halo)
            cur_pad = h_pad   # bf16, already halo-padded for the next layer

            # User-facing outputs only for returned layers: strip padding,
            # back to NCHW / f32.
            if self.return_all_layers or li == self.num_layers - 1:
                oph, opw = out_halo
                h_seq = h_pad[:, :, oph:oph + H, opw:opw + W, :hid]
                h_seq = h_seq.astype(jnp.float32)
                out = jnp.transpose(h_seq, (0, 1, 4, 2, 3))        # (B,T,hid,H,W)
                h_last = out[:, -1]                                # (B,hid,H,W)
                c_out = jnp.transpose(c_last[..., :hid], (0, 3, 1, 2))
                layer_output_list.append(out)
                last_state_list.append((h_last, c_out))

        return layer_output_list, last_state_list


# ----------------------------------------------------------------------------
# Pure-JAX reference (for a numerical self-check against the kernels)
# ----------------------------------------------------------------------------
def _reference_convlstm(x, ref_params, hidden_dim, kernel_size, num_layers,
                        batch_first, return_all_layers):
    if not batch_first:
        x = jnp.transpose(x, (1, 0, 2, 3, 4))
    B, T, C, H, W = x.shape
    cur = jnp.transpose(x, (0, 1, 3, 4, 2)).astype(jnp.float32)  # NHWC

    layer_output_list, last_state_list = [], []
    for li in range(num_layers):
        w, b = ref_params[li]
        hid = hidden_dim[li]
        h = jnp.zeros((B, H, W, hid), jnp.float32)
        c = jnp.zeros((B, H, W, hid), jnp.float32)
        outs = []
        for t in range(T):
            comb = jnp.concatenate([cur[:, t], h], axis=-1)
            conv = jax.lax.conv_general_dilated(
                comb, w, window_strides=(1, 1), padding="SAME",
                dimension_numbers=("NHWC", "HWIO", "NHWC")) + b
            cc_i, cc_f, cc_o, cc_g = jnp.split(conv, 4, axis=-1)
            i = jax.nn.sigmoid(cc_i)
            f = jax.nn.sigmoid(cc_f)
            o = jax.nn.sigmoid(cc_o)
            g = jnp.tanh(cc_g)
            c = f * c + i * g
            h = o * jnp.tanh(c)
            outs.append(h)
        cur = jnp.stack(outs, axis=1)
        layer_output_list.append(jnp.transpose(cur, (0, 1, 4, 2, 3)))
        last_state_list.append((jnp.transpose(h, (0, 3, 1, 2)),
                                jnp.transpose(c, (0, 3, 1, 2))))
    if not return_all_layers:
        layer_output_list = layer_output_list[-1:]
        last_state_list = last_state_list[-1:]
    return layer_output_list, last_state_list


# ----------------------------------------------------------------------------
if __name__ == "__main__":
    key = jax.random.PRNGKey(0)
    key, xkey, pkey = jax.random.split(key, 3)

    B, T, C, H, W = 2, 8, 4, 16, 16
    hidden = 32
    num_layers = 2

    x = jax.random.normal(xkey, (B, T, C, H, W), dtype=jnp.float32)

    model = ConvLSTMPallas(input_dim=C, hidden_dim=hidden, kernel_size=(3, 3),
                           num_layers=num_layers, batch_first=True, bias=True,
                           return_all_layers=False, key=pkey)

    layer_outputs, last_states = model(x)

    out = jax.block_until_ready(layer_outputs[-1])       # (B, T, hidden, H, W)
    h_last = jax.block_until_ready(last_states[-1][0])   # (B, hidden, H, W)
    c_last = jax.block_until_ready(last_states[-1][1])   # (B, hidden, H, W)

    assert out.shape == (B, T, hidden, H, W)
    assert h_last.shape == (B, hidden, H, W)
    assert c_last.shape == (B, hidden, H, W)
    assert bool(jnp.all(jnp.isfinite(out)))

    # Numerical self-check against a pure-JAX f32 reference (kernels use bf16
    # matmul operands and a bf16 recurrent h, so allow a loose tolerance).
    ref_out, ref_states = _reference_convlstm(
        x, model.ref_params, model.hidden_dim, model.kernel_size,
        model.num_layers, model.batch_first, model.return_all_layers)
    ro = jax.block_until_ready(ref_out[-1])
    max_diff = float(jnp.max(jnp.abs(out - ro)))
    assert bool(jnp.allclose(out, ro, atol=5e-2)), f"output mismatch {max_diff}"
    assert bool(jnp.allclose(h_last, ref_states[-1][0], atol=5e-2))
    assert bool(jnp.allclose(c_last, ref_states[-1][1], atol=5e-2))

    print("KERNEL_OK")
</pallas_src>

<mosaic_0001>
module attributes {stable_mosaic.version = 11 : i64} {
  func.func @_xgates_dot_kernel(%arg0: i32, %arg1: memref<4x16x16x36xbf16, #tpu.memory_space<vmem>>, %arg2: memref<36x512xbf16, #tpu.memory_space<vmem>>, %arg3: memref<1x512xf32, #tpu.memory_space<vmem>>, %arg4: memref<4x16x16x512xf32, #tpu.memory_space<vmem>>) attributes {dimension_semantics = [#tpu.dimension_semantics<parallel>], iteration_bounds = array<i64: 4>, scalar_prefetch = 0 : i64, scratch_operands = 0 : i64, tpu.core_type = #tpu.core_type<tc>, window_params = [{transform_indices = @transform_0, window_bounds = array<i64: 4, 16, 16, 36>}, {pipeline_mode = #tpu.pipeline_mode<synchronous>, transform_indices = @transform_1, window_bounds = array<i64: 36, 512>}, {pipeline_mode = #tpu.pipeline_mode<synchronous>, transform_indices = @transform_2, window_bounds = array<i64: 1, 512>}, {transform_indices = @transform_3, window_bounds = array<i64: 4, 16, 16, 512>}]} {
    %c0 = arith.constant 0 : index
    %c0_0 = arith.constant 0 : index
    %c0_1 = arith.constant 0 : index
    %c0_2 = arith.constant 0 : index
    %0 = vector.load %arg1[%c0, %c0_0, %c0_1, %c0_2] : memref<4x16x16x36xbf16, #tpu.memory_space<vmem>>, vector<4x16x16x36xbf16>
    %1 = vector.shape_cast %0 : vector<4x16x16x36xbf16> to vector<1024x36xbf16>
    %c0_3 = arith.constant 0 : index
    %c0_4 = arith.constant 0 : index
    %2 = vector.load %arg2[%c0_3, %c0_4] : memref<36x512xbf16, #tpu.memory_space<vmem>>, vector<36x512xbf16>
    %cst = arith.constant dense<0.000000e+00> : vector<1024x512xf32>
    %3 = tpu.matmul %1, %2, %cst {dimension_numbers = #tpu.dot_dimension_numbers<[1], [0], [0], [1], [0, 0, 1, 1], [], []>} : vector<1024x36xbf16>, vector<36x512xbf16>, vector<1024x512xf32> -> vector<1024x512xf32>
    %c0_5 = arith.constant 0 : index
    %c0_6 = arith.constant 0 : index
    %4 = vector.load %arg3[%c0_5, %c0_6] : memref<1x512xf32, #tpu.memory_space<vmem>>, vector<1x512xf32>
    %5 = vector.broadcast %4 : vector<1x512xf32> to vector<1024x512xf32>
    %6 = arith.addf %3, %5 : vector<1024x512xf32>
    %7 = vector.shape_cast %6 : vector<1024x512xf32> to vector<4x16x16x512xf32>
    %c0_7 = arith.constant 0 : index
    %c0_8 = arith.constant 0 : index
    %c0_9 = arith.constant 0 : index
    %c0_10 = arith.constant 0 : index
    %8 = vector.load %arg4[%c0_7, %c0_8, %c0_9, %c0_10] : memref<4x16x16x512xf32, #tpu.memory_space<vmem>>, vector<4x16x16x512xf32>
    tpu.vector_store %arg4[%c0_7, %c0_8, %c0_9, %c0_10], %7 {strides = array<i32>} : memref<4x16x16x512xf32, #tpu.memory_space<vmem>>, vector<4x16x16x512xf32>,
    return
  }
  func.func @transform_0(%arg0: i32) -> (i32, i32, i32, i32) {
    %c0_i32 = arith.constant 0 : i32
    %c0_i32_0 = arith.constant 0 : i32
    %c0_i32_1 = arith.constant 0 : i32
    %c0_i32_2 = arith.constant 0 : i32
    return %arg0, %c0_i32, %c0_i32_0, %c0_i32_1 : i32, i32, i32, i32
  }
  func.func @transform_1(%arg0: i32) -> (i32, i32) {
    %c0_i32 = arith.constant 0 : i32
    %c0_i32_0 = arith.constant 0 : i32
    %c0_i32_1 = arith.constant 0 : i32
    return %c0_i32, %c0_i32_0 : i32, i32
  }
  func.func @transform_2(%arg0: i32) -> (i32, i32) {
    %c0_i32 = arith.constant 0 : i32
    %c0_i32_0 = arith.constant 0 : i32
    %c0_i32_1 = arith.constant 0 : i32
    return %c0_i32, %c0_i32_0 : i32, i32
  }
  func.func @transform_3(%arg0: i32) -> (i32, i32, i32, i32) {
    %c0_i32 = arith.constant 0 : i32
    %c0_i32_0 = arith.constant 0 : i32
    %c0_i32_1 = arith.constant 0 : i32
    %c0_i32_2 = arith.constant 0 : i32
    return %arg0, %c0_i32, %c0_i32_0, %c0_i32_1 : i32, i32, i32, i32
  }
}

</mosaic_0001>

<bundles_post_ra>
// kernel: tpu_custom_call.1
= control target key start
LH: loop header
LB: loop body
LE: loop exit
PB: predicated region body
PF: predicated region fallthrough
CT: control target
= control target key end

     0   :  { %8 = vsyncpa [#allocation3], 0  ;;  %s5077_s0 = inlined_call_operand.hbm [shape: bf16[16,16,16,36], index: 0, kind: input, shape index: {}]   ;;  %s5078_s1 = inlined_call_operand.hbm [shape: bf16[36,512], index: 1, kind: input, shape index: {}]   ;;  %s5079_s2 = inlined_call_operand.hbm [shape: f32[1,512], index: 2, kind: input, shape index: {}]   ;;  %s5080_s3 = inlined_call_operand.hbm [shape: f32[16,16,16,512], index: 3, kind: output, shape index: {}]  }
   0x1   :  { %10 = vsyncpa [#allocation3 + $0x1], 0 }
   0x2   :  { %11 = vsyncpa [#allocation6], 0 }
   0x3   :  { %12 = vsyncpa [#allocation4], 0 }
   0x4   :  { %14 = vsyncpa [#allocation4 + $0x1], 0  ;;  %s3494_s12 = smov 0   ;;  %s3496_s13 = smov 0  }
   0x5   :  { %s3498_s14 = smov 0   ;;  %s3500_s15 = smov 0  }
   0x6 LB: > { %s3515_s16 = sadd.s32 4294967295, %s3461_s15   ;;  %s2921_s17 = sadd.s32 4294967294, %s3461_s15   ;;  %s3461_s15 = sphi %s3500_s15, %s5099_s15   ;;  %s3457_s14 = sphi %s3498_s14, %s5098_s14   ;;  %s3453_s13 = sphi %s3496_s13, %s5097_s13   ;;  %s3449_s12 = sphi %s3494_s12, %s5096_s12  }
   0x7   : > { %p40_p0 = scmp.ne.s32.totalorder %s3453_s13, %s3449_s12  ;;  %p5081_p1 = scmp.eq.s32.totalorder %s3515_s16, 0 }
   0x8   : > { %p112_p3 = scmp.eq.s32.totalorder %s2921_s17, 3  ;;  %p2922_p5 = scmp.ge.s32.totalorder %s3461_s15, 1 }
   0x9   : > { %p3524_p4 = por %p5081_p1, %p40_p0  ;;  %p119_p7 = scmp.lt.s32.totalorder %s3461_s15, 5 }
   0xa   : > { %p3529_p6 = por %p112_p3, %p40_p0  ;;  %s3463_s21 = smov [#allocation5]  }
   0xb   : > { %s5084_s18 = scalar_select %p3524_p4, 1, 0 }
   0xc   : > { %s5085_s19 = scalar_select %p3529_p6, 1, 0 }
   0xd   : > { %p3534_p8 = pnand %p2922_p5, %p119_p7  ;;  %s131_s22 = sshll.u32 %s3463_s21, 4  ;;  %s132_s22 = int_to_ptr.vmem [resolvable:$true] %s131_s22 }
   0xe   : > { %s3464_s24 = smov [#allocation7]   ;;  %s3305_s28 = scalar_lea.hbm %s5078_s1, 1280 }
   0xf   : > { %s5086_s20 = scalar_select %p3534_p8, 1, 0 }
  0x10   : > { %p3163_p9 = pneg %p3534_p8  ;;  %s145_s25 = sshll.u32 %s3464_s24, 4  ;;  %s3546_s25 = int_to_ptr.vmem [resolvable:$true] %s145_s25 }
  0x11   : > { %p3306_p11 = scmp.ne.s32.totalorder %s5078_s1, %s3305_s28  ;;  %p3312_p3 = scmp.lt.u32.totalorder %s3305_s28, %s5078_s1 }
  0x12   : > { %p3542_p10 = pnand %p3163_p9, %p5081_p1 }
  0x14   : > { %p3307_p12 = pneg %p3542_p10 }
  0x16   : > { %p3308_p13 = pnand %p3307_p12, %p3306_p11 }
  0x18   : > { %p3309_p0 = pneg %p3308_p13 }
  0x1a   : > { %p3314_p5 = pnand %p3312_p3, %p3309_p0 }
  0x1c   : > { %3317 = shalt.err (!%p3314_p5)
}
  0x1d   : > { %s3318_s6 = scalar_lea.vmem %s132_s22, 1280  ;;  %p3326_p2 = scmp.lt.s32.totalorder %s132_s22, %s132_s22 }
  0x1e   : > { %p3319_p7 = scmp.ne.s32.totalorder %s132_s22, %s3318_s6  ;;  %p3327_p6 = scmp.lt.s32.totalorder %s3318_s6, %s3318_s6 }
  0x20   : > { %p3321_p9 = pnand %p3319_p7, %p3307_p12  ;;  %p3328_p4 = por %p3327_p6, %p3326_p2 }
  0x22   : > { %p3322_p1 = pneg %p3321_p9 }
  0x24   : > { %p3329_p8 = pnand %p3328_p4, %p3322_p1 }
  0x26   : > { %3332 = shalt.err (!%p3329_p8)
}
  0x27   : > { %s3465_s7 = smov 256   ;;  %s3466_s8 = smov 16  }
  0x28   : > { %3166 = dma.hbm_to_vmem [thread:$0]  (!%p3542_p10), %s5078_s1, 1280, %s132_s22, [#allocation6], %s3465_s7, %s3465_s7, %s3466_s8  }
  0x29   : > { %s3333_s21 = scalar_lea.hbm %s5079_s2, 64 }
  0x2a   : > { %p3334_p11 = scmp.ne.s32.totalorder %s5079_s2, %s3333_s21  ;;  %p3340_p4 = scmp.lt.u32.totalorder %s3333_s21, %s5079_s2 }
  0x2c   : > { %p3336_p1 = pnand %p3334_p11, %p3307_p12 }
  0x2e   : > { %p3337_p2 = pneg %p3336_p1 }
  0x30   : > { %p3342_p6 = pnand %p3340_p4, %p3337_p2 }
  0x32   : > { %3345 = shalt.err (!%p3342_p6)
}
  0x33   : > { %s3346_s22 = scalar_lea.vmem %s3546_s25, 64  ;;  %p3354_p3 = scmp.lt.s32.totalorder %s3546_s25, %s3546_s25 }
  0x34   : > { %p3347_p8 = scmp.ne.s32.totalorder %s3546_s25, %s3346_s22  ;;  %p3355_p5 = scmp.lt.s32.totalorder %s3346_s22, %s3346_s22 }
  0x36   : > { %p3349_p13 = pnand %p3347_p8, %p3307_p12  ;;  %p3356_p7 = por %p3355_p5, %p3354_p3 }
  0x38   : > { %p3350_p0 = pneg %p3349_p13 }
  0x3a   : > { %p3357_p9 = pnand %p3356_p7, %p3350_p0 }
  0x3c   : > { %3360 = shalt.err (!%p3357_p9)
}
  0x3d   : > { %3169 = dma.hbm_to_vmem [thread:$0]  (!%p3542_p10), %s5079_s2, 64, %s3546_s25, [#allocation6]  }
  0x3e   : > { %s3596_s4 = sadd.s32 1, %s3461_s15   ;;  %s27_s23 = sadd.s32 1, %s3457_s14 }
  0x3f   : > { %s24_s5 = ssub.s32 %s3461_s15, %s3596_s4  ;;  %p34_p12 = scmp.ne.s32.totalorder %s3457_s14, %s3453_s13 }
  0x40   : > { %p25_p11 = scmp.eq.s32.totalorder %s24_s5, 0  ;;  %p35_p1 = scmp.eq.s32.totalorder %s3461_s15, 0 }
  0x41   : > { %p5088_p2 = scmp.eq.s32.totalorder %s3515_s16, 3  ;;  %p3180_p6 = scmp.lt.s32.totalorder %s3461_s15, 4 }
  0x42   : > { %s3612_s7 = scalar_select %p25_p11, %s3457_s14, %s27_s23  }
  0x43   : > { %p3606_p4 = por %p5088_p2, %p34_p12  ;;  %p36_p8 = por %p35_p1, %p34_p12 }
  0x44   : > { %s156_s8 = sand.u32 1, %s3457_s14   ;;  %s3148_s25 = sshll.u32 %s3461_s15, 13 }
  0x45   : > { %s2926_s9 = sshll.u32 %s156_s8, 9  ;;  %s3619_s17 = scalar_lea.hbm %s5077_s0, %s3148_s25 }
  0x46   : > { %s160_s21 = scalar_lea.vmem [#allocation2], %s2926_s9  ;;  %p3623_p10 = pnand %p3180_p6, %p36_p8 }
  0x47   : > { %s168_s24 = sshll.u32 %s160_s21, 4  ;;  %s3627_s27 = scalar_lea.sflag [#allocation3], %s156_s8  ;;  %s3621_s24 = int_to_ptr.vmem [resolvable:$true] %s168_s24 }
  0x48   : > { %s3361_s28 = scalar_lea.hbm %s3619_s17, 8192  ;;  %p3363_p0 = pneg %p3623_p10 }
  0x49   : > { %p3362_p13 = scmp.ne.s32.totalorder %s3619_s17, %s3361_s28  ;;  %s3366_s30 = scalar_lea.hbm %s5077_s0, 32768 }
  0x4a   : > { %p3367_p7 = scmp.lt.u32.totalorder %s3619_s17, %s5077_s0  ;;  %p3368_p9 = scmp.lt.u32.totalorder %s3366_s30, %s3361_s28 }
  0x4b   : > { %p3364_p3 = pnand %p3363_p0, %p3362_p13  ;;  %p3370_p11 = scmp.lt.u32.totalorder %s3361_s28, %s3619_s17 }
  0x4c   : > { %p3369_p12 = por %p3368_p9, %p3367_p7 }
  0x4d   : > { %p3365_p5 = pneg %p3364_p3 }
  0x4e   : > { %p3371_p1 = por %p3370_p11, %p3369_p12 }
  0x50   : > { %p3372_p2 = pnand %p3371_p1, %p3365_p5 }
  0x52   : > { %3375 = shalt.err (!%p3372_p2)
}
  0x53   : > { %s3376_s8 = scalar_lea.vmem %s3621_s24, 8192  ;;  %s3467_s9 = smov [#allocation2]  }
  0x54   : > { %p3377_p6 = scmp.ne.s32.totalorder %s3621_s24, %s3376_s8  ;;  %s3381_s25 = sshll.u32 %s3467_s9, 4  ;;  %s3382_s25 = int_to_ptr.vmem [resolvable:$false] %s3381_s25 }
  0x55   : > { %s3383_s10 = scalar_lea.vmem %s3382_s25, 16384  ;;  %p3384_p3 = scmp.lt.s32.totalorder %s3621_s24, %s3382_s25 }
  0x56   : > { %p3379_p8 = pnand %p3377_p6, %p3363_p0  ;;  %p3385_p7 = scmp.lt.s32.totalorder %s3383_s10, %s3376_s8 }
  0x58   : > { %p3380_p13 = pneg %p3379_p8  ;;  %p3386_p9 = por %p3385_p7, %p3384_p3 }
  0x5a   : > { %p3387_p12 = pnand %p3386_p9, %p3380_p13 }
  0x5c   : > { %3390 = shalt.err (!%p3387_p12)
}
  0x5d   : > { %s3468_s11 = smov 64   ;;  %s3469_s21 = smov 4  }
  0x5e   : > { %3173 = dma.hbm_to_vmem [thread:$0]  (!%p3623_p10), %s3619_s17, 8192, %s3621_s24, %s3627_s27, %s3468_s11, %s3468_s11, %s3469_s21  }
  0x5f   : > { %p5091_p0 = scmp.ne.s32.totalorder %s5086_s20, 0 }
  0x60   : > { %s3658_s28 = sand.u32 (!%p5091_p0), 1, %s3453_s13   ;;  %p5092_p5 = scmp.ne.s32.totalorder (!%p5091_p0), %s5084_s18, 0 }
  0x61   : > { %180 = sbr.rel (%p5091_p0) target bundleno = 858 (0x35a), region = 32  ;;  %s2931_s22 = sshll.u32 (!%p5091_p0), %s3658_s28, 9 }
  0x62   : > { %s183_s29 = scalar_lea.sflag (!%p5091_p0), [#allocation3], %s3658_s28  ;;  %s3662_s30 = scalar_lea.vmem (!%p5091_p0), [#allocation2], %s2931_s22 }
  0x68   : > { %3436 = dma.done.wait (%p5092_p5), %s183_s29, 8192  }
  0x69   : > { %3438 = vsyncadd (%p5092_p5), %s183_s29, 4294959104  ;;  %p5093_p10 = scmp.eq.s32.totalorder %s3515_s16, 0 }
  0x6b   : > { %3440 = dma.done.wait (%p5093_p10), [#allocation6], 1344   ;;  %p5094_p11 = pmov %p5093_p10 }
  0x6c   : > { %v3470_v0 = vmov 0   ;;  %v3225_v1 = vld [vmem:[#allocation5 + $0x4] ss:$16 sps:$4 sm:$0xff]   ;;  %v3227_v2 = vld [vmem:[#allocation5 + $0xc] ss:$16 sps:$4 sm:$0xff]   ;;  %vm943_vm0 = vcmask 1041408   ;;  %v360_v43 = vlaneseq }
  0x6d   : > { %3442 = vsyncadd (%p5094_p11), [#allocation6], 4294965952  ;;  %988 = vmatprep.mubr.bf16.mxu0 %v3470_v0  ;;  %1661 = vmatprep.mubr.bf16.mxu1 %v3470_v0  ;;  %v3229_v3 = vld [vmem:[#allocation5] ss:$16 sps:$4 sm:$0xff]   ;;  %v3230_v4 = vld [vmem:[#allocation5 + $0x8] ss:$16 sps:$4 sm:$0xff]  }
  0x6e   : > { %956 = vmatprep.subr.bf16.mxu0 %v3225_v1  ;;  %1629 = vmatprep.subr.bf16.mxu1 %v3227_v2  ;;  %v3231_v5 = vld [vmem:[#allocation5 + $0x24] ss:$16 sps:$4 sm:$0xff]   ;;  %v3233_v6 = vld [vmem:[#allocation5 + $0x2c] ss:$16 sps:$4 sm:$0xff]   ;;  %v3235_v7 = vld [vmem:[#allocation5 + $0x20] ss:$16 sps:$4 sm:$0xff]  }
  0x6f   : > { %957 = vmatpush1.bf16.msra.mxu0 %v3229_v3  ;;  %1630 = vmatpush1.bf16.msra.mxu1 %v3230_v4  ;;  %v3236_v8 = vld [vmem:[#allocation5 + $0x28] ss:$16 sps:$4 sm:$0xff]   ;;  %v356_v9 = vld [vmem:[#allocation5 + $0x40] sm:$0x33]  ;;  %vm750_vm1 = vcmask 293888   ;;  %v3243_v19 = vld [vmem:[%s3662_s30 + $0x10] sm:$0xff]  }
  0x70   : > { %958 = vmatprep.subr.bf16.mxu0 %v3231_v5  ;;  %v357_v10 = vld [vmem:[#allocation5 + $0x48] sm:$0x33]  ;;  %1631 = vmatprep.subr.bf16.mxu1 %v3233_v6  ;;  %v3008_v11 = vcombine.high %v356_v9, %v356_v9  ;;  %v3007_v13 = vcombine.low %v356_v9, %v356_v9  ;;  %v3241_v17 = vld [vmem:[%s3662_s30] sm:$0xff]   ;;  %v3244_v20 = vld [vmem:[%s3662_s30 + $0x18] sm:$0xff]   ;;  %v361_v44 = vshrl.u32 %v360_v43, 7  ;;  %s2934_s18 = sshll.u32 %s3658_s28, 12 }
  0x71   : > { %v3010_v12 = vcombine.high %v357_v10, %v357_v10  ;;  %v3009_v14 = vcombine.low %v357_v10, %v357_v10  ;;  %v3242_v18 = vld [vmem:[%s3662_s30 + $0x8] sm:$0xff]   ;;  %v3245_v21 = vld [vmem:[%s3662_s30 + $0x20] sm:$0xff]   ;;  %v3247_v23 = vld [vmem:[%s3662_s30 + $0x30] sm:$0xff]   ;;  %s3823_s20 = scalar_lea.vmem [#allocation8], %s2934_s18  ;;  %s3150_s17 = sshll.u32 %s3515_s16, 16 }
  0x72   : > { %v945_v15 = vsel %vm943_vm0, %v3007_v13, 0  ;;  %v3246_v22 = vld [vmem:[%s3662_s30 + $0x28] sm:$0xff]   ;;  %v3248_v24 = vld [vmem:[%s3662_s30 + $0x38] sm:$0xff]   ;;  %v3249_v25 = vld [vmem:[%s3662_s30 + $0x40] sm:$0xff]   ;;  %v362_v46 = vsub.s32 0, %v361_v44  ;;  %v370_v47 = vsub.s32 2, %v361_v44  ;;  %s5024_s27 = scalar_lea.hbm %s5080_s3, %s3150_s17 }
  0x73   : > { %959 = vmatpush1.bf16.msra.mxu0 %v3235_v7  ;;  %1632 = vmatpush1.bf16.msra.mxu1 %v3236_v8  ;;  %v951_v16 = vsel %vm943_vm0, %v3009_v14, 0  ;;  %v3250_v26 = vld [vmem:[%s3662_s30 + $0x48] sm:$0xff]   ;;  %v3251_v27 = vld [vmem:[%s3662_s30 + $0x50] sm:$0xff]   ;;  %v3252_v28 = vld [vmem:[%s3662_s30 + $0x58] sm:$0xff]   ;;  %v366_v49 = vsub.s32 1, %v361_v44  ;;  %v374_v50 = vsub.s32 3, %v361_v44 }
  0x74   : > { %3011 = vmatprep.subr.msk.bf16.mxu0 %vm943_vm0, %v3008_v11  ;;  %3076 = vmatprep.subr.msk.bf16.mxu1 %vm943_vm0, %v3010_v12  ;;  %v3253_v29 = vld [vmem:[%s3662_s30 + $0x60] sm:$0xff]   ;;  %v3254_v30 = vld [vmem:[%s3662_s30 + $0x68] sm:$0xff]   ;;  %v3255_v31 = vld [vmem:[%s3662_s30 + $0x70] sm:$0xff]   ;;  %s2829_s24 = sshll.u32 %s3823_s20, 4  ;;  %s2815_s23 = scalar_lea.sflag [#allocation4], %s3658_s28  ;;  %s5026_s24 = int_to_ptr.vmem [resolvable:$true] %s2829_s24 }
  0x75   : > { %v3256_v32 = vld [vmem:[%s3662_s30 + $0x78] sm:$0xff]   ;;  %v3257_v33 = vld [vmem:[%s3662_s30 + $0x80] sm:$0xff]   ;;  %v3258_v34 = vld [vmem:[%s3662_s30 + $0x88] sm:$0xff]   ;;  %s3391_s5 = scalar_lea.vmem %s5026_s24, 65536  ;;  %s3471_s8 = smov [#allocation8]  }
  0x76   : > { %v3259_v35 = vld [vmem:[%s3662_s30 + $0x90] sm:$0xff]   ;;  %v3260_v36 = vld [vmem:[%s3662_s30 + $0x98] sm:$0xff]   ;;  %v3261_v37 = vld [vmem:[%s3662_s30 + $0xa0] sm:$0xff]   ;;  %p3392_p1 = scmp.ne.s32.totalorder %s5026_s24, %s3391_s5  ;;  %s3395_s9 = sshll.u32 %s3471_s8, 4  ;;  %s3396_s9 = int_to_ptr.vmem [resolvable:$false] %s3395_s9 }
  0x77   : > { %961 = vmatpush1.bf16.msra.mxu0 %v945_v15  ;;  %1634 = vmatpush1.bf16.msra.mxu1 %v951_v16  ;;  %v3262_v38 = vld [vmem:[%s3662_s30 + $0xa8] sm:$0xff]   ;;  %v3263_v39 = vld [vmem:[%s3662_s30 + $0xb0] sm:$0xff]   ;;  %v3264_v40 = vld [vmem:[%s3662_s30 + $0xb8] sm:$0xff]   ;;  %s3397_s25 = scalar_lea.vmem %s3396_s9, 131072  ;;  %p3398_p8 = scmp.lt.s32.totalorder %s5026_s24, %s3396_s9 }
  0x78   : > { %v3265_v41 = vld [vmem:[%s3662_s30 + $0xc0] sm:$0xff]   ;;  %v3266_v42 = vld [vmem:[%s3662_s30 + $0xc8] sm:$0xff]   ;;  %v3267_v45 = vld [vmem:[%s3662_s30 + $0xd0] sm:$0xff]   ;;  %p3393_p2 = pnand %p3392_p1, %p3606_p4  ;;  %p3399_p13 = scmp.lt.s32.totalorder %s3397_s25, %s3391_s5 }
  0x79   : > { %v358_v48 = vld [vmem:[#allocation7] sm:$0xf]  ;;  %v3268_v61 = vld [vmem:[%s3662_s30 + $0xd8] sm:$0xff]   ;;  %v3269_v15 = vld [vmem:[%s3662_s30 + $0xe0] sm:$0xff]  }
  0x7a   : > { %3012 = vmatmul.mubr.msk.bf16.vlgmr.msra.gmra.mrb[0].mxu0 %vm750_vm1, %v3241_v17  ;;  %3077 = vmatmul.mubr.msk.bf16.vlgmr.msra.gmra.mrb[0].mxu1 %vm750_vm1, %v3241_v17  ;;  %v3808_v51 = vrot.slane %v358_v48, %v362_v46  ;;  %v3810_v52 = vrot.slane %v358_v48, %v370_v47  ;;  %v3812_v53 = vrot.slane %v358_v48, %v366_v49  ;;  %v3271_v49 = vld [vmem:[%s3662_s30 + $0xf0] sm:$0xff]   ;;  %p3394_p6 = pneg %p3393_p2  ;;  %p3400_p3 = por %p3399_p13, %p3398_p8 }
  0x7b   : > { %998 = vmatprep.mubr.bf16.mxu0 %v3470_v0  ;;  %1671 = vmatprep.mubr.bf16.mxu1 %v3470_v0  ;;  %v3814_v54 = vrot.slane %v358_v48, %v374_v50 }
  0x7c   : > { %p3401_p7 = pnand %p3400_p3, %p3394_p6 }
  0x82   : > { %3013 = vmatmul.mubr.msk.bf16.gmra.mrb[4].mxu0 %vm750_vm1, %v3242_v18  ;;  %3078 = vmatmul.mubr.msk.bf16.gmra.mrb[4].mxu1 %vm750_vm1, %v3242_v18 }
  0x83   : > { %1008 = vmatprep.mubr.bf16.mxu0 %v3470_v0  ;;  %1681 = vmatprep.mubr.bf16.mxu1 %v3470_v0 }
  0x8a   : > { %3014 = vmatmul.mubr.msk.bf16.gmra.mrb[8].mxu0 %vm750_vm1, %v3243_v19  ;;  %3079 = vmatmul.mubr.msk.bf16.gmra.mrb[8].mxu1 %vm750_vm1, %v3243_v19 }
  0x8b   : > { %1018 = vmatprep.mubr.bf16.mxu0 %v3470_v0  ;;  %1691 = vmatprep.mubr.bf16.mxu1 %v3470_v0 }
  0x92   : > { %3015 = vmatmul.mubr.msk.bf16.gmra.mrb[12].mxu0 %vm750_vm1, %v3244_v20  ;;  %3080 = vmatmul.mubr.msk.bf16.gmra.mrb[12].mxu1 %vm750_vm1, %v3244_v20 }
  0x93   : > { %1028 = vmatprep.mubr.bf16.mxu0 %v3470_v0  ;;  %1701 = vmatprep.mubr.bf16.mxu1 %v3470_v0 }
  0x9a   : > { %3016 = vmatmul.mubr.msk.bf16.gmra.mrb[16].mxu0 %vm750_vm1, %v3245_v21  ;;  %3081 = vmatmul.mubr.msk.bf16.gmra.mrb[16].mxu1 %vm750_vm1, %v3245_v21 }
  0x9b   : > { %1038 = vmatprep.mubr.bf16.mxu0 %v3470_v0  ;;  %1711 = vmatprep.mubr.bf16.mxu1 %v3470_v0 }
  0xa2   : > { %3017 = vmatmul.mubr.msk.bf16.gmra.mrb[20].mxu0 %vm750_vm1, %v3246_v22  ;;  %3082 = vmatmul.mubr.msk.bf16.gmra.mrb[20].mxu1 %vm750_vm1, %v3246_v22 }
  0xa3   : > { %1048 = vmatprep.mubr.bf16.mxu0 %v3470_v0  ;;  %1721 = vmatprep.mubr.bf16.mxu1 %v3470_v0 }
  0xaa   : > { %3018 = vmatmul.mubr.msk.bf16.gmra.mrb[24].mxu0 %vm750_vm1, %v3247_v23  ;;  %3083 = vmatmul.mubr.msk.bf16.gmra.mrb[24].mxu1 %vm750_vm1, %v3247_v23 }
  0xab   : > { %1058 = vmatprep.mubr.bf16.mxu0 %v3470_v0  ;;  %1731 = vmatprep.mubr.bf16.mxu1 %v3470_v0 }
  0xb2   : > { %3019 = vmatmul.mubr.msk.bf16.gmra.mrb[28].mxu0 %vm750_vm1, %v3248_v24  ;;  %3084 = vmatmul.mubr.msk.bf16.gmra.mrb[28].mxu1 %vm750_vm1, %v3248_v24 }
  0xb3   : > { %1068 = vmatprep.mubr.bf16.mxu0 %v3470_v0  ;;  %1741 = vmatprep.mubr.bf16.mxu1 %v3470_v0 }
  0xba   : > { %3020 = vmatmul.mubr.msk.bf16.gmra.mrb[32].mxu0 %vm750_vm1, %v3249_v25  ;;  %3085 = vmatmul.mubr.msk.bf16.gmra.mrb[32].mxu1 %vm750_vm1, %v3249_v25 }
  0xbb   : > { %1078 = vmatprep.mubr.bf16.mxu0 %v3470_v0  ;;  %1751 = vmatprep.mubr.bf16.mxu1 %v3470_v0 }
  0xc2   : > { %3021 = vmatmul.mubr.msk.bf16.gmra.mrb[36].mxu0 %vm750_vm1, %v3250_v26  ;;  %3086 = vmatmul.mubr.msk.bf16.gmra.mrb[36].mxu1 %vm750_vm1, %v3250_v26 }
  0xc3   : > { %1088 = vmatprep.mubr.bf16.mxu0 %v3470_v0  ;;  %1761 = vmatprep.mubr.bf16.mxu1 %v3470_v0 }
  0xca   : > { %3022 = vmatmul.mubr.msk.bf16.gmra.mrb[40].mxu0 %vm750_vm1, %v3251_v27  ;;  %3087 = vmatmul.mubr.msk.bf16.gmra.mrb[40].mxu1 %vm750_vm1, %v3251_v27 }
  0xcb   : > { %1098 = vmatprep.mubr.bf16.mxu0 %v3470_v0  ;;  %1771 = vmatprep.mubr.bf16.mxu1 %v3470_v0 }
  0xd2   : > { %3023 = vmatmul.mubr.msk.bf16.gmra.mrb[44].mxu0 %vm750_vm1, %v3252_v28  ;;  %3088 = vmatmul.mubr.msk.bf16.gmra.mrb[44].mxu1 %vm750_vm1, %v3252_v28 }
  0xd3   : > { %1108 = vmatprep.mubr.bf16.mxu0 %v3470_v0  ;;  %1781 = vmatprep.mubr.bf16.mxu1 %v3470_v0 }
  0xda   : > { %3024 = vmatmul.mubr.msk.bf16.gmra.mrb[48].mxu0 %vm750_vm1, %v3253_v29  ;;  %3089 = vmatmul.mubr.msk.bf16.gmra.mrb[48].mxu1 %vm750_vm1, %v3253_v29 }
  0xdb   : > { %1118 = vmatprep.mubr.bf16.mxu0 %v3470_v0  ;;  %1791 = vmatprep.mubr.bf16.mxu1 %v3470_v0 }
  0xe2   : > { %3025 = vmatmul.mubr.msk.bf16.gmra.mrb[52].mxu0 %vm750_vm1, %v3254_v30  ;;  %3090 = vmatmul.mubr.msk.bf16.gmra.mrb[52].mxu1 %vm750_vm1, %v3254_v30 }
  0xe3   : > { %1128 = vmatprep.mubr.bf16.mxu0 %v3470_v0  ;;  %1801 = vmatprep.mubr.bf16.mxu1 %v3470_v0 }
  0xea   : > { %3026 = vmatmul.mubr.msk.bf16.gmra.mrb[56].mxu0 %vm750_vm1, %v3255_v31  ;;  %3091 = vmatmul.mubr.msk.bf16.gmra.mrb[56].mxu1 %vm750_vm1, %v3255_v31 }
  0xeb   : > { %1138 = vmatprep.mubr.bf16.mxu0 %v3470_v0  ;;  %1811 = vmatprep.mubr.bf16.mxu1 %v3470_v0 }
  0xf2   : > { %3027 = vmatmul.mubr.msk.bf16.gmra.mrb[60].mxu0 %vm750_vm1, %v3256_v32  ;;  %3092 = vmatmul.mubr.msk.bf16.gmra.mrb[60].mxu1 %vm750_vm1, %v3256_v32  ;;  %v3270_v32 = vld [vmem:[%s3662_s30 + $0xe8] sm:$0xff]  }
  0xf3   : > { %1148 = vmatprep.mubr.bf16.mxu0 %v3470_v0  ;;  %1821 = vmatprep.mubr.bf16.mxu1 %v3470_v0 }
  0xfa   : > { %3028 = vmatmul.mubr.msk.bf16.gmra.mrb[64].mxu0 %vm750_vm1, %v3257_v33  ;;  %3093 = vmatmul.mubr.msk.bf16.gmra.mrb[64].mxu1 %vm750_vm1, %v3257_v33 }
  0xfb   : > { %1158 = vmatprep.mubr.bf16.mxu0 %v3470_v0  ;;  %1831 = vmatprep.mubr.bf16.mxu1 %v3470_v0 }
 0x102   : > { %3029 = vmatmul.mubr.msk.bf16.gmra.mrb[68].mxu0 %vm750_vm1, %v3258_v34  ;;  %3094 = vmatmul.mubr.msk.bf16.gmra.mrb[68].mxu1 %vm750_vm1, %v3258_v34 }
 0x103   : > { %1168 = vmatprep.mubr.bf16.mxu0 %v3470_v0  ;;  %1841 = vmatprep.mubr.bf16.mxu1 %v3470_v0 }
 0x10a   : > { %3030 = vmatmul.mubr.msk.bf16.gmra.mrb[72].mxu0 %vm750_vm1, %v3259_v35  ;;  %3095 = vmatmul.mubr.msk.bf16.gmra.mrb[72].mxu1 %vm750_vm1, %v3259_v35 }
 0x10b   : > { %1178 = vmatprep.mubr.bf16.mxu0 %v3470_v0  ;;  %1851 = vmatprep.mubr.bf16.mxu1 %v3470_v0 }
 0x112   : > { %3031 = vmatmul.mubr.msk.bf16.gmra.mrb[76].mxu0 %vm750_vm1, %v3260_v36  ;;  %3096 = vmatmul.mubr.msk.bf16.gmra.mrb[76].mxu1 %vm750_vm1, %v3260_v36 }
 0x113   : > { %1188 = vmatprep.mubr.bf16.mxu0 %v3470_v0  ;;  %1861 = vmatprep.mubr.bf16.mxu1 %v3470_v0 }
 0x11a   : > { %3032 = vmatmul.mubr.msk.bf16.gmra.mrb[80].mxu0 %vm750_vm1, %v3261_v37  ;;  %3097 = vmatmul.mubr.msk.bf16.gmra.mrb[80].mxu1 %vm750_vm1, %v3261_v37 }
 0x11b   : > { %1198 = vmatprep.mubr.bf16.mxu0 %v3470_v0  ;;  %1871 = vmatprep.mubr.bf16.mxu1 %v3470_v0 }
 0x122   : > { %3033 = vmatmul.mubr.msk.bf16.gmra.mrb[84].mxu0 %vm750_vm1, %v3262_v38  ;;  %3098 = vmatmul.mubr.msk.bf16.gmra.mrb[84].mxu1 %vm750_vm1, %v3262_v38 }
 0x123   : > { %1208 = vmatprep.mubr.bf16.mxu0 %v3470_v0  ;;  %1881 = vmatprep.mubr.bf16.mxu1 %v3470_v0 }
 0x12a   : > { %3034 = vmatmul.mubr.msk.bf16.gmra.mrb[88].mxu0 %vm750_vm1, %v3263_v39  ;;  %3099 = vmatmul.mubr.msk.bf16.gmra.mrb[88].mxu1 %vm750_vm1, %v3263_v39 }
 0x12b   : > { %1218 = vmatprep.mubr.bf16.mxu0 %v3470_v0  ;;  %1891 = vmatprep.mubr.bf16.mxu1 %v3470_v0 }
 0x132   : > { %3035 = vmatmul.mubr.msk.bf16.gmra.mrb[92].mxu0 %vm750_vm1, %v3264_v40  ;;  %3100 = vmatmul.mubr.msk.bf16.gmra.mrb[92].mxu1 %vm750_vm1, %v3264_v40 }
 0x133   : > { %1228 = vmatprep.mubr.bf16.mxu0 %v3470_v0  ;;  %1901 = vmatprep.mubr.bf16.mxu1 %v3470_v0 }
 0x13a   : > { %3036 = vmatmul.mubr.msk.bf16.gmra.mrb[96].mxu0 %vm750_vm1, %v3265_v41  ;;  %3101 = vmatmul.mubr.msk.bf16.gmra.mrb[96].mxu1 %vm750_vm1, %v3265_v41 }
 0x13b   : > { %1238 = vmatprep.mubr.bf16.mxu0 %v3470_v0  ;;  %1911 = vmatprep.mubr.bf16.mxu1 %v3470_v0 }
 0x142   : > { %3037 = vmatmul.mubr.msk.bf16.gmra.mrb[100].mxu0 %vm750_vm1, %v3266_v42  ;;  %3102 = vmatmul.mubr.msk.bf16.gmra.mrb[100].mxu1 %vm750_vm1, %v3266_v42 }
 0x143   : > { %1248 = vmatprep.mubr.bf16.mxu0 %v3470_v0  ;;  %1921 = vmatprep.mubr.bf16.mxu1 %v3470_v0 }
 0x14a   : > { %3038 = vmatmul.mubr.msk.bf16.gmra.mrb[104].mxu0 %vm750_vm1, %v3267_v45  ;;  %3103 = vmatmul.mubr.msk.bf16.gmra.mrb[104].mxu1 %vm750_vm1, %v3267_v45 }
 0x14b   : > { %1258 = vmatprep.mubr.bf16.mxu0 %v3470_v0  ;;  %1931 = vmatprep.mubr.bf16.mxu1 %v3470_v0 }
 0x14d   : > { %v990_v55 = vpop.f32.mrb[0].mxu0  ;;  %v1663_v56 = vpop.f32.mrb[0].mxu1 }
 0x14e   : > { %v991_v57 = vadd.f32 %v990_v55, %v3808_v51  ;;  %v1664_v58 = vadd.f32 %v1663_v56, %v3810_v52  ;;  %v992_v59 = vpop.f32.mrb[1].mxu0  ;;  %v1665_v60 = vpop.f32.mrb[1].mxu1 }
 0x14f   : > { %v993_v62 = vadd.f32 %v992_v59, %v3812_v53  ;;  %v1666_v63 = vadd.f32 %v1665_v60, %v3814_v54  ;;  %v994_v1 = vpop.f32.mrb[2].mxu0  ;;  %v1667_v2 = vpop.f32.mrb[2].mxu1 }
 0x150   : > { %2302 = vst [vmem:[%s3823_s20] sm:$0xff] %v991_v57  ;;  %2304 = vst [vmem:[%s3823_s20 + $0x10] sm:$0xff] %v1664_v58  ;;  %v995_v3 = vadd.f32 %v994_v1, %v3808_v51  ;;  %v1668_v4 = vadd.f32 %v1667_v2, %v3810_v52  ;;  %v996_v5 = vpop.f32.mrb[3].mxu0  ;;  %v1669_v6 = vpop.f32.mrb[3].mxu1 }
 0x151   : > { %2303 = vst [vmem:[%s3823_s20 + $0x8] sm:$0xff] %v993_v62  ;;  %2305 = vst [vmem:[%s3823_s20 + $0x18] sm:$0xff] %v1666_v63  ;;  %v997_v7 = vadd.f32 %v996_v5, %v3812_v53  ;;  %v1670_v8 = vadd.f32 %v1669_v6, %v3814_v54 }
 0x152   : > { %2306 = vst [vmem:[%s3823_s20 + $0x20] sm:$0xff] %v995_v3  ;;  %2308 = vst [vmem:[%s3823_s20 + $0x30] sm:$0xff] %v1668_v4  ;;  %3039 = vmatmul.mubr.msk.bf16.gmra.mrb[108].mxu0 %vm750_vm1, %v3268_v61  ;;  %3104 = vmatmul.mubr.msk.bf16.gmra.mrb[108].mxu1 %vm750_vm1, %v3268_v61 }
 0x153   : > { %2307 = vst [vmem:[%s3823_s20 + $0x28] sm:$0xff] %v997_v7  ;;  %2309 = vst [vmem:[%s3823_s20 + $0x38] sm:$0xff] %v1670_v8  ;;  %1268 = vmatprep.mubr.bf16.mxu0 %v3470_v0  ;;  %1941 = vmatprep.mubr.bf16.mxu1 %v3470_v0  ;;  %v3272_v7 = vld [vmem:[%s3662_s30 + $0xf8] sm:$0xff]  }
 0x155   : > { %v1000_v9 = vpop.f32.mrb[4].mxu0  ;;  %v1673_v10 = vpop.f32.mrb[4].mxu1 }
 0x156   : > { %v1001_v11 = vadd.f32 %v1000_v9, %v3808_v51  ;;  %v1674_v12 = vadd.f32 %v1673_v10, %v3810_v52  ;;  %v1002_v13 = vpop.f32.mrb[5].mxu0  ;;  %v1675_v14 = vpop.f32.mrb[5].mxu1 }
 0x157   : > { %v1003_v16 = vadd.f32 %v1002_v13, %v3812_v53  ;;  %v1676_v17 = vadd.f32 %v1675_v14, %v3814_v54  ;;  %v1004_v18 = vpop.f32.mrb[6].mxu0  ;;  %v1677_v19 = vpop.f32.mrb[6].mxu1 }
 0x158   : > { %2310 = vst [vmem:[%s3823_s20 + $0x40] sm:$0xff] %v1001_v11  ;;  %2312 = vst [vmem:[%s3823_s20 + $0x50] sm:$0xff] %v1674_v12  ;;  %v1005_v20 = vadd.f32 %v1004_v18, %v3808_v51  ;;  %v1678_v21 = vadd.f32 %v1677_v19, %v3810_v52  ;;  %v1006_v22 = vpop.f32.mrb[7].mxu0  ;;  %v1679_v23 = vpop.f32.mrb[7].mxu1 }
 0x159   : > { %2311 = vst [vmem:[%s3823_s20 + $0x48] sm:$0xff] %v1003_v16  ;;  %2313 = vst [vmem:[%s3823_s20 + $0x58] sm:$0xff] %v1676_v17  ;;  %v1007_v24 = vadd.f32 %v1006_v22, %v3812_v53  ;;  %v1680_v25 = vadd.f32 %v1679_v23, %v3814_v54 }
 0x15a   : > { %2314 = vst [vmem:[%s3823_s20 + $0x60] sm:$0xff] %v1005_v20  ;;  %2316 = vst [vmem:[%s3823_s20 + $0x70] sm:$0xff] %v1678_v21  ;;  %3040 = vmatmul.mubr.msk.bf16.gmra.mrb[112].mxu0 %vm750_vm1, %v3269_v15  ;;  %3105 = vmatmul.mubr.msk.bf16.gmra.mrb[112].mxu1 %vm750_vm1, %v3269_v15 }
 0x15b   : > { %2315 = vst [vmem:[%s3823_s20 + $0x68] sm:$0xff] %v1007_v24  ;;  %2317 = vst [vmem:[%s3823_s20 + $0x78] sm:$0xff] %v1680_v25  ;;  %1278 = vmatprep.mubr.bf16.mxu0 %v3470_v0  ;;  %1951 = vmatprep.mubr.bf16.mxu1 %v3470_v0  ;;  %v3273_v24 = vld [vmem:[%s3662_s30 + $0x100] sm:$0xff]  }
 0x15d   : > { %v1010_v26 = vpop.f32.mrb[8].mxu0  ;;  %v1683_v27 = vpop.f32.mrb[8].mxu1 }
 0x15e   : > { %v1011_v28 = vadd.f32 %v1010_v26, %v3808_v51  ;;  %v1684_v29 = vadd.f32 %v1683_v27, %v3810_v52  ;;  %v1012_v30 = vpop.f32.mrb[9].mxu0  ;;  %v1685_v31 = vpop.f32.mrb[9].mxu1 }
 0x15f   : > { %v1013_v33 = vadd.f32 %v1012_v30, %v3812_v53  ;;  %v1686_v34 = vadd.f32 %v1685_v31, %v3814_v54  ;;  %v1014_v35 = vpop.f32.mrb[10].mxu0  ;;  %v1687_v36 = vpop.f32.mrb[10].mxu1 }
 0x160   : > { %2318 = vst [vmem:[%s3823_s20 + $0x80] sm:$0xff] %v1011_v28  ;;  %2320 = vst [vmem:[%s3823_s20 + $0x90] sm:$0xff] %v1684_v29  ;;  %v1015_v37 = vadd.f32 %v1014_v35, %v3808_v51  ;;  %v1688_v38 = vadd.f32 %v1687_v36, %v3810_v52  ;;  %v1016_v39 = vpop.f32.mrb[11].mxu0  ;;  %v1689_v40 = vpop.f32.mrb[11].mxu1 }
 0x161   : > { %2319 = vst [vmem:[%s3823_s20 + $0x88] sm:$0xff] %v1013_v33  ;;  %2321 = vst [vmem:[%s3823_s20 + $0x98] sm:$0xff] %v1686_v34  ;;  %v1017_v41 = vadd.f32 %v1016_v39, %v3812_v53  ;;  %v1690_v42 = vadd.f32 %v1689_v40, %v3814_v54 }
 0x162   : > { %2322 = vst [vmem:[%s3823_s20 + $0xa0] sm:$0xff] %v1015_v37  ;;  %2324 = vst [vmem:[%s3823_s20 + $0xb0] sm:$0xff] %v1688_v38  ;;  %3041 = vmatmul.mubr.msk.bf16.gmra.mrb[116].mxu0 %vm750_vm1, %v3270_v32  ;;  %3106 = vmatmul.mubr.msk.bf16.gmra.mrb[116].mxu1 %vm750_vm1, %v3270_v32 }
 0x163   : > { %2323 = vst [vmem:[%s3823_s20 + $0xa8] sm:$0xff] %v1017_v41  ;;  %2325 = vst [vmem:[%s3823_s20 + $0xb8] sm:$0xff] %v1690_v42  ;;  %1288 = vmatprep.mubr.bf16.mxu0 %v3470_v0  ;;  %1961 = vmatprep.mubr.bf16.mxu1 %v3470_v0  ;;  %v3274_v41 = vld [vmem:[%s3662_s30 + $0x108] sm:$0xff]  }
 0x165   : > { %v1020_v43 = vpop.f32.mrb[12].mxu0  ;;  %v1693_v44 = vpop.f32.mrb[12].mxu1 }
 0x166   : > { %v1021_v45 = vadd.f32 %v1020_v43, %v3808_v51  ;;  %v1694_v46 = vadd.f32 %v1693_v44, %v3810_v52  ;;  %v1022_v47 = vpop.f32.mrb[13].mxu0  ;;  %v1695_v48 = vpop.f32.mrb[13].mxu1 }
 0x167   : > { %v1023_v50 = vadd.f32 %v1022_v47, %v3812_v53  ;;  %v1696_v55 = vadd.f32 %v1695_v48, %v3814_v54  ;;  %v1024_v56 = vpop.f32.mrb[14].mxu0  ;;  %v1697_v57 = vpop.f32.mrb[14].mxu1 }
 0x168   : > { %2326 = vst [vmem:[%s3823_s20 + $0xc0] sm:$0xff] %v1021_v45  ;;  %2328 = vst [vmem:[%s3823_s20 + $0xd0] sm:$0xff] %v1694_v46  ;;  %v1025_v58 = vadd.f32 %v1024_v56, %v3808_v51  ;;  %v1698_v59 = vadd.f32 %v1697_v57, %v3810_v52  ;;  %v1026_v60 = vpop.f32.mrb[15].mxu0  ;;  %v1699_v61 = vpop.f32.mrb[15].mxu1 }
 0x169   : > { %2327 = vst [vmem:[%s3823_s20 + $0xc8] sm:$0xff] %v1023_v50  ;;  %2329 = vst [vmem:[%s3823_s20 + $0xd8] sm:$0xff] %v1696_v55  ;;  %v1027_v62 = vadd.f32 %v1026_v60, %v3812_v53  ;;  %v1700_v63 = vadd.f32 %v1699_v61, %v3814_v54 }
 0x16a   : > { %2330 = vst [vmem:[%s3823_s20 + $0xe0] sm:$0xff] %v1025_v58  ;;  %2332 = vst [vmem:[%s3823_s20 + $0xf0] sm:$0xff] %v1698_v59  ;;  %3042 = vmatmul.mubr.msk.bf16.gmra.mrb[120].mxu0 %vm750_vm1, %v3271_v49  ;;  %3107 = vmatmul.mubr.msk.bf16.gmra.mrb[120].mxu1 %vm750_vm1, %v3271_v49 }
 0x16b   : > { %2331 = vst [vmem:[%s3823_s20 + $0xe8] sm:$0xff] %v1027_v62  ;;  %2333 = vst [vmem:[%s3823_s20 + $0xf8] sm:$0xff] %v1700_v63  ;;  %1298 = vmatprep.mubr.bf16.mxu0 %v3470_v0  ;;  %1971 = vmatprep.mubr.bf16.mxu1 %v3470_v0  ;;  %v3275_v62 = vld [vmem:[%s3662_s30 + $0x110] sm:$0xff]  }
 0x16d   : > { %v1030_v1 = vpop.f32.mrb[16].mxu0  ;;  %v1703_v2 = vpop.f32.mrb[16].mxu1 }
 0x16e   : > { %v1031_v3 = vadd.f32 %v1030_v1, %v3808_v51  ;;  %v1704_v4 = vadd.f32 %v1703_v2, %v3810_v52  ;;  %v1032_v5 = vpop.f32.mrb[17].mxu0  ;;  %v1705_v6 = vpop.f32.mrb[17].mxu1 }
 0x16f   : > { %v1033_v8 = vadd.f32 %v1032_v5, %v3812_v53  ;;  %v1706_v9 = vadd.f32 %v1705_v6, %v3814_v54  ;;  %v1034_v10 = vpop.f32.mrb[18].mxu0  ;;  %v1707_v11 = vpop.f32.mrb[18].mxu1 }
 0x170   : > { %2334 = vst [vmem:[%s3823_s20 + $0x100] sm:$0xff] %v1031_v3  ;;  %2336 = vst [vmem:[%s3823_s20 + $0x110] sm:$0xff] %v1704_v4  ;;  %v1035_v12 = vadd.f32 %v1034_v10, %v3808_v51  ;;  %v1708_v13 = vadd.f32 %v1707_v11, %v3810_v52  ;;  %v1036_v14 = vpop.f32.mrb[19].mxu0  ;;  %v1709_v15 = vpop.f32.mrb[19].mxu1 }
 0x171   : > { %2335 = vst [vmem:[%s3823_s20 + $0x108] sm:$0xff] %v1033_v8  ;;  %2337 = vst [vmem:[%s3823_s20 + $0x118] sm:$0xff] %v1706_v9  ;;  %v1037_v16 = vadd.f32 %v1036_v14, %v3812_v53  ;;  %v1710_v17 = vadd.f32 %v1709_v15, %v3814_v54 }
 0x172   : > { %2338 = vst [vmem:[%s3823_s20 + $0x120] sm:$0xff] %v1035_v12  ;;  %2340 = vst [vmem:[%s3823_s20 + $0x130] sm:$0xff] %v1708_v13  ;;  %3043 = vmatmul.mubr.msk.bf16.gmra.mrb[124].mxu0 %vm750_vm1, %v3272_v7  ;;  %3108 = vmatmul.mubr.msk.bf16.gmra.mrb[124].mxu1 %vm750_vm1, %v3272_v7 }
 0x173   : > { %2339 = vst [vmem:[%s3823_s20 + $0x128] sm:$0xff] %v1037_v16  ;;  %2341 = vst [vmem:[%s3823_s20 + $0x138] sm:$0xff] %v1710_v17  ;;  %1308 = vmatprep.mubr.bf16.mxu0 %v3470_v0  ;;  %1981 = vmatprep.mubr.bf16.mxu1 %v3470_v0  ;;  %v3276_v16 = vld [vmem:[%s3662_s30 + $0x118] sm:$0xff]  }
 0x175   : > { %v1040_v18 = vpop.f32.mrb[20].mxu0  ;;  %v1713_v19 = vpop.f32.mrb[20].mxu1 }
 0x176   : > { %v1041_v20 = vadd.f32 %v1040_v18, %v3808_v51  ;;  %v1714_v21 = vadd.f32 %v1713_v19, %v3810_v52  ;;  %v1042_v22 = vpop.f32.mrb[21].mxu0  ;;  %v1715_v23 = vpop.f32.mrb[21].mxu1 }
 0x177   : > { %v1043_v25 = vadd.f32 %v1042_v22, %v3812_v53  ;;  %v1716_v26 = vadd.f32 %v1715_v23, %v3814_v54  ;;  %v1044_v27 = vpop.f32.mrb[22].mxu0  ;;  %v1717_v28 = vpop.f32.mrb[22].mxu1 }
 0x178   : > { %2342 = vst [vmem:[%s3823_s20 + $0x140] sm:$0xff] %v1041_v20  ;;  %2344 = vst [vmem:[%s3823_s20 + $0x150] sm:$0xff] %v1714_v21  ;;  %v1045_v29 = vadd.f32 %v1044_v27, %v3808_v51  ;;  %v1718_v30 = vadd.f32 %v1717_v28, %v3810_v52  ;;  %v1046_v31 = vpop.f32.mrb[23].mxu0  ;;  %v1719_v32 = vpop.f32.mrb[23].mxu1 }
 0x179   : > { %2343 = vst [vmem:[%s3823_s20 + $0x148] sm:$0xff] %v1043_v25  ;;  %2345 = vst [vmem:[%s3823_s20 + $0x158] sm:$0xff] %v1716_v26  ;;  %v1047_v33 = vadd.f32 %v1046_v31, %v3812_v53  ;;  %v1720_v34 = vadd.f32 %v1719_v32, %v3814_v54 }
 0x17a   : > { %2346 = vst [vmem:[%s3823_s20 + $0x160] sm:$0xff] %v1045_v29  ;;  %2348 = vst [vmem:[%s3823_s20 + $0x170] sm:$0xff] %v1718_v30  ;;  %3044 = vmatmul.mubr.msk.bf16.gmra.mrb[128].mxu0 %vm750_vm1, %v3273_v24  ;;  %3109 = vmatmul.mubr.msk.bf16.gmra.mrb[128].mxu1 %vm750_vm1, %v3273_v24 }
 0x17b   : > { %2347 = vst [vmem:[%s3823_s20 + $0x168] sm:$0xff] %v1047_v33  ;;  %2349 = vst [vmem:[%s3823_s20 + $0x178] sm:$0xff] %v1720_v34  ;;  %1318 = vmatprep.mubr.bf16.mxu0 %v3470_v0  ;;  %1991 = vmatprep.mubr.bf16.mxu1 %v3470_v0  ;;  %v3277_v33 = vld [vmem:[%s3662_s30 + $0x120] sm:$0xff]  }
 0x17d   : > { %v1050_v35 = vpop.f32.mrb[24].mxu0  ;;  %v1723_v36 = vpop.f32.mrb[24].mxu1 }
 0x17e   : > { %v1051_v37 = vadd.f32 %v1050_v35, %v3808_v51  ;;  %v1724_v38 = vadd.f32 %v1723_v36, %v3810_v52  ;;  %v1052_v39 = vpop.f32.mrb[25].mxu0  ;;  %v1725_v40 = vpop.f32.mrb[25].mxu1 }
 0x17f   : > { %v1053_v42 = vadd.f32 %v1052_v39, %v3812_v53  ;;  %v1726_v43 = vadd.f32 %v1725_v40, %v3814_v54  ;;  %v1054_v44 = vpop.f32.mrb[26].mxu0  ;;  %v1727_v45 = vpop.f32.mrb[26].mxu1 }
 0x180   : > { %2350 = vst [vmem:[%s3823_s20 + $0x180] sm:$0xff] %v1051_v37  ;;  %2352 = vst [vmem:[%s3823_s20 + $0x190] sm:$0xff] %v1724_v38  ;;  %v1055_v46 = vadd.f32 %v1054_v44, %v3808_v51  ;;  %v1728_v47 = vadd.f32 %v1727_v45, %v3810_v52  ;;  %v1056_v48 = vpop.f32.mrb[27].mxu0  ;;  %v1729_v49 = vpop.f32.mrb[27].mxu1 }
 0x181   : > { %2351 = vst [vmem:[%s3823_s20 + $0x188] sm:$0xff] %v1053_v42  ;;  %2353 = vst [vmem:[%s3823_s20 + $0x198] sm:$0xff] %v1726_v43  ;;  %v1057_v50 = vadd.f32 %v1056_v48, %v3812_v53  ;;  %v1730_v55 = vadd.f32 %v1729_v49, %v3814_v54 }
 0x182   : > { %2354 = vst [vmem:[%s3823_s20 + $0x1a0] sm:$0xff] %v1055_v46  ;;  %2356 = vst [vmem:[%s3823_s20 + $0x1b0] sm:$0xff] %v1728_v47  ;;  %3045 = vmatmul.mubr.msk.bf16.gmra.mrb[132].mxu0 %vm750_vm1, %v3274_v41  ;;  %3110 = vmatmul.mubr.msk.bf16.gmra.mrb[132].mxu1 %vm750_vm1, %v3274_v41 }
 0x183   : > { %2355 = vst [vmem:[%s3823_s20 + $0x1a8] sm:$0xff] %v1057_v50  ;;  %2357 = vst [vmem:[%s3823_s20 + $0x1b8] sm:$0xff] %v1730_v55  ;;  %1328 = vmatprep.mubr.bf16.mxu0 %v3470_v0  ;;  %2001 = vmatprep.mubr.bf16.mxu1 %v3470_v0  ;;  %v3278_v50 = vld [vmem:[%s3662_s30 + $0x128] sm:$0xff]  }
 0x185   : > { %v1060_v56 = vpop.f32.mrb[28].mxu0  ;;  %v1733_v57 = vpop.f32.mrb[28].mxu1 }
 0x186   : > { %v1061_v58 = vadd.f32 %v1060_v56, %v3808_v51  ;;  %v1734_v59 = vadd.f32 %v1733_v57, %v3810_v52  ;;  %v1062_v60 = vpop.f32.mrb[29].mxu0  ;;  %v1735_v61 = vpop.f32.mrb[29].mxu1 }
 0x187   : > { %v1063_v63 = vadd.f32 %v1062_v60, %v3812_v53  ;;  %v1736_v1 = vadd.f32 %v1735_v61, %v3814_v54  ;;  %v1064_v2 = vpop.f32.mrb[30].mxu0  ;;  %v1737_v3 = vpop.f32.mrb[30].mxu1 }
 0x188   : > { %2358 = vst [vmem:[%s3823_s20 + $0x1c0] sm:$0xff] %v1061_v58  ;;  %2360 = vst [vmem:[%s3823_s20 + $0x1d0] sm:$0xff] %v1734_v59  ;;  %v1065_v4 = vadd.f32 %v1064_v2, %v3808_v51  ;;  %v1738_v5 = vadd.f32 %v1737_v3, %v3810_v52  ;;  %v1066_v6 = vpop.f32.mrb[31].mxu0  ;;  %v1739_v7 = vpop.f32.mrb[31].mxu1 }
 0x189   : > { %2359 = vst [vmem:[%s3823_s20 + $0x1c8] sm:$0xff] %v1063_v63  ;;  %2361 = vst [vmem:[%s3823_s20 + $0x1d8] sm:$0xff] %v1736_v1  ;;  %v1067_v8 = vadd.f32 %v1066_v6, %v3812_v53  ;;  %v1740_v9 = vadd.f32 %v1739_v7, %v3814_v54 }
 0x18a   : > { %2362 = vst [vmem:[%s3823_s20 + $0x1e0] sm:$0xff] %v1065_v4  ;;  %2364 = vst [vmem:[%s3823_s20 + $0x1f0] sm:$0xff] %v1738_v5  ;;  %3046 = vmatmul.mubr.msk.bf16.gmra.mrb[136].mxu0 %vm750_vm1, %v3275_v62  ;;  %3111 = vmatmul.mubr.msk.bf16.gmra.mrb[136].mxu1 %vm750_vm1, %v3275_v62 }
 0x18b   : > { %2363 = vst [vmem:[%s3823_s20 + $0x1e8] sm:$0xff] %v1067_v8  ;;  %2365 = vst [vmem:[%s3823_s20 + $0x1f8] sm:$0xff] %v1740_v9  ;;  %1338 = vmatprep.mubr.bf16.mxu0 %v3470_v0  ;;  %2011 = vmatprep.mubr.bf16.mxu1 %v3470_v0  ;;  %v3279_v8 = vld [vmem:[%s3662_s30 + $0x130] sm:$0xff]  }
 0x18d   : > { %v1070_v10 = vpop.f32.mrb[32].mxu0  ;;  %v1743_v11 = vpop.f32.mrb[32].mxu1 }
 0x18e   : > { %v1071_v12 = vadd.f32 %v1070_v10, %v3808_v51  ;;  %v1744_v13 = vadd.f32 %v1743_v11, %v3810_v52  ;;  %v1072_v14 = vpop.f32.mrb[33].mxu0  ;;  %v1745_v15 = vpop.f32.mrb[33].mxu1 }
 0x18f   : > { %v1073_v17 = vadd.f32 %v1072_v14, %v3812_v53  ;;  %v1746_v18 = vadd.f32 %v1745_v15, %v3814_v54  ;;  %v1074_v19 = vpop.f32.mrb[34].mxu0  ;;  %v1747_v20 = vpop.f32.mrb[34].mxu1 }
 0x190   : > { %2366 = vst [vmem:[%s3823_s20 + $0x200] sm:$0xff] %v1071_v12  ;;  %2368 = vst [vmem:[%s3823_s20 + $0x210] sm:$0xff] %v1744_v13  ;;  %v1075_v21 = vadd.f32 %v1074_v19, %v3808_v51  ;;  %v1748_v22 = vadd.f32 %v1747_v20, %v3810_v52  ;;  %v1076_v23 = vpop.f32.mrb[35].mxu0  ;;  %v1749_v24 = vpop.f32.mrb[35].mxu1 }
 0x191   : > { %2367 = vst [vmem:[%s3823_s20 + $0x208] sm:$0xff] %v1073_v17  ;;  %2369 = vst [vmem:[%s3823_s20 + $0x218] sm:$0xff] %v1746_v18  ;;  %v1077_v25 = vadd.f32 %v1076_v23, %v3812_v53  ;;  %v1750_v26 = vadd.f32 %v1749_v24, %v3814_v54 }
 0x192   : > { %2370 = vst [vmem:[%s3823_s20 + $0x220] sm:$0xff] %v1075_v21  ;;  %2372 = vst [vmem:[%s3823_s20 + $0x230] sm:$0xff] %v1748_v22  ;;  %3047 = vmatmul.mubr.msk.bf16.gmra.mrb[140].mxu0 %vm750_vm1, %v3276_v16  ;;  %3112 = vmatmul.mubr.msk.bf16.gmra.mrb[140].mxu1 %vm750_vm1, %v3276_v16 }
 0x193   : > { %2371 = vst [vmem:[%s3823_s20 + $0x228] sm:$0xff] %v1077_v25  ;;  %2373 = vst [vmem:[%s3823_s20 + $0x238] sm:$0xff] %v1750_v26  ;;  %1348 = vmatprep.mubr.bf16.mxu0 %v3470_v0  ;;  %2021 = vmatprep.mubr.bf16.mxu1 %v3470_v0  ;;  %v3280_v25 = vld [vmem:[%s3662_s30 + $0x138] sm:$0xff]  }
 0x195   : > { %v1080_v27 = vpop.f32.mrb[36].mxu0  ;;  %v1753_v28 = vpop.f32.mrb[36].mxu1 }
 0x196   : > { %v1081_v29 = vadd.f32 %v1080_v27, %v3808_v51  ;;  %v1754_v30 = vadd.f32 %v1753_v28, %v3810_v52  ;;  %v1082_v31 = vpop.f32.mrb[37].mxu0  ;;  %v1755_v32 = vpop.f32.mrb[37].mxu1 }
 0x197   : > { %v1083_v34 = vadd.f32 %v1082_v31, %v3812_v53  ;;  %v1756_v35 = vadd.f32 %v1755_v32, %v3814_v54  ;;  %v1084_v36 = vpop.f32.mrb[38].mxu0  ;;  %v1757_v37 = vpop.f32.mrb[38].mxu1 }
 0x198   : > { %2374 = vst [vmem:[%s3823_s20 + $0x240] sm:$0xff] %v1081_v29  ;;  %2376 = vst [vmem:[%s3823_s20 + $0x250] sm:$0xff] %v1754_v30  ;;  %v1085_v38 = vadd.f32 %v1084_v36, %v3808_v51  ;;  %v1758_v39 = vadd.f32 %v1757_v37, %v3810_v52  ;;  %v1086_v40 = vpop.f32.mrb[39].mxu0  ;;  %v1759_v41 = vpop.f32.mrb[39].mxu1 }
 0x199   : > { %2375 = vst [vmem:[%s3823_s20 + $0x248] sm:$0xff] %v1083_v34  ;;  %2377 = vst [vmem:[%s3823_s20 + $0x258] sm:$0xff] %v1756_v35  ;;  %v1087_v42 = vadd.f32 %v1086_v40, %v3812_v53  ;;  %v1760_v43 = vadd.f32 %v1759_v41, %v3814_v54 }
 0x19a   : > { %2378 = vst [vmem:[%s3823_s20 + $0x260] sm:$0xff] %v1085_v38  ;;  %2380 = vst [vmem:[%s3823_s20 + $0x270] sm:$0xff] %v1758_v39  ;;  %3048 = vmatmul.mubr.msk.bf16.gmra.mrb[144].mxu0 %vm750_vm1, %v3277_v33  ;;  %3113 = vmatmul.mubr.msk.bf16.gmra.mrb[144].mxu1 %vm750_vm1, %v3277_v33 }
 0x19b   : > { %2379 = vst [vmem:[%s3823_s20 + $0x268] sm:$0xff] %v1087_v42  ;;  %2381 = vst [vmem:[%s3823_s20 + $0x278] sm:$0xff] %v1760_v43  ;;  %1358 = vmatprep.mubr.bf16.mxu0 %v3470_v0  ;;  %2031 = vmatprep.mubr.bf16.mxu1 %v3470_v0  ;;  %v3281_v42 = vld [vmem:[%s3662_s30 + $0x140] sm:$0xff]  }
 0x19d   : > { %v1090_v44 = vpop.f32.mrb[40].mxu0  ;;  %v1763_v45 = vpop.f32.mrb[40].mxu1 }
 0x19e   : > { %v1091_v46 = vadd.f32 %v1090_v44, %v3808_v51  ;;  %v1764_v47 = vadd.f32 %v1763_v45, %v3810_v52  ;;  %v1092_v48 = vpop.f32.mrb[41].mxu0  ;;  %v1765_v49 = vpop.f32.mrb[41].mxu1 }
 0x19f   : > { %v1093_v55 = vadd.f32 %v1092_v48, %v3812_v53  ;;  %v1766_v56 = vadd.f32 %v1765_v49, %v3814_v54  ;;  %v1094_v57 = vpop.f32.mrb[42].mxu0  ;;  %v1767_v58 = vpop.f32.mrb[42].mxu1 }
 0x1a0   : > { %2382 = vst [vmem:[%s3823_s20 + $0x280] sm:$0xff] %v1091_v46  ;;  %2384 = vst [vmem:[%s3823_s20 + $0x290] sm:$0xff] %v1764_v47  ;;  %v1095_v59 = vadd.f32 %v1094_v57, %v3808_v51  ;;  %v1768_v60 = vadd.f32 %v1767_v58, %v3810_v52  ;;  %v1096_v61 = vpop.f32.mrb[43].mxu0  ;;  %v1769_v62 = vpop.f32.mrb[43].mxu1 }
 0x1a1   : > { %2383 = vst [vmem:[%s3823_s20 + $0x288] sm:$0xff] %v1093_v55  ;;  %2385 = vst [vmem:[%s3823_s20 + $0x298] sm:$0xff] %v1766_v56  ;;  %v1097_v63 = vadd.f32 %v1096_v61, %v3812_v53  ;;  %v1770_v1 = vadd.f32 %v1769_v62, %v3814_v54 }
 0x1a2   : > { %2386 = vst [vmem:[%s3823_s20 + $0x2a0] sm:$0xff] %v1095_v59  ;;  %2388 = vst [vmem:[%s3823_s20 + $0x2b0] sm:$0xff] %v1768_v60  ;;  %3049 = vmatmul.mubr.msk.bf16.gmra.mrb[148].mxu0 %vm750_vm1, %v3278_v50  ;;  %3114 = vmatmul.mubr.msk.bf16.gmra.mrb[148].mxu1 %vm750_vm1, %v3278_v50 }
 0x1a3   : > { %2387 = vst [vmem:[%s3823_s20 + $0x2a8] sm:$0xff] %v1097_v63  ;;  %2389 = vst [vmem:[%s3823_s20 + $0x2b8] sm:$0xff] %v1770_v1  ;;  %1368 = vmatprep.mubr.bf16.mxu0 %v3470_v0  ;;  %2041 = vmatprep.mubr.bf16.mxu1 %v3470_v0  ;;  %v3282_v63 = vld [vmem:[%s3662_s30 + $0x148] sm:$0xff]  }
 0x1a5   : > { %v1100_v2 = vpop.f32.mrb[44].mxu0  ;;  %v1773_v3 = vpop.f32.mrb[44].mxu1 }
 0x1a6   : > { %v1101_v4 = vadd.f32 %v1100_v2, %v3808_v51  ;;  %v1774_v5 = vadd.f32 %v1773_v3, %v3810_v52  ;;  %v1102_v6 = vpop.f32.mrb[45].mxu0  ;;  %v1775_v7 = vpop.f32.mrb[45].mxu1 }
 0x1a7   : > { %v1103_v9 = vadd.f32 %v1102_v6, %v3812_v53  ;;  %v1776_v10 = vadd.f32 %v1775_v7, %v3814_v54  ;;  %v1104_v11 = vpop.f32.mrb[46].mxu0  ;;  %v1777_v12 = vpop.f32.mrb[46].mxu1 }
 0x1a8   : > { %2390 = vst [vmem:[%s3823_s20 + $0x2c0] sm:$0xff] %v1101_v4  ;;  %2392 = vst [vmem:[%s3823_s20 + $0x2d0] sm:$0xff] %v1774_v5  ;;  %v1105_v13 = vadd.f32 %v1104_v11, %v3808_v51  ;;  %v1778_v14 = vadd.f32 %v1777_v12, %v3810_v52  ;;  %v1106_v15 = vpop.f32.mrb[47].mxu0  ;;  %v1779_v16 = vpop.f32.mrb[47].mxu1 }
 0x1a9   : > { %2391 = vst [vmem:[%s3823_s20 + $0x2c8] sm:$0xff] %v1103_v9  ;;  %2393 = vst [vmem:[%s3823_s20 + $0x2d8] sm:$0xff] %v1776_v10  ;;  %v1107_v17 = vadd.f32 %v1106_v15, %v3812_v53  ;;  %v1780_v18 = vadd.f32 %v1779_v16, %v3814_v54 }
 0x1aa   : > { %2394 = vst [vmem:[%s3823_s20 + $0x2e0] sm:$0xff] %v1105_v13  ;;  %2396 = vst [vmem:[%s3823_s20 + $0x2f0] sm:$0xff] %v1778_v14  ;;  %3050 = vmatmul.mubr.msk.bf16.gmra.mrb[152].mxu0 %vm750_vm1, %v3279_v8  ;;  %3115 = vmatmul.mubr.msk.bf16.gmra.mrb[152].mxu1 %vm750_vm1, %v3279_v8 }
 0x1ab   : > { %2395 = vst [vmem:[%s3823_s20 + $0x2e8] sm:$0xff] %v1107_v17  ;;  %2397 = vst [vmem:[%s3823_s20 + $0x2f8] sm:$0xff] %v1780_v18  ;;  %1378 = vmatprep.mubr.bf16.mxu0 %v3470_v0  ;;  %2051 = vmatprep.mubr.bf16.mxu1 %v3470_v0  ;;  %v3283_v17 = vld [vmem:[%s3662_s30 + $0x150] sm:$0xff]  }
 0x1ad   : > { %v1110_v19 = vpop.f32.mrb[48].mxu0  ;;  %v1783_v20 = vpop.f32.mrb[48].mxu1 }
 0x1ae   : > { %v1111_v21 = vadd.f32 %v1110_v19, %v3808_v51  ;;  %v1784_v22 = vadd.f32 %v1783_v20, %v3810_v52  ;;  %v1112_v23 = vpop.f32.mrb[49].mxu0  ;;  %v1785_v24 = vpop.f32.mrb[49].mxu1 }
 0x1af   : > { %v1113_v26 = vadd.f32 %v1112_v23, %v3812_v53  ;;  %v1786_v27 = vadd.f32 %v1785_v24, %v3814_v54  ;;  %v1114_v28 = vpop.f32.mrb[50].mxu0  ;;  %v1787_v29 = vpop.f32.mrb[50].mxu1 }
 0x1b0   : > { %2398 = vst [vmem:[%s3823_s20 + $0x300] sm:$0xff] %v1111_v21  ;;  %2400 = vst [vmem:[%s3823_s20 + $0x310] sm:$0xff] %v1784_v22  ;;  %v1115_v30 = vadd.f32 %v1114_v28, %v3808_v51  ;;  %v1788_v31 = vadd.f32 %v1787_v29, %v3810_v52  ;;  %v1116_v32 = vpop.f32.mrb[51].mxu0  ;;  %v1789_v33 = vpop.f32.mrb[51].mxu1 }
 0x1b1   : > { %2399 = vst [vmem:[%s3823_s20 + $0x308] sm:$0xff] %v1113_v26  ;;  %2401 = vst [vmem:[%s3823_s20 + $0x318] sm:$0xff] %v1786_v27  ;;  %v1117_v34 = vadd.f32 %v1116_v32, %v3812_v53  ;;  %v1790_v35 = vadd.f32 %v1789_v33, %v3814_v54 }
 0x1b2   : > { %2402 = vst [vmem:[%s3823_s20 + $0x320] sm:$0xff] %v1115_v30  ;;  %2404 = vst [vmem:[%s3823_s20 + $0x330] sm:$0xff] %v1788_v31  ;;  %3051 = vmatmul.mubr.msk.bf16.gmra.mrb[156].mxu0 %vm750_vm1, %v3280_v25  ;;  %3116 = vmatmul.mubr.msk.bf16.gmra.mrb[156].mxu1 %vm750_vm1, %v3280_v25 }
 0x1b3   : > { %2403 = vst [vmem:[%s3823_s20 + $0x328] sm:$0xff] %v1117_v34  ;;  %2405 = vst [vmem:[%s3823_s20 + $0x338] sm:$0xff] %v1790_v35  ;;  %1388 = vmatprep.mubr.bf16.mxu0 %v3470_v0  ;;  %2061 = vmatprep.mubr.bf16.mxu1 %v3470_v0  ;;  %v3284_v34 = vld [vmem:[%s3662_s30 + $0x158] sm:$0xff]  }
 0x1b5   : > { %v1120_v36 = vpop.f32.mrb[52].mxu0  ;;  %v1793_v37 = vpop.f32.mrb[52].mxu1 }
 0x1b6   : > { %v1121_v38 = vadd.f32 %v1120_v36, %v3808_v51  ;;  %v1794_v39 = vadd.f32 %v1793_v37, %v3810_v52  ;;  %v1122_v40 = vpop.f32.mrb[53].mxu0  ;;  %v1795_v41 = vpop.f32.mrb[53].mxu1 }
 0x1b7   : > { %v1123_v43 = vadd.f32 %v1122_v40, %v3812_v53  ;;  %v1796_v44 = vadd.f32 %v1795_v41, %v3814_v54  ;;  %v1124_v45 = vpop.f32.mrb[54].mxu0  ;;  %v1797_v46 = vpop.f32.mrb[54].mxu1 }
 0x1b8   : > { %2406 = vst [vmem:[%s3823_s20 + $0x340] sm:$0xff] %v1121_v38  ;;  %2408 = vst [vmem:[%s3823_s20 + $0x350] sm:$0xff] %v1794_v39  ;;  %v1125_v47 = vadd.f32 %v1124_v45, %v3808_v51  ;;  %v1798_v48 = vadd.f32 %v1797_v46, %v3810_v52  ;;  %v1126_v49 = vpop.f32.mrb[55].mxu0  ;;  %v1799_v50 = vpop.f32.mrb[55].mxu1 }
 0x1b9   : > { %2407 = vst [vmem:[%s3823_s20 + $0x348] sm:$0xff] %v1123_v43  ;;  %2409 = vst [vmem:[%s3823_s20 + $0x358] sm:$0xff] %v1796_v44  ;;  %v1127_v55 = vadd.f32 %v1126_v49, %v3812_v53  ;;  %v1800_v56 = vadd.f32 %v1799_v50, %v3814_v54 }
 0x1ba   : > { %2410 = vst [vmem:[%s3823_s20 + $0x360] sm:$0xff] %v1125_v47  ;;  %2412 = vst [vmem:[%s3823_s20 + $0x370] sm:$0xff] %v1798_v48  ;;  %3052 = vmatmul.mubr.msk.bf16.gmra.mrb[160].mxu0 %vm750_vm1, %v3281_v42  ;;  %3117 = vmatmul.mubr.msk.bf16.gmra.mrb[160].mxu1 %vm750_vm1, %v3281_v42 }
 0x1bb   : > { %2411 = vst [vmem:[%s3823_s20 + $0x368] sm:$0xff] %v1127_v55  ;;  %2413 = vst [vmem:[%s3823_s20 + $0x378] sm:$0xff] %v1800_v56  ;;  %1398 = vmatprep.mubr.bf16.mxu0 %v3470_v0  ;;  %2071 = vmatprep.mubr.bf16.mxu1 %v3470_v0  ;;  %v3285_v55 = vld [vmem:[%s3662_s30 + $0x160] sm:$0xff]  }
 0x1bd   : > { %v1130_v57 = vpop.f32.mrb[56].mxu0  ;;  %v1803_v58 = vpop.f32.mrb[56].mxu1 }
 0x1be   : > { %v1131_v59 = vadd.f32 %v1130_v57, %v3808_v51  ;;  %v1804_v60 = vadd.f32 %v1803_v58, %v3810_v52  ;;  %v1132_v61 = vpop.f32.mrb[57].mxu0  ;;  %v1805_v62 = vpop.f32.mrb[57].mxu1 }
 0x1bf   : > { %v1133_v1 = vadd.f32 %v1132_v61, %v3812_v53  ;;  %v1806_v2 = vadd.f32 %v1805_v62, %v3814_v54  ;;  %v1134_v3 = vpop.f32.mrb[58].mxu0  ;;  %v1807_v4 = vpop.f32.mrb[58].mxu1 }
 0x1c0   : > { %2414 = vst [vmem:[%s3823_s20 + $0x380] sm:$0xff] %v1131_v59  ;;  %2416 = vst [vmem:[%s3823_s20 + $0x390] sm:$0xff] %v1804_v60  ;;  %v1135_v5 = vadd.f32 %v1134_v3, %v3808_v51  ;;  %v1808_v6 = vadd.f32 %v1807_v4, %v3810_v52  ;;  %v1136_v7 = vpop.f32.mrb[59].mxu0  ;;  %v1809_v8 = vpop.f32.mrb[59].mxu1 }
 0x1c1   : > { %2415 = vst [vmem:[%s3823_s20 + $0x388] sm:$0xff] %v1133_v1  ;;  %2417 = vst [vmem:[%s3823_s20 + $0x398] sm:$0xff] %v1806_v2  ;;  %v1137_v9 = vadd.f32 %v1136_v7, %v3812_v53  ;;  %v1810_v10 = vadd.f32 %v1809_v8, %v3814_v54 }
 0x1c2   : > { %2418 = vst [vmem:[%s3823_s20 + $0x3a0] sm:$0xff] %v1135_v5  ;;  %2420 = vst [vmem:[%s3823_s20 + $0x3b0] sm:$0xff] %v1808_v6  ;;  %3053 = vmatmul.mubr.msk.bf16.gmra.mrb[164].mxu0 %vm750_vm1, %v3282_v63  ;;  %3118 = vmatmul.mubr.msk.bf16.gmra.mrb[164].mxu1 %vm750_vm1, %v3282_v63 }
 0x1c3   : > { %2419 = vst [vmem:[%s3823_s20 + $0x3a8] sm:$0xff] %v1137_v9  ;;  %2421 = vst [vmem:[%s3823_s20 + $0x3b8] sm:$0xff] %v1810_v10  ;;  %1408 = vmatprep.mubr.bf16.mxu0 %v3470_v0  ;;  %2081 = vmatprep.mubr.bf16.mxu1 %v3470_v0  ;;  %v3286_v9 = vld [vmem:[%s3662_s30 + $0x168] sm:$0xff]  }
 0x1c5   : > { %v1140_v11 = vpop.f32.mrb[60].mxu0  ;;  %v1813_v12 = vpop.f32.mrb[60].mxu1 }
 0x1c6   : > { %v1141_v13 = vadd.f32 %v1140_v11, %v3808_v51  ;;  %v1814_v14 = vadd.f32 %v1813_v12, %v3810_v52  ;;  %v1142_v15 = vpop.f32.mrb[61].mxu0  ;;  %v1815_v16 = vpop.f32.mrb[61].mxu1 }
 0x1c7   : > { %v1143_v18 = vadd.f32 %v1142_v15, %v3812_v53  ;;  %v1816_v19 = vadd.f32 %v1815_v16, %v3814_v54  ;;  %v1144_v20 = vpop.f32.mrb[62].mxu0  ;;  %v1817_v21 = vpop.f32.mrb[62].mxu1 }
 0x1c8   : > { %2422 = vst [vmem:[%s3823_s20 + $0x3c0] sm:$0xff] %v1141_v13  ;;  %2424 = vst [vmem:[%s3823_s20 + $0x3d0] sm:$0xff] %v1814_v14  ;;  %v1145_v22 = vadd.f32 %v1144_v20, %v3808_v51  ;;  %v1818_v23 = vadd.f32 %v1817_v21, %v3810_v52  ;;  %v1146_v24 = vpop.f32.mrb[63].mxu0  ;;  %v1819_v25 = vpop.f32.mrb[63].mxu1 }
 0x1c9   : > { %2423 = vst [vmem:[%s3823_s20 + $0x3c8] sm:$0xff] %v1143_v18  ;;  %2425 = vst [vmem:[%s3823_s20 + $0x3d8] sm:$0xff] %v1816_v19  ;;  %v1147_v26 = vadd.f32 %v1146_v24, %v3812_v53  ;;  %v1820_v27 = vadd.f32 %v1819_v25, %v3814_v54 }
 0x1ca   : > { %2426 = vst [vmem:[%s3823_s20 + $0x3e0] sm:$0xff] %v1145_v22  ;;  %2428 = vst [vmem:[%s3823_s20 + $0x3f0] sm:$0xff] %v1818_v23  ;;  %3054 = vmatmul.mubr.msk.bf16.gmra.mrb[168].mxu0 %vm750_vm1, %v3283_v17  ;;  %3119 = vmatmul.mubr.msk.bf16.gmra.mrb[168].mxu1 %vm750_vm1, %v3283_v17 }
 0x1cb   : > { %2427 = vst [vmem:[%s3823_s20 + $0x3e8] sm:$0xff] %v1147_v26  ;;  %2429 = vst [vmem:[%s3823_s20 + $0x3f8] sm:$0xff] %v1820_v27  ;;  %1418 = vmatprep.mubr.bf16.mxu0 %v3470_v0  ;;  %2091 = vmatprep.mubr.bf16.mxu1 %v3470_v0  ;;  %v3287_v26 = vld [vmem:[%s3662_s30 + $0x170] sm:$0xff]  }
 0x1cd   : > { %v1150_v28 = vpop.f32.mrb[64].mxu0  ;;  %v1823_v29 = vpop.f32.mrb[64].mxu1 }
 0x1ce   : > { %v1151_v30 = vadd.f32 %v1150_v28, %v3808_v51  ;;  %v1824_v31 = vadd.f32 %v1823_v29, %v3810_v52  ;;  %v1152_v32 = vpop.f32.mrb[65].mxu0  ;;  %v1825_v33 = vpop.f32.mrb[65].mxu1 }
 0x1cf   : > { %v1153_v35 = vadd.f32 %v1152_v32, %v3812_v53  ;;  %v1826_v36 = vadd.f32 %v1825_v33, %v3814_v54  ;;  %v1154_v37 = vpop.f32.mrb[66].mxu0  ;;  %v1827_v38 = vpop.f32.mrb[66].mxu1 }
 0x1d0   : > { %2430 = vst [vmem:[%s3823_s20 + $0x400] sm:$0xff] %v1151_v30  ;;  %2432 = vst [vmem:[%s3823_s20 + $0x410] sm:$0xff] %v1824_v31  ;;  %v1155_v39 = vadd.f32 %v1154_v37, %v3808_v51  ;;  %v1828_v40 = vadd.f32 %v1827_v38, %v3810_v52  ;;  %v1156_v41 = vpop.f32.mrb[67].mxu0  ;;  %v1829_v42 = vpop.f32.mrb[67].mxu1 }
 0x1d1   : > { %2431 = vst [vmem:[%s3823_s20 + $0x408] sm:$0xff] %v1153_v35  ;;  %2433 = vst [vmem:[%s3823_s20 + $0x418] sm:$0xff] %v1826_v36  ;;  %v1157_v43 = vadd.f32 %v1156_v41, %v3812_v53  ;;  %v1830_v44 = vadd.f32 %v1829_v42, %v3814_v54 }
 0x1d2   : > { %2434 = vst [vmem:[%s3823_s20 + $0x420] sm:$0xff] %v1155_v39  ;;  %2436 = vst [vmem:[%s3823_s20 + $0x430] sm:$0xff] %v1828_v40  ;;  %3055 = vmatmul.mubr.msk.bf16.gmra.mrb[172].mxu0 %vm750_vm1, %v3284_v34  ;;  %3120 = vmatmul.mubr.msk.bf16.gmra.mrb[172].mxu1 %vm750_vm1, %v3284_v34 }
 0x1d3   : > { %2435 = vst [vmem:[%s3823_s20 + $0x428] sm:$0xff] %v1157_v43  ;;  %2437 = vst [vmem:[%s3823_s20 + $0x438] sm:$0xff] %v1830_v44  ;;  %1428 = vmatprep.mubr.bf16.mxu0 %v3470_v0  ;;  %2101 = vmatprep.mubr.bf16.mxu1 %v3470_v0  ;;  %v3288_v43 = vld [vmem:[%s3662_s30 + $0x178] sm:$0xff]  }
 0x1d5   : > { %v1160_v45 = vpop.f32.mrb[68].mxu0  ;;  %v1833_v46 = vpop.f32.mrb[68].mxu1 }
 0x1d6   : > { %v1161_v47 = vadd.f32 %v1160_v45, %v3808_v51  ;;  %v1834_v48 = vadd.f32 %v1833_v46, %v3810_v52  ;;  %v1162_v49 = vpop.f32.mrb[69].mxu0  ;;  %v1835_v50 = vpop.f32.mrb[69].mxu1 }
 0x1d7   : > { %v1163_v56 = vadd.f32 %v1162_v49, %v3812_v53  ;;  %v1836_v57 = vadd.f32 %v1835_v50, %v3814_v54  ;;  %v1164_v58 = vpop.f32.mrb[70].mxu0  ;;  %v1837_v59 = vpop.f32.mrb[70].mxu1 }
 0x1d8   : > { %2438 = vst [vmem:[%s3823_s20 + $0x440] sm:$0xff] %v1161_v47  ;;  %2440 = vst [vmem:[%s3823_s20 + $0x450] sm:$0xff] %v1834_v48  ;;  %v1165_v60 = vadd.f32 %v1164_v58, %v3808_v51  ;;  %v1838_v61 = vadd.f32 %v1837_v59, %v3810_v52  ;;  %v1166_v62 = vpop.f32.mrb[71].mxu0  ;;  %v1839_v63 = vpop.f32.mrb[71].mxu1 }
 0x1d9   : > { %2439 = vst [vmem:[%s3823_s20 + $0x448] sm:$0xff] %v1163_v56  ;;  %2441 = vst [vmem:[%s3823_s20 + $0x458] sm:$0xff] %v1836_v57  ;;  %v1167_v1 = vadd.f32 %v1166_v62, %v3812_v53  ;;  %v1840_v2 = vadd.f32 %v1839_v63, %v3814_v54 }
 0x1da   : > { %2442 = vst [vmem:[%s3823_s20 + $0x460] sm:$0xff] %v1165_v60  ;;  %2444 = vst [vmem:[%s3823_s20 + $0x470] sm:$0xff] %v1838_v61  ;;  %3056 = vmatmul.mubr.msk.bf16.gmra.mrb[176].mxu0 %vm750_vm1, %v3285_v55  ;;  %3121 = vmatmul.mubr.msk.bf16.gmra.mrb[176].mxu1 %vm750_vm1, %v3285_v55 }
 0x1db   : > { %2443 = vst [vmem:[%s3823_s20 + $0x468] sm:$0xff] %v1167_v1  ;;  %2445 = vst [vmem:[%s3823_s20 + $0x478] sm:$0xff] %v1840_v2  ;;  %1438 = vmatprep.mubr.bf16.mxu0 %v3470_v0  ;;  %2111 = vmatprep.mubr.bf16.mxu1 %v3470_v0  ;;  %v3289_v1 = vld [vmem:[%s3662_s30 + $0x180] sm:$0xff]  }
 0x1dd   : > { %v1170_v3 = vpop.f32.mrb[72].mxu0  ;;  %v1843_v4 = vpop.f32.mrb[72].mxu1 }
 0x1de   : > { %v1171_v5 = vadd.f32 %v1170_v3, %v3808_v51  ;;  %v1844_v6 = vadd.f32 %v1843_v4, %v3810_v52  ;;  %v1172_v7 = vpop.f32.mrb[73].mxu0  ;;  %v1845_v8 = vpop.f32.mrb[73].mxu1 }
 0x1df   : > { %v1173_v10 = vadd.f32 %v1172_v7, %v3812_v53  ;;  %v1846_v11 = vadd.f32 %v1845_v8, %v3814_v54  ;;  %v1174_v12 = vpop.f32.mrb[74].mxu0  ;;  %v1847_v13 = vpop.f32.mrb[74].mxu1 }
 0x1e0   : > { %2446 = vst [vmem:[%s3823_s20 + $0x480] sm:$0xff] %v1171_v5  ;;  %2448 = vst [vmem:[%s3823_s20 + $0x490] sm:$0xff] %v1844_v6  ;;  %v1175_v14 = vadd.f32 %v1174_v12, %v3808_v51  ;;  %v1848_v15 = vadd.f32 %v1847_v13, %v3810_v52  ;;  %v1176_v16 = vpop.f32.mrb[75].mxu0  ;;  %v1849_v17 = vpop.f32.mrb[75].mxu1 }
 0x1e1   : > { %2447 = vst [vmem:[%s3823_s20 + $0x488] sm:$0xff] %v1173_v10  ;;  %2449 = vst [vmem:[%s3823_s20 + $0x498] sm:$0xff] %v1846_v11  ;;  %v1177_v18 = vadd.f32 %v1176_v16, %v3812_v53  ;;  %v1850_v19 = vadd.f32 %v1849_v17, %v3814_v54 }
 0x1e2   : > { %2450 = vst [vmem:[%s3823_s20 + $0x4a0] sm:$0xff] %v1175_v14  ;;  %2452 = vst [vmem:[%s3823_s20 + $0x4b0] sm:$0xff] %v1848_v15  ;;  %3057 = vmatmul.mubr.msk.bf16.gmra.mrb[180].mxu0 %vm750_vm1, %v3286_v9  ;;  %3122 = vmatmul.mubr.msk.bf16.gmra.mrb[180].mxu1 %vm750_vm1, %v3286_v9 }
 0x1e3   : > { %2451 = vst [vmem:[%s3823_s20 + $0x4a8] sm:$0xff] %v1177_v18  ;;  %2453 = vst [vmem:[%s3823_s20 + $0x4b8] sm:$0xff] %v1850_v19  ;;  %1448 = vmatprep.mubr.bf16.mxu0 %v3470_v0  ;;  %2121 = vmatprep.mubr.bf16.mxu1 %v3470_v0  ;;  %v3290_v18 = vld [vmem:[%s3662_s30 + $0x188] sm:$0xff]  }
 0x1e5   : > { %v1180_v20 = vpop.f32.mrb[76].mxu0  ;;  %v1853_v21 = vpop.f32.mrb[76].mxu1 }
 0x1e6   : > { %v1181_v22 = vadd.f32 %v1180_v20, %v3808_v51  ;;  %v1854_v23 = vadd.f32 %v1853_v21, %v3810_v52  ;;  %v1182_v24 = vpop.f32.mrb[77].mxu0  ;;  %v1855_v25 = vpop.f32.mrb[77].mxu1 }
 0x1e7   : > { %v1183_v27 = vadd.f32 %v1182_v24, %v3812_v53  ;;  %v1856_v28 = vadd.f32 %v1855_v25, %v3814_v54  ;;  %v1184_v29 = vpop.f32.mrb[78].mxu0  ;;  %v1857_v30 = vpop.f32.mrb[78].mxu1 }
 0x1e8   : > { %2454 = vst [vmem:[%s3823_s20 + $0x4c0] sm:$0xff] %v1181_v22  ;;  %2456 = vst [vmem:[%s3823_s20 + $0x4d0] sm:$0xff] %v1854_v23  ;;  %v1185_v31 = vadd.f32 %v1184_v29, %v3808_v51  ;;  %v1858_v32 = vadd.f32 %v1857_v30, %v3810_v52  ;;  %v1186_v33 = vpop.f32.mrb[79].mxu0  ;;  %v1859_v34 = vpop.f32.mrb[79].mxu1 }
 0x1e9   : > { %2455 = vst [vmem:[%s3823_s20 + $0x4c8] sm:$0xff] %v1183_v27  ;;  %2457 = vst [vmem:[%s3823_s20 + $0x4d8] sm:$0xff] %v1856_v28  ;;  %v1187_v35 = vadd.f32 %v1186_v33, %v3812_v53  ;;  %v1860_v36 = vadd.f32 %v1859_v34, %v3814_v54 }
 0x1ea   : > { %2458 = vst [vmem:[%s3823_s20 + $0x4e0] sm:$0xff] %v1185_v31  ;;  %2460 = vst [vmem:[%s3823_s20 + $0x4f0] sm:$0xff] %v1858_v32  ;;  %3058 = vmatmul.mubr.msk.bf16.gmra.mrb[184].mxu0 %vm750_vm1, %v3287_v26  ;;  %3123 = vmatmul.mubr.msk.bf16.gmra.mrb[184].mxu1 %vm750_vm1, %v3287_v26 }
 0x1eb   : > { %2459 = vst [vmem:[%s3823_s20 + $0x4e8] sm:$0xff] %v1187_v35  ;;  %2461 = vst [vmem:[%s3823_s20 + $0x4f8] sm:$0xff] %v1860_v36  ;;  %1458 = vmatprep.mubr.bf16.mxu0 %v3470_v0  ;;  %2131 = vmatprep.mubr.bf16.mxu1 %v3470_v0  ;;  %v3291_v35 = vld [vmem:[%s3662_s30 + $0x190] sm:$0xff]  }
 0x1ed   : > { %v1190_v37 = vpop.f32.mrb[80].mxu0  ;;  %v1863_v38 = vpop.f32.mrb[80].mxu1 }
 0x1ee   : > { %v1191_v39 = vadd.f32 %v1190_v37, %v3808_v51  ;;  %v1864_v40 = vadd.f32 %v1863_v38, %v3810_v52  ;;  %v1192_v41 = vpop.f32.mrb[81].mxu0  ;;  %v1865_v42 = vpop.f32.mrb[81].mxu1 }
 0x1ef   : > { %v1193_v44 = vadd.f32 %v1192_v41, %v3812_v53  ;;  %v1866_v45 = vadd.f32 %v1865_v42, %v3814_v54  ;;  %v1194_v46 = vpop.f32.mrb[82].mxu0  ;;  %v1867_v47 = vpop.f32.mrb[82].mxu1 }
 0x1f0   : > { %2462 = vst [vmem:[%s3823_s20 + $0x500] sm:$0xff] %v1191_v39  ;;  %2464 = vst [vmem:[%s3823_s20 + $0x510] sm:$0xff] %v1864_v40  ;;  %v1195_v48 = vadd.f32 %v1194_v46, %v3808_v51  ;;  %v1868_v49 = vadd.f32 %v1867_v47, %v3810_v52  ;;  %v1196_v50 = vpop.f32.mrb[83].mxu0  ;;  %v1869_v55 = vpop.f32.mrb[83].mxu1 }
 0x1f1   : > { %2463 = vst [vmem:[%s3823_s20 + $0x508] sm:$0xff] %v1193_v44  ;;  %2465 = vst [vmem:[%s3823_s20 + $0x518] sm:$0xff] %v1866_v45  ;;  %v1197_v56 = vadd.f32 %v1196_v50, %v3812_v53  ;;  %v1870_v57 = vadd.f32 %v1869_v55, %v3814_v54 }
 0x1f2   : > { %2466 = vst [vmem:[%s3823_s20 + $0x520] sm:$0xff] %v1195_v48  ;;  %2468 = vst [vmem:[%s3823_s20 + $0x530] sm:$0xff] %v1868_v49  ;;  %3059 = vmatmul.mubr.msk.bf16.gmra.mrb[188].mxu0 %vm750_vm1, %v3288_v43  ;;  %3124 = vmatmul.mubr.msk.bf16.gmra.mrb[188].mxu1 %vm750_vm1, %v3288_v43 }
 0x1f3   : > { %2467 = vst [vmem:[%s3823_s20 + $0x528] sm:$0xff] %v1197_v56  ;;  %2469 = vst [vmem:[%s3823_s20 + $0x538] sm:$0xff] %v1870_v57  ;;  %1468 = vmatprep.mubr.bf16.mxu0 %v3470_v0  ;;  %2141 = vmatprep.mubr.bf16.mxu1 %v3470_v0  ;;  %v3292_v56 = vld [vmem:[%s3662_s30 + $0x198] sm:$0xff]  }
 0x1f5   : > { %v1200_v58 = vpop.f32.mrb[84].mxu0  ;;  %v1873_v59 = vpop.f32.mrb[84].mxu1 }
 0x1f6   : > { %v1201_v60 = vadd.f32 %v1200_v58, %v3808_v51  ;;  %v1874_v61 = vadd.f32 %v1873_v59, %v3810_v52  ;;  %v1202_v62 = vpop.f32.mrb[85].mxu0  ;;  %v1875_v63 = vpop.f32.mrb[85].mxu1 }
 0x1f7   : > { %v1203_v2 = vadd.f32 %v1202_v62, %v3812_v53  ;;  %v1876_v3 = vadd.f32 %v1875_v63, %v3814_v54  ;;  %v1204_v4 = vpop.f32.mrb[86].mxu0  ;;  %v1877_v5 = vpop.f32.mrb[86].mxu1 }
 0x1f8   : > { %2470 = vst [vmem:[%s3823_s20 + $0x540] sm:$0xff] %v1201_v60  ;;  %2472 = vst [vmem:[%s3823_s20 + $0x550] sm:$0xff] %v1874_v61  ;;  %v1205_v6 = vadd.f32 %v1204_v4, %v3808_v51  ;;  %v1878_v7 = vadd.f32 %v1877_v5, %v3810_v52  ;;  %v1206_v8 = vpop.f32.mrb[87].mxu0  ;;  %v1879_v9 = vpop.f32.mrb[87].mxu1 }
 0x1f9   : > { %2471 = vst [vmem:[%s3823_s20 + $0x548] sm:$0xff] %v1203_v2  ;;  %2473 = vst [vmem:[%s3823_s20 + $0x558] sm:$0xff] %v1876_v3  ;;  %v1207_v10 = vadd.f32 %v1206_v8, %v3812_v53  ;;  %v1880_v11 = vadd.f32 %v1879_v9, %v3814_v54 }
 0x1fa   : > { %2474 = vst [vmem:[%s3823_s20 + $0x560] sm:$0xff] %v1205_v6  ;;  %2476 = vst [vmem:[%s3823_s20 + $0x570] sm:$0xff] %v1878_v7  ;;  %3060 = vmatmul.mubr.msk.bf16.gmra.mrb[192].mxu0 %vm750_vm1, %v3289_v1  ;;  %3125 = vmatmul.mubr.msk.bf16.gmra.mrb[192].mxu1 %vm750_vm1, %v3289_v1 }
 0x1fb   : > { %2475 = vst [vmem:[%s3823_s20 + $0x568] sm:$0xff] %v1207_v10  ;;  %2477 = vst [vmem:[%s3823_s20 + $0x578] sm:$0xff] %v1880_v11  ;;  %1478 = vmatprep.mubr.bf16.mxu0 %v3470_v0  ;;  %2151 = vmatprep.mubr.bf16.mxu1 %v3470_v0  ;;  %v3293_v10 = vld [vmem:[%s3662_s30 + $0x1a0] sm:$0xff]  }
 0x1fd   : > { %v1210_v12 = vpop.f32.mrb[88].mxu0  ;;  %v1883_v13 = vpop.f32.mrb[88].mxu1 }
 0x1fe   : > { %v1211_v14 = vadd.f32 %v1210_v12, %v3808_v51  ;;  %v1884_v15 = vadd.f32 %v1883_v13, %v3810_v52  ;;  %v1212_v16 = vpop.f32.mrb[89].mxu0  ;;  %v1885_v17 = vpop.f32.mrb[89].mxu1 }
 0x1ff   : > { %v1213_v19 = vadd.f32 %v1212_v16, %v3812_v53  ;;  %v1886_v20 = vadd.f32 %v1885_v17, %v3814_v54  ;;  %v1214_v21 = vpop.f32.mrb[90].mxu0  ;;  %v1887_v22 = vpop.f32.mrb[90].mxu1 }
 0x200   : > { %2478 = vst [vmem:[%s3823_s20 + $0x580] sm:$0xff] %v1211_v14  ;;  %2480 = vst [vmem:[%s3823_s20 + $0x590] sm:$0xff] %v1884_v15  ;;  %v1215_v23 = vadd.f32 %v1214_v21, %v3808_v51  ;;  %v1888_v24 = vadd.f32 %v1887_v22, %v3810_v52  ;;  %v1216_v25 = vpop.f32.mrb[91].mxu0  ;;  %v1889_v26 = vpop.f32.mrb[91].mxu1 }
 0x201   : > { %2479 = vst [vmem:[%s3823_s20 + $0x588] sm:$0xff] %v1213_v19  ;;  %2481 = vst [vmem:[%s3823_s20 + $0x598] sm:$0xff] %v1886_v20  ;;  %v1217_v27 = vadd.f32 %v1216_v25, %v3812_v53  ;;  %v1890_v28 = vadd.f32 %v1889_v26, %v3814_v54 }
 0x202   : > { %2482 = vst [vmem:[%s3823_s20 + $0x5a0] sm:$0xff] %v1215_v23  ;;  %2484 = vst [vmem:[%s3823_s20 + $0x5b0] sm:$0xff] %v1888_v24  ;;  %3061 = vmatmul.mubr.msk.bf16.gmra.mrb[196].mxu0 %vm750_vm1, %v3290_v18  ;;  %3126 = vmatmul.mubr.msk.bf16.gmra.mrb[196].mxu1 %vm750_vm1, %v3290_v18 }
 0x203   : > { %2483 = vst [vmem:[%s3823_s20 + $0x5a8] sm:$0xff] %v1217_v27  ;;  %2485 = vst [vmem:[%s3823_s20 + $0x5b8] sm:$0xff] %v1890_v28  ;;  %1488 = vmatprep.mubr.bf16.mxu0 %v3470_v0  ;;  %2161 = vmatprep.mubr.bf16.mxu1 %v3470_v0  ;;  %v3294_v27 = vld [vmem:[%s3662_s30 + $0x1a8] sm:$0xff]  }
 0x205   : > { %v1220_v29 = vpop.f32.mrb[92].mxu0  ;;  %v1893_v30 = vpop.f32.mrb[92].mxu1 }
 0x206   : > { %v1221_v31 = vadd.f32 %v1220_v29, %v3808_v51  ;;  %v1894_v32 = vadd.f32 %v1893_v30, %v3810_v52  ;;  %v1222_v33 = vpop.f32.mrb[93].mxu0  ;;  %v1895_v34 = vpop.f32.mrb[93].mxu1 }
 0x207   : > { %v1223_v36 = vadd.f32 %v1222_v33, %v3812_v53  ;;  %v1896_v37 = vadd.f32 %v1895_v34, %v3814_v54  ;;  %v1224_v38 = vpop.f32.mrb[94].mxu0  ;;  %v1897_v39 = vpop.f32.mrb[94].mxu1 }
 0x208   : > { %2486 = vst [vmem:[%s3823_s20 + $0x5c0] sm:$0xff] %v1221_v31  ;;  %2488 = vst [vmem:[%s3823_s20 + $0x5d0] sm:$0xff] %v1894_v32  ;;  %v1225_v40 = vadd.f32 %v1224_v38, %v3808_v51  ;;  %v1898_v41 = vadd.f32 %v1897_v39, %v3810_v52  ;;  %v1226_v42 = vpop.f32.mrb[95].mxu0  ;;  %v1899_v43 = vpop.f32.mrb[95].mxu1 }
 0x209   : > { %2487 = vst [vmem:[%s3823_s20 + $0x5c8] sm:$0xff] %v1223_v36  ;;  %2489 = vst [vmem:[%s3823_s20 + $0x5d8] sm:$0xff] %v1896_v37  ;;  %v1227_v44 = vadd.f32 %v1226_v42, %v3812_v53  ;;  %v1900_v45 = vadd.f32 %v1899_v43, %v3814_v54 }
 0x20a   : > { %2490 = vst [vmem:[%s3823_s20 + $0x5e0] sm:$0xff] %v1225_v40  ;;  %2492 = vst [vmem:[%s3823_s20 + $0x5f0] sm:$0xff] %v1898_v41  ;;  %3062 = vmatmul.mubr.msk.bf16.gmra.mrb[200].mxu0 %vm750_vm1, %v3291_v35  ;;  %3127 = vmatmul.mubr.msk.bf16.gmra.mrb[200].mxu1 %vm750_vm1, %v3291_v35 }
 0x20b   : > { %2491 = vst [vmem:[%s3823_s20 + $0x5e8] sm:$0xff] %v1227_v44  ;;  %2493 = vst [vmem:[%s3823_s20 + $0x5f8] sm:$0xff] %v1900_v45  ;;  %1498 = vmatprep.mubr.bf16.mxu0 %v3470_v0  ;;  %2171 = vmatprep.mubr.bf16.mxu1 %v3470_v0  ;;  %v3295_v44 = vld [vmem:[%s3662_s30 + $0x1b0] sm:$0xff]  }
 0x20d   : > { %v1230_v46 = vpop.f32.mrb[96].mxu0  ;;  %v1903_v47 = vpop.f32.mrb[96].mxu1 }
 0x20e   : > { %v1231_v48 = vadd.f32 %v1230_v46, %v3808_v51  ;;  %v1904_v49 = vadd.f32 %v1903_v47, %v3810_v52  ;;  %v1232_v50 = vpop.f32.mrb[97].mxu0  ;;  %v1905_v55 = vpop.f32.mrb[97].mxu1 }
 0x20f   : > { %v1233_v57 = vadd.f32 %v1232_v50, %v3812_v53  ;;  %v1906_v58 = vadd.f32 %v1905_v55, %v3814_v54  ;;  %v1234_v59 = vpop.f32.mrb[98].mxu0  ;;  %v1907_v60 = vpop.f32.mrb[98].mxu1 }
 0x210   : > { %2494 = vst [vmem:[%s3823_s20 + $0x600] sm:$0xff] %v1231_v48  ;;  %2496 = vst [vmem:[%s3823_s20 + $0x610] sm:$0xff] %v1904_v49  ;;  %v1235_v61 = vadd.f32 %v1234_v59, %v3808_v51  ;;  %v1908_v62 = vadd.f32 %v1907_v60, %v3810_v52  ;;  %v1236_v63 = vpop.f32.mrb[99].mxu0  ;;  %v1909_v1 = vpop.f32.mrb[99].mxu1 }
 0x211   : > { %2495 = vst [vmem:[%s3823_s20 + $0x608] sm:$0xff] %v1233_v57  ;;  %2497 = vst [vmem:[%s3823_s20 + $0x618] sm:$0xff] %v1906_v58  ;;  %v1237_v2 = vadd.f32 %v1236_v63, %v3812_v53  ;;  %v1910_v3 = vadd.f32 %v1909_v1, %v3814_v54 }
 0x212   : > { %2498 = vst [vmem:[%s3823_s20 + $0x620] sm:$0xff] %v1235_v61  ;;  %2500 = vst [vmem:[%s3823_s20 + $0x630] sm:$0xff] %v1908_v62  ;;  %3063 = vmatmul.mubr.msk.bf16.gmra.mrb[204].mxu0 %vm750_vm1, %v3292_v56  ;;  %3128 = vmatmul.mubr.msk.bf16.gmra.mrb[204].mxu1 %vm750_vm1, %v3292_v56 }
 0x213   : > { %2499 = vst [vmem:[%s3823_s20 + $0x628] sm:$0xff] %v1237_v2  ;;  %2501 = vst [vmem:[%s3823_s20 + $0x638] sm:$0xff] %v1910_v3  ;;  %1508 = vmatprep.mubr.bf16.mxu0 %v3470_v0  ;;  %2181 = vmatprep.mubr.bf16.mxu1 %v3470_v0  ;;  %v3296_v2 = vld [vmem:[%s3662_s30 + $0x1b8] sm:$0xff]  }
 0x215   : > { %v1240_v4 = vpop.f32.mrb[100].mxu0  ;;  %v1913_v5 = vpop.f32.mrb[100].mxu1 }
 0x216   : > { %v1241_v6 = vadd.f32 %v1240_v4, %v3808_v51  ;;  %v1914_v7 = vadd.f32 %v1913_v5, %v3810_v52  ;;  %v1242_v8 = vpop.f32.mrb[101].mxu0  ;;  %v1915_v9 = vpop.f32.mrb[101].mxu1 }
 0x217   : > { %v1243_v11 = vadd.f32 %v1242_v8, %v3812_v53  ;;  %v1916_v12 = vadd.f32 %v1915_v9, %v3814_v54  ;;  %v1244_v13 = vpop.f32.mrb[102].mxu0  ;;  %v1917_v14 = vpop.f32.mrb[102].mxu1 }
 0x218   : > { %2502 = vst [vmem:[%s3823_s20 + $0x640] sm:$0xff] %v1241_v6  ;;  %2504 = vst [vmem:[%s3823_s20 + $0x650] sm:$0xff] %v1914_v7  ;;  %v1245_v15 = vadd.f32 %v1244_v13, %v3808_v51  ;;  %v1918_v16 = vadd.f32 %v1917_v14, %v3810_v52  ;;  %v1246_v17 = vpop.f32.mrb[103].mxu0  ;;  %v1919_v18 = vpop.f32.mrb[103].mxu1 }
 0x219   : > { %2503 = vst [vmem:[%s3823_s20 + $0x648] sm:$0xff] %v1243_v11  ;;  %2505 = vst [vmem:[%s3823_s20 + $0x658] sm:$0xff] %v1916_v12  ;;  %v1247_v19 = vadd.f32 %v1246_v17, %v3812_v53  ;;  %v1920_v20 = vadd.f32 %v1919_v18, %v3814_v54 }
 0x21a   : > { %2506 = vst [vmem:[%s3823_s20 + $0x660] sm:$0xff] %v1245_v15  ;;  %2508 = vst [vmem:[%s3823_s20 + $0x670] sm:$0xff] %v1918_v16  ;;  %3064 = vmatmul.mubr.msk.bf16.gmra.mrb[208].mxu0 %vm750_vm1, %v3293_v10  ;;  %3129 = vmatmul.mubr.msk.bf16.gmra.mrb[208].mxu1 %vm750_vm1, %v3293_v10 }
 0x21b   : > { %2507 = vst [vmem:[%s3823_s20 + $0x668] sm:$0xff] %v1247_v19  ;;  %2509 = vst [vmem:[%s3823_s20 + $0x678] sm:$0xff] %v1920_v20  ;;  %1518 = vmatprep.mubr.bf16.mxu0 %v3470_v0  ;;  %2191 = vmatprep.mubr.bf16.mxu1 %v3470_v0  ;;  %v3297_v19 = vld [vmem:[%s3662_s30 + $0x1c0] sm:$0xff]  }
 0x21d   : > { %v1250_v21 = vpop.f32.mrb[104].mxu0  ;;  %v1923_v22 = vpop.f32.mrb[104].mxu1 }
 0x21e   : > { %v1251_v23 = vadd.f32 %v1250_v21, %v3808_v51  ;;  %v1924_v24 = vadd.f32 %v1923_v22, %v3810_v52  ;;  %v1252_v25 = vpop.f32.mrb[105].mxu0  ;;  %v1925_v26 = vpop.f32.mrb[105].mxu1 }
 0x21f   : > { %v1253_v28 = vadd.f32 %v1252_v25, %v3812_v53  ;;  %v1926_v29 = vadd.f32 %v1925_v26, %v3814_v54  ;;  %v1254_v30 = vpop.f32.mrb[106].mxu0  ;;  %v1927_v31 = vpop.f32.mrb[106].mxu1 }
 0x220   : > { %2510 = vst [vmem:[%s3823_s20 + $0x680] sm:$0xff] %v1251_v23  ;;  %2512 = vst [vmem:[%s3823_s20 + $0x690] sm:$0xff] %v1924_v24  ;;  %v1255_v32 = vadd.f32 %v1254_v30, %v3808_v51  ;;  %v1928_v33 = vadd.f32 %v1927_v31, %v3810_v52  ;;  %v1256_v34 = vpop.f32.mrb[107].mxu0  ;;  %v1929_v35 = vpop.f32.mrb[107].mxu1 }
 0x221   : > { %2511 = vst [vmem:[%s3823_s20 + $0x688] sm:$0xff] %v1253_v28  ;;  %2513 = vst [vmem:[%s3823_s20 + $0x698] sm:$0xff] %v1926_v29  ;;  %v1257_v36 = vadd.f32 %v1256_v34, %v3812_v53  ;;  %v1930_v37 = vadd.f32 %v1929_v35, %v3814_v54 }
 0x222   : > { %2514 = vst [vmem:[%s3823_s20 + $0x6a0] sm:$0xff] %v1255_v32  ;;  %2516 = vst [vmem:[%s3823_s20 + $0x6b0] sm:$0xff] %v1928_v33  ;;  %3065 = vmatmul.mubr.msk.bf16.gmra.mrb[212].mxu0 %vm750_vm1, %v3294_v27  ;;  %3130 = vmatmul.mubr.msk.bf16.gmra.mrb[212].mxu1 %vm750_vm1, %v3294_v27 }
 0x223   : > { %2515 = vst [vmem:[%s3823_s20 + $0x6a8] sm:$0xff] %v1257_v36  ;;  %2517 = vst [vmem:[%s3823_s20 + $0x6b8] sm:$0xff] %v1930_v37  ;;  %1528 = vmatprep.mubr.bf16.mxu0 %v3470_v0  ;;  %2201 = vmatprep.mubr.bf16.mxu1 %v3470_v0  ;;  %v3298_v36 = vld [vmem:[%s3662_s30 + $0x1c8] sm:$0xff]  }
 0x225   : > { %v1260_v38 = vpop.f32.mrb[108].mxu0  ;;  %v1933_v39 = vpop.f32.mrb[108].mxu1 }
 0x226   : > { %v1261_v40 = vadd.f32 %v1260_v38, %v3808_v51  ;;  %v1934_v41 = vadd.f32 %v1933_v39, %v3810_v52  ;;  %v1262_v42 = vpop.f32.mrb[109].mxu0  ;;  %v1935_v43 = vpop.f32.mrb[109].mxu1 }
 0x227   : > { %v1263_v45 = vadd.f32 %v1262_v42, %v3812_v53  ;;  %v1936_v46 = vadd.f32 %v1935_v43, %v3814_v54  ;;  %v1264_v47 = vpop.f32.mrb[110].mxu0  ;;  %v1937_v48 = vpop.f32.mrb[110].mxu1 }
 0x228   : > { %2518 = vst [vmem:[%s3823_s20 + $0x6c0] sm:$0xff] %v1261_v40  ;;  %2520 = vst [vmem:[%s3823_s20 + $0x6d0] sm:$0xff] %v1934_v41  ;;  %v1265_v49 = vadd.f32 %v1264_v47, %v3808_v51  ;;  %v1938_v50 = vadd.f32 %v1937_v48, %v3810_v52  ;;  %v1266_v55 = vpop.f32.mrb[111].mxu0  ;;  %v1939_v56 = vpop.f32.mrb[111].mxu1 }
 0x229   : > { %2519 = vst [vmem:[%s3823_s20 + $0x6c8] sm:$0xff] %v1263_v45  ;;  %2521 = vst [vmem:[%s3823_s20 + $0x6d8] sm:$0xff] %v1936_v46  ;;  %v1267_v57 = vadd.f32 %v1266_v55, %v3812_v53  ;;  %v1940_v58 = vadd.f32 %v1939_v56, %v3814_v54 }
 0x22a   : > { %2522 = vst [vmem:[%s3823_s20 + $0x6e0] sm:$0xff] %v1265_v49  ;;  %2524 = vst [vmem:[%s3823_s20 + $0x6f0] sm:$0xff] %v1938_v50  ;;  %3066 = vmatmul.mubr.msk.bf16.gmra.mrb[216].mxu0 %vm750_vm1, %v3295_v44  ;;  %3131 = vmatmul.mubr.msk.bf16.gmra.mrb[216].mxu1 %vm750_vm1, %v3295_v44 }
 0x22b   : > { %2523 = vst [vmem:[%s3823_s20 + $0x6e8] sm:$0xff] %v1267_v57  ;;  %2525 = vst [vmem:[%s3823_s20 + $0x6f8] sm:$0xff] %v1940_v58  ;;  %1538 = vmatprep.mubr.bf16.mxu0 %v3470_v0  ;;  %2211 = vmatprep.mubr.bf16.mxu1 %v3470_v0  ;;  %v3299_v57 = vld [vmem:[%s3662_s30 + $0x1d0] sm:$0xff]  }
 0x22d   : > { %v1270_v59 = vpop.f32.mrb[112].mxu0  ;;  %v1943_v60 = vpop.f32.mrb[112].mxu1 }
 0x22e   : > { %v1271_v61 = vadd.f32 %v1270_v59, %v3808_v51  ;;  %v1944_v62 = vadd.f32 %v1943_v60, %v3810_v52  ;;  %v1272_v63 = vpop.f32.mrb[113].mxu0  ;;  %v1945_v1 = vpop.f32.mrb[113].mxu1 }
 0x22f   : > { %v1273_v3 = vadd.f32 %v1272_v63, %v3812_v53  ;;  %v1946_v4 = vadd.f32 %v1945_v1, %v3814_v54  ;;  %v1274_v5 = vpop.f32.mrb[114].mxu0  ;;  %v1947_v6 = vpop.f32.mrb[114].mxu1 }
 0x230   : > { %2526 = vst [vmem:[%s3823_s20 + $0x700] sm:$0xff] %v1271_v61  ;;  %2528 = vst [vmem:[%s3823_s20 + $0x710] sm:$0xff] %v1944_v62  ;;  %v1275_v7 = vadd.f32 %v1274_v5, %v3808_v51  ;;  %v1948_v8 = vadd.f32 %v1947_v6, %v3810_v52  ;;  %v1276_v9 = vpop.f32.mrb[115].mxu0  ;;  %v1949_v10 = vpop.f32.mrb[115].mxu1 }
 0x231   : > { %2527 = vst [vmem:[%s3823_s20 + $0x708] sm:$0xff] %v1273_v3  ;;  %2529 = vst [vmem:[%s3823_s20 + $0x718] sm:$0xff] %v1946_v4  ;;  %v1277_v11 = vadd.f32 %v1276_v9, %v3812_v53  ;;  %v1950_v12 = vadd.f32 %v1949_v10, %v3814_v54 }
 0x232   : > { %2530 = vst [vmem:[%s3823_s20 + $0x720] sm:$0xff] %v1275_v7  ;;  %2532 = vst [vmem:[%s3823_s20 + $0x730] sm:$0xff] %v1948_v8  ;;  %3067 = vmatmul.mubr.msk.bf16.gmra.mrb[220].mxu0 %vm750_vm1, %v3296_v2  ;;  %3132 = vmatmul.mubr.msk.bf16.gmra.mrb[220].mxu1 %vm750_vm1, %v3296_v2 }
 0x233   : > { %2531 = vst [vmem:[%s3823_s20 + $0x728] sm:$0xff] %v1277_v11  ;;  %2533 = vst [vmem:[%s3823_s20 + $0x738] sm:$0xff] %v1950_v12  ;;  %1548 = vmatprep.mubr.bf16.mxu0 %v3470_v0  ;;  %2221 = vmatprep.mubr.bf16.mxu1 %v3470_v0  ;;  %v3300_v11 = vld [vmem:[%s3662_s30 + $0x1d8] sm:$0xff]  }
 0x235   : > { %v1280_v13 = vpop.f32.mrb[116].mxu0  ;;  %v1953_v14 = vpop.f32.mrb[116].mxu1 }
 0x236   : > { %v1281_v15 = vadd.f32 %v1280_v13, %v3808_v51  ;;  %v1954_v16 = vadd.f32 %v1953_v14, %v3810_v52  ;;  %v1282_v17 = vpop.f32.mrb[117].mxu0  ;;  %v1955_v18 = vpop.f32.mrb[117].mxu1 }
 0x237   : > { %v1283_v20 = vadd.f32 %v1282_v17, %v3812_v53  ;;  %v1956_v21 = vadd.f32 %v1955_v18, %v3814_v54  ;;  %v1284_v22 = vpop.f32.mrb[118].mxu0  ;;  %v1957_v23 = vpop.f32.mrb[118].mxu1 }
 0x238   : > { %2534 = vst [vmem:[%s3823_s20 + $0x740] sm:$0xff] %v1281_v15  ;;  %2536 = vst [vmem:[%s3823_s20 + $0x750] sm:$0xff] %v1954_v16  ;;  %v1285_v24 = vadd.f32 %v1284_v22, %v3808_v51  ;;  %v1958_v25 = vadd.f32 %v1957_v23, %v3810_v52  ;;  %v1286_v26 = vpop.f32.mrb[119].mxu0  ;;  %v1959_v27 = vpop.f32.mrb[119].mxu1 }
 0x239   : > { %2535 = vst [vmem:[%s3823_s20 + $0x748] sm:$0xff] %v1283_v20  ;;  %2537 = vst [vmem:[%s3823_s20 + $0x758] sm:$0xff] %v1956_v21  ;;  %v1287_v28 = vadd.f32 %v1286_v26, %v3812_v53  ;;  %v1960_v29 = vadd.f32 %v1959_v27, %v3814_v54 }
 0x23a   : > { %2538 = vst [vmem:[%s3823_s20 + $0x760] sm:$0xff] %v1285_v24  ;;  %2540 = vst [vmem:[%s3823_s20 + $0x770] sm:$0xff] %v1958_v25  ;;  %3068 = vmatmul.mubr.msk.bf16.gmra.mrb[224].mxu0 %vm750_vm1, %v3297_v19  ;;  %3133 = vmatmul.mubr.msk.bf16.gmra.mrb[224].mxu1 %vm750_vm1, %v3297_v19 }
 0x23b   : > { %2539 = vst [vmem:[%s3823_s20 + $0x768] sm:$0xff] %v1287_v28  ;;  %2541 = vst [vmem:[%s3823_s20 + $0x778] sm:$0xff] %v1960_v29  ;;  %1558 = vmatprep.mubr.bf16.mxu0 %v3470_v0  ;;  %2231 = vmatprep.mubr.bf16.mxu1 %v3470_v0  ;;  %v3301_v28 = vld [vmem:[%s3662_s30 + $0x1e0] sm:$0xff]  }
 0x23d   : > { %v1290_v30 = vpop.f32.mrb[120].mxu0  ;;  %v1963_v31 = vpop.f32.mrb[120].mxu1 }
 0x23e   : > { %v1291_v32 = vadd.f32 %v1290_v30, %v3808_v51  ;;  %v1964_v33 = vadd.f32 %v1963_v31, %v3810_v52  ;;  %v1292_v34 = vpop.f32.mrb[121].mxu0  ;;  %v1965_v35 = vpop.f32.mrb[121].mxu1 }
 0x23f   : > { %v1293_v37 = vadd.f32 %v1292_v34, %v3812_v53  ;;  %v1966_v38 = vadd.f32 %v1965_v35, %v3814_v54  ;;  %v1294_v39 = vpop.f32.mrb[122].mxu0  ;;  %v1967_v40 = vpop.f32.mrb[122].mxu1 }
 0x240   : > { %2542 = vst [vmem:[%s3823_s20 + $0x780] sm:$0xff] %v1291_v32  ;;  %2544 = vst [vmem:[%s3823_s20 + $0x790] sm:$0xff] %v1964_v33  ;;  %v1295_v41 = vadd.f32 %v1294_v39, %v3808_v51  ;;  %v1968_v42 = vadd.f32 %v1967_v40, %v3810_v52  ;;  %v1296_v43 = vpop.f32.mrb[123].mxu0  ;;  %v1969_v44 = vpop.f32.mrb[123].mxu1 }
 0x241   : > { %2543 = vst [vmem:[%s3823_s20 + $0x788] sm:$0xff] %v1293_v37  ;;  %2545 = vst [vmem:[%s3823_s20 + $0x798] sm:$0xff] %v1966_v38  ;;  %v1297_v45 = vadd.f32 %v1296_v43, %v3812_v53  ;;  %v1970_v46 = vadd.f32 %v1969_v44, %v3814_v54 }
 0x242   : > { %2546 = vst [vmem:[%s3823_s20 + $0x7a0] sm:$0xff] %v1295_v41  ;;  %2548 = vst [vmem:[%s3823_s20 + $0x7b0] sm:$0xff] %v1968_v42  ;;  %3069 = vmatmul.mubr.msk.bf16.gmra.mrb[228].mxu0 %vm750_vm1, %v3298_v36  ;;  %3134 = vmatmul.mubr.msk.bf16.gmra.mrb[228].mxu1 %vm750_vm1, %v3298_v36 }
 0x243   : > { %2547 = vst [vmem:[%s3823_s20 + $0x7a8] sm:$0xff] %v1297_v45  ;;  %2549 = vst [vmem:[%s3823_s20 + $0x7b8] sm:$0xff] %v1970_v46  ;;  %1568 = vmatprep.mubr.bf16.mxu0 %v3470_v0  ;;  %2241 = vmatprep.mubr.bf16.mxu1 %v3470_v0  ;;  %v3302_v45 = vld [vmem:[%s3662_s30 + $0x1e8] sm:$0xff]  }
 0x245   : > { %v1300_v47 = vpop.f32.mrb[124].mxu0  ;;  %v1973_v48 = vpop.f32.mrb[124].mxu1 }
 0x246   : > { %v1301_v49 = vadd.f32 %v1300_v47, %v3808_v51  ;;  %v1974_v50 = vadd.f32 %v1973_v48, %v3810_v52  ;;  %v1302_v55 = vpop.f32.mrb[125].mxu0  ;;  %v1975_v56 = vpop.f32.mrb[125].mxu1 }
 0x247   : > { %v1303_v58 = vadd.f32 %v1302_v55, %v3812_v53  ;;  %v1976_v59 = vadd.f32 %v1975_v56, %v3814_v54  ;;  %v1304_v60 = vpop.f32.mrb[126].mxu0  ;;  %v1977_v61 = vpop.f32.mrb[126].mxu1 }
 0x248   : > { %2550 = vst [vmem:[%s3823_s20 + $0x7c0] sm:$0xff] %v1301_v49  ;;  %2552 = vst [vmem:[%s3823_s20 + $0x7d0] sm:$0xff] %v1974_v50  ;;  %v1305_v62 = vadd.f32 %v1304_v60, %v3808_v51  ;;  %v1978_v63 = vadd.f32 %v1977_v61, %v3810_v52  ;;  %v1306_v1 = vpop.f32.mrb[127].mxu0  ;;  %v1979_v2 = vpop.f32.mrb[127].mxu1 }
 0x249   : > { %2551 = vst [vmem:[%s3823_s20 + $0x7c8] sm:$0xff] %v1303_v58  ;;  %2553 = vst [vmem:[%s3823_s20 + $0x7d8] sm:$0xff] %v1976_v59  ;;  %v1307_v3 = vadd.f32 %v1306_v1, %v3812_v53  ;;  %v1980_v4 = vadd.f32 %v1979_v2, %v3814_v54 }
 0x24a   : > { %2554 = vst [vmem:[%s3823_s20 + $0x7e0] sm:$0xff] %v1305_v62  ;;  %2556 = vst [vmem:[%s3823_s20 + $0x7f0] sm:$0xff] %v1978_v63  ;;  %3070 = vmatmul.mubr.msk.bf16.gmra.mrb[232].mxu0 %vm750_vm1, %v3299_v57  ;;  %3135 = vmatmul.mubr.msk.bf16.gmra.mrb[232].mxu1 %vm750_vm1, %v3299_v57 }
 0x24b   : > { %2555 = vst [vmem:[%s3823_s20 + $0x7e8] sm:$0xff] %v1307_v3  ;;  %2557 = vst [vmem:[%s3823_s20 + $0x7f8] sm:$0xff] %v1980_v4  ;;  %1578 = vmatprep.mubr.bf16.mxu0 %v3470_v0  ;;  %2251 = vmatprep.mubr.bf16.mxu1 %v3470_v0  ;;  %v3303_v3 = vld [vmem:[%s3662_s30 + $0x1f0] sm:$0xff]  }
 0x24d   : > { %v1310_v5 = vpop.f32.mrb[128].mxu0  ;;  %v1983_v6 = vpop.f32.mrb[128].mxu1 }
 0x24e   : > { %v1311_v7 = vadd.f32 %v1310_v5, %v3808_v51  ;;  %v1984_v8 = vadd.f32 %v1983_v6, %v3810_v52  ;;  %v1312_v9 = vpop.f32.mrb[129].mxu0  ;;  %v1985_v10 = vpop.f32.mrb[129].mxu1 }
 0x24f   : > { %v1313_v12 = vadd.f32 %v1312_v9, %v3812_v53  ;;  %v1986_v13 = vadd.f32 %v1985_v10, %v3814_v54  ;;  %v1314_v14 = vpop.f32.mrb[130].mxu0  ;;  %v1987_v15 = vpop.f32.mrb[130].mxu1 }
 0x250   : > { %2558 = vst [vmem:[%s3823_s20 + $0x800] sm:$0xff] %v1311_v7  ;;  %2560 = vst [vmem:[%s3823_s20 + $0x810] sm:$0xff] %v1984_v8  ;;  %v1315_v16 = vadd.f32 %v1314_v14, %v3808_v51  ;;  %v1988_v17 = vadd.f32 %v1987_v15, %v3810_v52  ;;  %v1316_v18 = vpop.f32.mrb[131].mxu0  ;;  %v1989_v19 = vpop.f32.mrb[131].mxu1 }
 0x251   : > { %2559 = vst [vmem:[%s3823_s20 + $0x808] sm:$0xff] %v1313_v12  ;;  %2561 = vst [vmem:[%s3823_s20 + $0x818] sm:$0xff] %v1986_v13  ;;  %v1317_v20 = vadd.f32 %v1316_v18, %v3812_v53  ;;  %v1990_v21 = vadd.f32 %v1989_v19, %v3814_v54 }
 0x252   : > { %2562 = vst [vmem:[%s3823_s20 + $0x820] sm:$0xff] %v1315_v16  ;;  %2564 = vst [vmem:[%s3823_s20 + $0x830] sm:$0xff] %v1988_v17  ;;  %3071 = vmatmul.mubr.msk.bf16.gmra.mrb[236].mxu0 %vm750_vm1, %v3300_v11  ;;  %3136 = vmatmul.mubr.msk.bf16.gmra.mrb[236].mxu1 %vm750_vm1, %v3300_v11 }
 0x253   : > { %2563 = vst [vmem:[%s3823_s20 + $0x828] sm:$0xff] %v1317_v20  ;;  %2565 = vst [vmem:[%s3823_s20 + $0x838] sm:$0xff] %v1990_v21  ;;  %1588 = vmatprep.mubr.bf16.mxu0 %v3470_v0  ;;  %2261 = vmatprep.mubr.bf16.mxu1 %v3470_v0  ;;  %v3304_v20 = vld [vmem:[%s3662_s30 + $0x1f8] sm:$0xff]  }
 0x255   : > { %v1320_v22 = vpop.f32.mrb[132].mxu0  ;;  %v1993_v23 = vpop.f32.mrb[132].mxu1 }
 0x256   : > { %v1321_v24 = vadd.f32 %v1320_v22, %v3808_v51  ;;  %v1994_v25 = vadd.f32 %v1993_v23, %v3810_v52  ;;  %v1322_v26 = vpop.f32.mrb[133].mxu0  ;;  %v1995_v27 = vpop.f32.mrb[133].mxu1 }
 0x257   : > { %v1323_v29 = vadd.f32 %v1322_v26, %v3812_v53  ;;  %v1996_v30 = vadd.f32 %v1995_v27, %v3814_v54  ;;  %v1324_v31 = vpop.f32.mrb[134].mxu0  ;;  %v1997_v32 = vpop.f32.mrb[134].mxu1 }
 0x258   : > { %2566 = vst [vmem:[%s3823_s20 + $0x840] sm:$0xff] %v1321_v24  ;;  %2568 = vst [vmem:[%s3823_s20 + $0x850] sm:$0xff] %v1994_v25  ;;  %v1325_v33 = vadd.f32 %v1324_v31, %v3808_v51  ;;  %v1998_v34 = vadd.f32 %v1997_v32, %v3810_v52  ;;  %v1326_v35 = vpop.f32.mrb[135].mxu0  ;;  %v1999_v36 = vpop.f32.mrb[135].mxu1 }
 0x259   : > { %2567 = vst [vmem:[%s3823_s20 + $0x848] sm:$0xff] %v1323_v29  ;;  %2569 = vst [vmem:[%s3823_s20 + $0x858] sm:$0xff] %v1996_v30  ;;  %v1327_v37 = vadd.f32 %v1326_v35, %v3812_v53  ;;  %v2000_v38 = vadd.f32 %v1999_v36, %v3814_v54 }
 0x25a   : > { %2570 = vst [vmem:[%s3823_s20 + $0x860] sm:$0xff] %v1325_v33  ;;  %2572 = vst [vmem:[%s3823_s20 + $0x870] sm:$0xff] %v1998_v34  ;;  %3072 = vmatmul.mubr.msk.bf16.gmra.mrb[240].mxu0 %vm750_vm1, %v3301_v28  ;;  %3137 = vmatmul.mubr.msk.bf16.gmra.mrb[240].mxu1 %vm750_vm1, %v3301_v28 }
 0x25b   : > { %2571 = vst [vmem:[%s3823_s20 + $0x868] sm:$0xff] %v1327_v37  ;;  %2573 = vst [vmem:[%s3823_s20 + $0x878] sm:$0xff] %v2000_v38  ;;  %1598 = vmatprep.mubr.bf16.mxu0 %v3470_v0  ;;  %2271 = vmatprep.mubr.bf16.mxu1 %v3470_v0 }
 0x25d   : > { %v1330_v39 = vpop.f32.mrb[136].mxu0  ;;  %v2003_v40 = vpop.f32.mrb[136].mxu1 }
 0x25e   : > { %v1331_v41 = vadd.f32 %v1330_v39, %v3808_v51  ;;  %v2004_v42 = vadd.f32 %v2003_v40, %v3810_v52  ;;  %v1332_v43 = vpop.f32.mrb[137].mxu0  ;;  %v2005_v44 = vpop.f32.mrb[137].mxu1 }
 0x25f   : > { %v1333_v46 = vadd.f32 %v1332_v43, %v3812_v53  ;;  %v2006_v47 = vadd.f32 %v2005_v44, %v3814_v54  ;;  %v1334_v48 = vpop.f32.mrb[138].mxu0  ;;  %v2007_v49 = vpop.f32.mrb[138].mxu1 }
 0x260   : > { %2574 = vst [vmem:[%s3823_s20 + $0x880] sm:$0xff] %v1331_v41  ;;  %2576 = vst [vmem:[%s3823_s20 + $0x890] sm:$0xff] %v2004_v42  ;;  %v1335_v50 = vadd.f32 %v1334_v48, %v3808_v51  ;;  %v2008_v55 = vadd.f32 %v2007_v49, %v3810_v52  ;;  %v1336_v56 = vpop.f32.mrb[139].mxu0  ;;  %v2009_v57 = vpop.f32.mrb[139].mxu1 }
 0x261   : > { %2575 = vst [vmem:[%s3823_s20 + $0x888] sm:$0xff] %v1333_v46  ;;  %2577 = vst [vmem:[%s3823_s20 + $0x898] sm:$0xff] %v2006_v47  ;;  %v1337_v58 = vadd.f32 %v1336_v56, %v3812_v53  ;;  %v2010_v59 = vadd.f32 %v2009_v57, %v3814_v54 }
 0x262   : > { %2578 = vst [vmem:[%s3823_s20 + $0x8a0] sm:$0xff] %v1335_v50  ;;  %2580 = vst [vmem:[%s3823_s20 + $0x8b0] sm:$0xff] %v2008_v55  ;;  %3073 = vmatmul.mubr.msk.bf16.gmra.mrb[244].mxu0 %vm750_vm1, %v3302_v45  ;;  %3138 = vmatmul.mubr.msk.bf16.gmra.mrb[244].mxu1 %vm750_vm1, %v3302_v45 }
 0x263   : > { %2579 = vst [vmem:[%s3823_s20 + $0x8a8] sm:$0xff] %v1337_v58  ;;  %2581 = vst [vmem:[%s3823_s20 + $0x8b8] sm:$0xff] %v2010_v59  ;;  %1608 = vmatprep.mubr.bf16.mxu0 %v3470_v0  ;;  %2281 = vmatprep.mubr.bf16.mxu1 %v3470_v0 }
 0x265   : > { %v1340_v60 = vpop.f32.mrb[140].mxu0  ;;  %v2013_v61 = vpop.f32.mrb[140].mxu1 }
 0x266   : > { %v1341_v62 = vadd.f32 %v1340_v60, %v3808_v51  ;;  %v2014_v63 = vadd.f32 %v2013_v61, %v3810_v52  ;;  %v1342_v1 = vpop.f32.mrb[141].mxu0  ;;  %v2015_v2 = vpop.f32.mrb[141].mxu1 }
 0x267   : > { %v1343_v4 = vadd.f32 %v1342_v1, %v3812_v53  ;;  %v2016_v5 = vadd.f32 %v2015_v2, %v3814_v54  ;;  %v1344_v6 = vpop.f32.mrb[142].mxu0  ;;  %v2017_v7 = vpop.f32.mrb[142].mxu1 }
 0x268   : > { %2582 = vst [vmem:[%s3823_s20 + $0x8c0] sm:$0xff] %v1341_v62  ;;  %2584 = vst [vmem:[%s3823_s20 + $0x8d0] sm:$0xff] %v2014_v63  ;;  %v1345_v8 = vadd.f32 %v1344_v6, %v3808_v51  ;;  %v2018_v9 = vadd.f32 %v2017_v7, %v3810_v52  ;;  %v1346_v10 = vpop.f32.mrb[143].mxu0  ;;  %v2019_v11 = vpop.f32.mrb[143].mxu1 }
 0x269   : > { %2583 = vst [vmem:[%s3823_s20 + $0x8c8] sm:$0xff] %v1343_v4  ;;  %2585 = vst [vmem:[%s3823_s20 + $0x8d8] sm:$0xff] %v2016_v5  ;;  %v1347_v12 = vadd.f32 %v1346_v10, %v3812_v53  ;;  %v2020_v13 = vadd.f32 %v2019_v11, %v3814_v54 }
 0x26a   : > { %2586 = vst [vmem:[%s3823_s20 + $0x8e0] sm:$0xff] %v1345_v8  ;;  %2588 = vst [vmem:[%s3823_s20 + $0x8f0] sm:$0xff] %v2018_v9  ;;  %3074 = vmatmul.mubr.msk.bf16.gmra.mrb[248].mxu0 %vm750_vm1, %v3303_v3  ;;  %3139 = vmatmul.mubr.msk.bf16.gmra.mrb[248].mxu1 %vm750_vm1, %v3303_v3 }
 0x26b   : > { %2587 = vst [vmem:[%s3823_s20 + $0x8e8] sm:$0xff] %v1347_v12  ;;  %2589 = vst [vmem:[%s3823_s20 + $0x8f8] sm:$0xff] %v2020_v13  ;;  %1618 = vmatprep.mubr.bf16.mxu0 %v3470_v0  ;;  %2291 = vmatprep.mubr.bf16.mxu1 %v3470_v0 }
 0x26d   : > { %v1350_v14 = vpop.f32.mrb[144].mxu0  ;;  %v2023_v15 = vpop.f32.mrb[144].mxu1 }
 0x26e   : > { %v1351_v16 = vadd.f32 %v1350_v14, %v3808_v51  ;;  %v2024_v17 = vadd.f32 %v2023_v15, %v3810_v52  ;;  %v1352_v18 = vpop.f32.mrb[145].mxu0  ;;  %v2025_v19 = vpop.f32.mrb[145].mxu1 }
 0x26f   : > { %v1353_v21 = vadd.f32 %v1352_v18, %v3812_v53  ;;  %v2026_v22 = vadd.f32 %v2025_v19, %v3814_v54  ;;  %v1354_v23 = vpop.f32.mrb[146].mxu0  ;;  %v2027_v0 = vpop.f32.mrb[146].mxu1 }
 0x270   : > { %2590 = vst [vmem:[%s3823_s20 + $0x900] sm:$0xff] %v1351_v16  ;;  %2592 = vst [vmem:[%s3823_s20 + $0x910] sm:$0xff] %v2024_v17  ;;  %v1355_v24 = vadd.f32 %v1354_v23, %v3808_v51  ;;  %v2028_v25 = vadd.f32 %v2027_v0, %v3810_v52  ;;  %v1356_v26 = vpop.f32.mrb[147].mxu0  ;;  %v2029_v27 = vpop.f32.mrb[147].mxu1 }
 0x271   : > { %2591 = vst [vmem:[%s3823_s20 + $0x908] sm:$0xff] %v1353_v21  ;;  %2593 = vst [vmem:[%s3823_s20 + $0x918] sm:$0xff] %v2026_v22  ;;  %v1357_v28 = vadd.f32 %v1356_v26, %v3812_v53  ;;  %v2030_v29 = vadd.f32 %v2029_v27, %v3814_v54 }
 0x272   : > { %2594 = vst [vmem:[%s3823_s20 + $0x920] sm:$0xff] %v1355_v24  ;;  %2596 = vst [vmem:[%s3823_s20 + $0x930] sm:$0xff] %v2028_v25  ;;  %3075 = vmatmul.mubr.msk.bf16.gmra.mrb[252].mxu0 %vm750_vm1, %v3304_v20  ;;  %3140 = vmatmul.mubr.msk.bf16.gmra.mrb[252].mxu1 %vm750_vm1, %v3304_v20 }
 0x273   : > { %2595 = vst [vmem:[%s3823_s20 + $0x928] sm:$0xff] %v1357_v28  ;;  %2597 = vst [vmem:[%s3823_s20 + $0x938] sm:$0xff] %v2030_v29 }
 0x275   : > { %v1360_v30 = vpop.f32.mrb[148].mxu0  ;;  %v2033_v31 = vpop.f32.mrb[148].mxu1 }
 0x276   : > { %v1361_v32 = vadd.f32 %v1360_v30, %v3808_v51  ;;  %v2034_v33 = vadd.f32 %v2033_v31, %v3810_v52  ;;  %v1362_v34 = vpop.f32.mrb[149].mxu0  ;;  %v2035_v35 = vpop.f32.mrb[149].mxu1 }
 0x277   : > { %v1363_v36 = vadd.f32 %v1362_v34, %v3812_v53  ;;  %v2036_v37 = vadd.f32 %v2035_v35, %v3814_v54  ;;  %v1364_v38 = vpop.f32.mrb[150].mxu0  ;;  %v2037_v39 = vpop.f32.mrb[150].mxu1 }
 0x278   : > { %2598 = vst [vmem:[%s3823_s20 + $0x940] sm:$0xff] %v1361_v32  ;;  %2600 = vst [vmem:[%s3823_s20 + $0x950] sm:$0xff] %v2034_v33  ;;  %v1365_v40 = vadd.f32 %v1364_v38, %v3808_v51  ;;  %v2038_v41 = vadd.f32 %v2037_v39, %v3810_v52  ;;  %v1366_v42 = vpop.f32.mrb[151].mxu0  ;;  %v2039_v43 = vpop.f32.mrb[151].mxu1 }
 0x279   : > { %2599 = vst [vmem:[%s3823_s20 + $0x948] sm:$0xff] %v1363_v36  ;;  %2601 = vst [vmem:[%s3823_s20 + $0x958] sm:$0xff] %v2036_v37  ;;  %v1367_v44 = vadd.f32 %v1366_v42, %v3812_v53  ;;  %v2040_v45 = vadd.f32 %v2039_v43, %v3814_v54 }
 0x27a   : > { %2602 = vst [vmem:[%s3823_s20 + $0x960] sm:$0xff] %v1365_v40  ;;  %2604 = vst [vmem:[%s3823_s20 + $0x970] sm:$0xff] %v2038_v41 }
 0x27b   : > { %2603 = vst [vmem:[%s3823_s20 + $0x968] sm:$0xff] %v1367_v44  ;;  %2605 = vst [vmem:[%s3823_s20 + $0x978] sm:$0xff] %v2040_v45 }
 0x27d   : > { %v1370_v46 = vpop.f32.mrb[152].mxu0  ;;  %v2043_v47 = vpop.f32.mrb[152].mxu1 }
 0x27e   : > { %v1371_v48 = vadd.f32 %v1370_v46, %v3808_v51  ;;  %v2044_v49 = vadd.f32 %v2043_v47, %v3810_v52  ;;  %v1372_v50 = vpop.f32.mrb[153].mxu0  ;;  %v2045_v55 = vpop.f32.mrb[153].mxu1 }
 0x27f   : > { %v1373_v56 = vadd.f32 %v1372_v50, %v3812_v53  ;;  %v2046_v57 = vadd.f32 %v2045_v55, %v3814_v54  ;;  %v1374_v58 = vpop.f32.mrb[154].mxu0  ;;  %v2047_v59 = vpop.f32.mrb[154].mxu1 }
 0x280   : > { %2606 = vst [vmem:[%s3823_s20 + $0x980] sm:$0xff] %v1371_v48  ;;  %2608 = vst [vmem:[%s3823_s20 + $0x990] sm:$0xff] %v2044_v49  ;;  %v1375_v60 = vadd.f32 %v1374_v58, %v3808_v51  ;;  %v2048_v61 = vadd.f32 %v2047_v59, %v3810_v52  ;;  %v1376_v62 = vpop.f32.mrb[155].mxu0  ;;  %v2049_v63 = vpop.f32.mrb[155].mxu1 }
 0x281   : > { %2607 = vst [vmem:[%s3823_s20 + $0x988] sm:$0xff] %v1373_v56  ;;  %2609 = vst [vmem:[%s3823_s20 + $0x998] sm:$0xff] %v2046_v57  ;;  %v1377_v1 = vadd.f32 %v1376_v62, %v3812_v53  ;;  %v2050_v2 = vadd.f32 %v2049_v63, %v3814_v54 }
 0x282   : > { %2610 = vst [vmem:[%s3823_s20 + $0x9a0] sm:$0xff] %v1375_v60  ;;  %2612 = vst [vmem:[%s3823_s20 + $0x9b0] sm:$0xff] %v2048_v61 }
 0x283   : > { %2611 = vst [vmem:[%s3823_s20 + $0x9a8] sm:$0xff] %v1377_v1  ;;  %2613 = vst [vmem:[%s3823_s20 + $0x9b8] sm:$0xff] %v2050_v2 }
 0x285   : > { %v1380_v3 = vpop.f32.mrb[156].mxu0  ;;  %v2053_v4 = vpop.f32.mrb[156].mxu1 }
 0x286   : > { %v1381_v5 = vadd.f32 %v1380_v3, %v3808_v51  ;;  %v2054_v6 = vadd.f32 %v2053_v4, %v3810_v52  ;;  %v1382_v7 = vpop.f32.mrb[157].mxu0  ;;  %v2055_v8 = vpop.f32.mrb[157].mxu1 }
 0x287   : > { %v1383_v9 = vadd.f32 %v1382_v7, %v3812_v53  ;;  %v2056_v10 = vadd.f32 %v2055_v8, %v3814_v54  ;;  %v1384_v11 = vpop.f32.mrb[158].mxu0  ;;  %v2057_v12 = vpop.f32.mrb[158].mxu1 }
 0x288   : > { %2614 = vst [vmem:[%s3823_s20 + $0x9c0] sm:$0xff] %v1381_v5  ;;  %2616 = vst [vmem:[%s3823_s20 + $0x9d0] sm:$0xff] %v2054_v6  ;;  %v1385_v13 = vadd.f32 %v1384_v11, %v3808_v51  ;;  %v2058_v14 = vadd.f32 %v2057_v12, %v3810_v52  ;;  %v1386_v15 = vpop.f32.mrb[159].mxu0  ;;  %v2059_v16 = vpop.f32.mrb[159].mxu1 }
 0x289   : > { %2615 = vst [vmem:[%s3823_s20 + $0x9c8] sm:$0xff] %v1383_v9  ;;  %2617 = vst [vmem:[%s3823_s20 + $0x9d8] sm:$0xff] %v2056_v10  ;;  %v1387_v17 = vadd.f32 %v1386_v15, %v3812_v53  ;;  %v2060_v18 = vadd.f32 %v2059_v16, %v3814_v54 }
 0x28a   : > { %2618 = vst [vmem:[%s3823_s20 + $0x9e0] sm:$0xff] %v1385_v13  ;;  %2620 = vst [vmem:[%s3823_s20 + $0x9f0] sm:$0xff] %v2058_v14 }
 0x28b   : > { %2619 = vst [vmem:[%s3823_s20 + $0x9e8] sm:$0xff] %v1387_v17  ;;  %2621 = vst [vmem:[%s3823_s20 + $0x9f8] sm:$0xff] %v2060_v18 }
 0x28d   : > { %v1390_v19 = vpop.f32.mrb[160].mxu0  ;;  %v2063_v20 = vpop.f32.mrb[160].mxu1 }
 0x28e   : > { %v1391_v21 = vadd.f32 %v1390_v19, %v3808_v51  ;;  %v2064_v22 = vadd.f32 %v2063_v20, %v3810_v52  ;;  %v1392_v23 = vpop.f32.mrb[161].mxu0  ;;  %v2065_v0 = vpop.f32.mrb[161].mxu1 }
 0x28f   : > { %v1393_v24 = vadd.f32 %v1392_v23, %v3812_v53  ;;  %v2066_v25 = vadd.f32 %v2065_v0, %v3814_v54  ;;  %v1394_v26 = vpop.f32.mrb[162].mxu0  ;;  %v2067_v27 = vpop.f32.mrb[162].mxu1 }
 0x290   : > { %2622 = vst [vmem:[%s3823_s20 + $0xa00] sm:$0xff] %v1391_v21  ;;  %2624 = vst [vmem:[%s3823_s20 + $0xa10] sm:$0xff] %v2064_v22  ;;  %v1395_v28 = vadd.f32 %v1394_v26, %v3808_v51  ;;  %v2068_v29 = vadd.f32 %v2067_v27, %v3810_v52  ;;  %v1396_v30 = vpop.f32.mrb[163].mxu0  ;;  %v2069_v31 = vpop.f32.mrb[163].mxu1 }
 0x291   : > { %2623 = vst [vmem:[%s3823_s20 + $0xa08] sm:$0xff] %v1393_v24  ;;  %2625 = vst [vmem:[%s3823_s20 + $0xa18] sm:$0xff] %v2066_v25  ;;  %v1397_v32 = vadd.f32 %v1396_v30, %v3812_v53  ;;  %v2070_v33 = vadd.f32 %v2069_v31, %v3814_v54 }
 0x292   : > { %2626 = vst [vmem:[%s3823_s20 + $0xa20] sm:$0xff] %v1395_v28  ;;  %2628 = vst [vmem:[%s3823_s20 + $0xa30] sm:$0xff] %v2068_v29 }
 0x293   : > { %2627 = vst [vmem:[%s3823_s20 + $0xa28] sm:$0xff] %v1397_v32  ;;  %2629 = vst [vmem:[%s3823_s20 + $0xa38] sm:$0xff] %v2070_v33 }
 0x295   : > { %v1400_v34 = vpop.f32.mrb[164].mxu0  ;;  %v2073_v35 = vpop.f32.mrb[164].mxu1 }
 0x296   : > { %v1401_v36 = vadd.f32 %v1400_v34, %v3808_v51  ;;  %v2074_v37 = vadd.f32 %v2073_v35, %v3810_v52  ;;  %v1402_v38 = vpop.f32.mrb[165].mxu0  ;;  %v2075_v39 = vpop.f32.mrb[165].mxu1 }
 0x297   : > { %v1403_v40 = vadd.f32 %v1402_v38, %v3812_v53  ;;  %v2076_v41 = vadd.f32 %v2075_v39, %v3814_v54  ;;  %v1404_v42 = vpop.f32.mrb[166].mxu0  ;;  %v2077_v43 = vpop.f32.mrb[166].mxu1 }
 0x298   : > { %2630 = vst [vmem:[%s3823_s20 + $0xa40] sm:$0xff] %v1401_v36  ;;  %2632 = vst [vmem:[%s3823_s20 + $0xa50] sm:$0xff] %v2074_v37  ;;  %v1405_v44 = vadd.f32 %v1404_v42, %v3808_v51  ;;  %v2078_v45 = vadd.f32 %v2077_v43, %v3810_v52  ;;  %v1406_v46 = vpop.f32.mrb[167].mxu0  ;;  %v2079_v47 = vpop.f32.mrb[167].mxu1 }
 0x299   : > { %2631 = vst [vmem:[%s3823_s20 + $0xa48] sm:$0xff] %v1403_v40  ;;  %2633 = vst [vmem:[%s3823_s20 + $0xa58] sm:$0xff] %v2076_v41  ;;  %v1407_v48 = vadd.f32 %v1406_v46, %v3812_v53  ;;  %v2080_v49 = vadd.f32 %v2079_v47, %v3814_v54 }
 0x29a   : > { %2634 = vst [vmem:[%s3823_s20 + $0xa60] sm:$0xff] %v1405_v44  ;;  %2636 = vst [vmem:[%s3823_s20 + $0xa70] sm:$0xff] %v2078_v45 }
 0x29b   : > { %2635 = vst [vmem:[%s3823_s20 + $0xa68] sm:$0xff] %v1407_v48  ;;  %2637 = vst [vmem:[%s3823_s20 + $0xa78] sm:$0xff] %v2080_v49 }
 0x29d   : > { %v1410_v50 = vpop.f32.mrb[168].mxu0  ;;  %v2083_v55 = vpop.f32.mrb[168].mxu1 }
 0x29e   : > { %v1411_v56 = vadd.f32 %v1410_v50, %v3808_v51  ;;  %v2084_v57 = vadd.f32 %v2083_v55, %v3810_v52  ;;  %v1412_v58 = vpop.f32.mrb[169].mxu0  ;;  %v2085_v59 = vpop.f32.mrb[169].mxu1 }
 0x29f   : > { %v1413_v60 = vadd.f32 %v1412_v58, %v3812_v53  ;;  %v2086_v61 = vadd.f32 %v2085_v59, %v3814_v54  ;;  %v1414_v62 = vpop.f32.mrb[170].mxu0  ;;  %v2087_v63 = vpop.f32.mrb[170].mxu1 }
 0x2a0   : > { %2638 = vst [vmem:[%s3823_s20 + $0xa80] sm:$0xff] %v1411_v56  ;;  %2640 = vst [vmem:[%s3823_s20 + $0xa90] sm:$0xff] %v2084_v57  ;;  %v1415_v1 = vadd.f32 %v1414_v62, %v3808_v51  ;;  %v2088_v2 = vadd.f32 %v2087_v63, %v3810_v52  ;;  %v1416_v3 = vpop.f32.mrb[171].mxu0  ;;  %v2089_v4 = vpop.f32.mrb[171].mxu1 }
 0x2a1   : > { %2639 = vst [vmem:[%s3823_s20 + $0xa88] sm:$0xff] %v1413_v60  ;;  %2641 = vst [vmem:[%s3823_s20 + $0xa98] sm:$0xff] %v2086_v61  ;;  %v1417_v5 = vadd.f32 %v1416_v3, %v3812_v53  ;;  %v2090_v6 = vadd.f32 %v2089_v4, %v3814_v54 }
 0x2a2   : > { %2642 = vst [vmem:[%s3823_s20 + $0xaa0] sm:$0xff] %v1415_v1  ;;  %2644 = vst [vmem:[%s3823_s20 + $0xab0] sm:$0xff] %v2088_v2 }
 0x2a3   : > { %2643 = vst [vmem:[%s3823_s20 + $0xaa8] sm:$0xff] %v1417_v5  ;;  %2645 = vst [vmem:[%s3823_s20 + $0xab8] sm:$0xff] %v2090_v6 }
 0x2a5   : > { %v1420_v7 = vpop.f32.mrb[172].mxu0  ;;  %v2093_v8 = vpop.f32.mrb[172].mxu1 }
 0x2a6   : > { %v1421_v9 = vadd.f32 %v1420_v7, %v3808_v51  ;;  %v2094_v10 = vadd.f32 %v2093_v8, %v3810_v52  ;;  %v1422_v11 = vpop.f32.mrb[173].mxu0  ;;  %v2095_v12 = vpop.f32.mrb[173].mxu1 }
 0x2a7   : > { %v1423_v13 = vadd.f32 %v1422_v11, %v3812_v53  ;;  %v2096_v14 = vadd.f32 %v2095_v12, %v3814_v54  ;;  %v1424_v15 = vpop.f32.mrb[174].mxu0  ;;  %v2097_v16 = vpop.f32.mrb[174].mxu1 }
 0x2a8   : > { %2646 = vst [vmem:[%s3823_s20 + $0xac0] sm:$0xff] %v1421_v9  ;;  %2648 = vst [vmem:[%s3823_s20 + $0xad0] sm:$0xff] %v2094_v10  ;;  %v1425_v17 = vadd.f32 %v1424_v15, %v3808_v51  ;;  %v2098_v18 = vadd.f32 %v2097_v16, %v3810_v52  ;;  %v1426_v19 = vpop.f32.mrb[175].mxu0  ;;  %v2099_v20 = vpop.f32.mrb[175].mxu1 }
 0x2a9   : > { %2647 = vst [vmem:[%s3823_s20 + $0xac8] sm:$0xff] %v1423_v13  ;;  %2649 = vst [vmem:[%s3823_s20 + $0xad8] sm:$0xff] %v2096_v14  ;;  %v1427_v21 = vadd.f32 %v1426_v19, %v3812_v53  ;;  %v2100_v22 = vadd.f32 %v2099_v20, %v3814_v54 }
 0x2aa   : > { %2650 = vst [vmem:[%s3823_s20 + $0xae0] sm:$0xff] %v1425_v17  ;;  %2652 = vst [vmem:[%s3823_s20 + $0xaf0] sm:$0xff] %v2098_v18 }
 0x2ab   : > { %2651 = vst [vmem:[%s3823_s20 + $0xae8] sm:$0xff] %v1427_v21  ;;  %2653 = vst [vmem:[%s3823_s20 + $0xaf8] sm:$0xff] %v2100_v22 }
 0x2ad   : > { %v1430_v23 = vpop.f32.mrb[176].mxu0  ;;  %v2103_v0 = vpop.f32.mrb[176].mxu1 }
 0x2ae   : > { %v1431_v24 = vadd.f32 %v1430_v23, %v3808_v51  ;;  %v2104_v25 = vadd.f32 %v2103_v0, %v3810_v52  ;;  %v1432_v26 = vpop.f32.mrb[177].mxu0  ;;  %v2105_v27 = vpop.f32.mrb[177].mxu1 }
 0x2af   : > { %v1433_v28 = vadd.f32 %v1432_v26, %v3812_v53  ;;  %v2106_v29 = vadd.f32 %v2105_v27, %v3814_v54  ;;  %v1434_v30 = vpop.f32.mrb[178].mxu0  ;;  %v2107_v31 = vpop.f32.mrb[178].mxu1 }
 0x2b0   : > { %2654 = vst [vmem:[%s3823_s20 + $0xb00] sm:$0xff] %v1431_v24  ;;  %2656 = vst [vmem:[%s3823_s20 + $0xb10] sm:$0xff] %v2104_v25  ;;  %v1435_v32 = vadd.f32 %v1434_v30, %v3808_v51  ;;  %v2108_v33 = vadd.f32 %v2107_v31, %v3810_v52  ;;  %v1436_v34 = vpop.f32.mrb[179].mxu0  ;;  %v2109_v35 = vpop.f32.mrb[179].mxu1 }
 0x2b1   : > { %2655 = vst [vmem:[%s3823_s20 + $0xb08] sm:$0xff] %v1433_v28  ;;  %2657 = vst [vmem:[%s3823_s20 + $0xb18] sm:$0xff] %v2106_v29  ;;  %v1437_v36 = vadd.f32 %v1436_v34, %v3812_v53  ;;  %v2110_v37 = vadd.f32 %v2109_v35, %v3814_v54 }
 0x2b2   : > { %2658 = vst [vmem:[%s3823_s20 + $0xb20] sm:$0xff] %v1435_v32  ;;  %2660 = vst [vmem:[%s3823_s20 + $0xb30] sm:$0xff] %v2108_v33 }
 0x2b3   : > { %2659 = vst [vmem:[%s3823_s20 + $0xb28] sm:$0xff] %v1437_v36  ;;  %2661 = vst [vmem:[%s3823_s20 + $0xb38] sm:$0xff] %v2110_v37 }
 0x2b5   : > { %v1440_v38 = vpop.f32.mrb[180].mxu0  ;;  %v2113_v39 = vpop.f32.mrb[180].mxu1 }
 0x2b6   : > { %v1441_v40 = vadd.f32 %v1440_v38, %v3808_v51  ;;  %v2114_v41 = vadd.f32 %v2113_v39, %v3810_v52  ;;  %v1442_v42 = vpop.f32.mrb[181].mxu0  ;;  %v2115_v43 = vpop.f32.mrb[181].mxu1 }
 0x2b7   : > { %v1443_v44 = vadd.f32 %v1442_v42, %v3812_v53  ;;  %v2116_v45 = vadd.f32 %v2115_v43, %v3814_v54  ;;  %v1444_v46 = vpop.f32.mrb[182].mxu0  ;;  %v2117_v47 = vpop.f32.mrb[182].mxu1 }
 0x2b8   : > { %2662 = vst [vmem:[%s3823_s20 + $0xb40] sm:$0xff] %v1441_v40  ;;  %2664 = vst [vmem:[%s3823_s20 + $0xb50] sm:$0xff] %v2114_v41  ;;  %v1445_v48 = vadd.f32 %v1444_v46, %v3808_v51  ;;  %v2118_v49 = vadd.f32 %v2117_v47, %v3810_v52  ;;  %v1446_v50 = vpop.f32.mrb[183].mxu0  ;;  %v2119_v55 = vpop.f32.mrb[183].mxu1 }
 0x2b9   : > { %2663 = vst [vmem:[%s3823_s20 + $0xb48] sm:$0xff] %v1443_v44  ;;  %2665 = vst [vmem:[%s3823_s20 + $0xb58] sm:$0xff] %v2116_v45  ;;  %v1447_v56 = vadd.f32 %v1446_v50, %v3812_v53  ;;  %v2120_v57 = vadd.f32 %v2119_v55, %v3814_v54 }
 0x2ba   : > { %2666 = vst [vmem:[%s3823_s20 + $0xb60] sm:$0xff] %v1445_v48  ;;  %2668 = vst [vmem:[%s3823_s20 + $0xb70] sm:$0xff] %v2118_v49 }
 0x2bb   : > { %2667 = vst [vmem:[%s3823_s20 + $0xb68] sm:$0xff] %v1447_v56  ;;  %2669 = vst [vmem:[%s3823_s20 + $0xb78] sm:$0xff] %v2120_v57 }
 0x2bd   : > { %v1450_v58 = vpop.f32.mrb[184].mxu0  ;;  %v2123_v59 = vpop.f32.mrb[184].mxu1 }
 0x2be   : > { %v1451_v60 = vadd.f32 %v1450_v58, %v3808_v51  ;;  %v2124_v61 = vadd.f32 %v2123_v59, %v3810_v52  ;;  %v1452_v62 = vpop.f32.mrb[185].mxu0  ;;  %v2125_v63 = vpop.f32.mrb[185].mxu1 }
 0x2bf   : > { %v1453_v1 = vadd.f32 %v1452_v62, %v3812_v53  ;;  %v2126_v2 = vadd.f32 %v2125_v63, %v3814_v54  ;;  %v1454_v3 = vpop.f32.mrb[186].mxu0  ;;  %v2127_v4 = vpop.f32.mrb[186].mxu1 }
 0x2c0   : > { %2670 = vst [vmem:[%s3823_s20 + $0xb80] sm:$0xff] %v1451_v60  ;;  %2672 = vst [vmem:[%s3823_s20 + $0xb90] sm:$0xff] %v2124_v61  ;;  %v1455_v5 = vadd.f32 %v1454_v3, %v3808_v51  ;;  %v2128_v6 = vadd.f32 %v2127_v4, %v3810_v52  ;;  %v1456_v7 = vpop.f32.mrb[187].mxu0  ;;  %v2129_v8 = vpop.f32.mrb[187].mxu1 }
 0x2c1   : > { %2671 = vst [vmem:[%s3823_s20 + $0xb88] sm:$0xff] %v1453_v1  ;;  %2673 = vst [vmem:[%s3823_s20 + $0xb98] sm:$0xff] %v2126_v2  ;;  %v1457_v9 = vadd.f32 %v1456_v7, %v3812_v53  ;;  %v2130_v10 = vadd.f32 %v2129_v8, %v3814_v54 }
 0x2c2   : > { %2674 = vst [vmem:[%s3823_s20 + $0xba0] sm:$0xff] %v1455_v5  ;;  %2676 = vst [vmem:[%s3823_s20 + $0xbb0] sm:$0xff] %v2128_v6 }
 0x2c3   : > { %2675 = vst [vmem:[%s3823_s20 + $0xba8] sm:$0xff] %v1457_v9  ;;  %2677 = vst [vmem:[%s3823_s20 + $0xbb8] sm:$0xff] %v2130_v10 }
 0x2c5   : > { %v1460_v11 = vpop.f32.mrb[188].mxu0  ;;  %v2133_v12 = vpop.f32.mrb[188].mxu1 }
 0x2c6   : > { %v1461_v13 = vadd.f32 %v1460_v11, %v3808_v51  ;;  %v2134_v14 = vadd.f32 %v2133_v12, %v3810_v52  ;;  %v1462_v15 = vpop.f32.mrb[189].mxu0  ;;  %v2135_v16 = vpop.f32.mrb[189].mxu1 }
 0x2c7   : > { %v1463_v17 = vadd.f32 %v1462_v15, %v3812_v53  ;;  %v2136_v18 = vadd.f32 %v2135_v16, %v3814_v54  ;;  %v1464_v19 = vpop.f32.mrb[190].mxu0  ;;  %v2137_v20 = vpop.f32.mrb[190].mxu1 }
 0x2c8   : > { %2678 = vst [vmem:[%s3823_s20 + $0xbc0] sm:$0xff] %v1461_v13  ;;  %2680 = vst [vmem:[%s3823_s20 + $0xbd0] sm:$0xff] %v2134_v14  ;;  %v1465_v21 = vadd.f32 %v1464_v19, %v3808_v51  ;;  %v2138_v22 = vadd.f32 %v2137_v20, %v3810_v52  ;;  %v1466_v23 = vpop.f32.mrb[191].mxu0  ;;  %v2139_v0 = vpop.f32.mrb[191].mxu1 }
 0x2c9   : > { %2679 = vst [vmem:[%s3823_s20 + $0xbc8] sm:$0xff] %v1463_v17  ;;  %2681 = vst [vmem:[%s3823_s20 + $0xbd8] sm:$0xff] %v2136_v18  ;;  %v1467_v24 = vadd.f32 %v1466_v23, %v3812_v53  ;;  %v2140_v25 = vadd.f32 %v2139_v0, %v3814_v54 }
 0x2ca   : > { %2682 = vst [vmem:[%s3823_s20 + $0xbe0] sm:$0xff] %v1465_v21  ;;  %2684 = vst [vmem:[%s3823_s20 + $0xbf0] sm:$0xff] %v2138_v22 }
 0x2cb   : > { %2683 = vst [vmem:[%s3823_s20 + $0xbe8] sm:$0xff] %v1467_v24  ;;  %2685 = vst [vmem:[%s3823_s20 + $0xbf8] sm:$0xff] %v2140_v25 }
 0x2cd   : > { %v1470_v26 = vpop.f32.mrb[192].mxu0  ;;  %v2143_v27 = vpop.f32.mrb[192].mxu1 }
 0x2ce   : > { %v1471_v28 = vadd.f32 %v1470_v26, %v3808_v51  ;;  %v2144_v29 = vadd.f32 %v2143_v27, %v3810_v52  ;;  %v1472_v30 = vpop.f32.mrb[193].mxu0  ;;  %v2145_v31 = vpop.f32.mrb[193].mxu1 }
 0x2cf   : > { %v1473_v32 = vadd.f32 %v1472_v30, %v3812_v53  ;;  %v2146_v33 = vadd.f32 %v2145_v31, %v3814_v54  ;;  %v1474_v34 = vpop.f32.mrb[194].mxu0  ;;  %v2147_v35 = vpop.f32.mrb[194].mxu1 }
 0x2d0   : > { %2686 = vst [vmem:[%s3823_s20 + $0xc00] sm:$0xff] %v1471_v28  ;;  %2688 = vst [vmem:[%s3823_s20 + $0xc10] sm:$0xff] %v2144_v29  ;;  %v1475_v36 = vadd.f32 %v1474_v34, %v3808_v51  ;;  %v2148_v37 = vadd.f32 %v2147_v35, %v3810_v52  ;;  %v1476_v38 = vpop.f32.mrb[195].mxu0  ;;  %v2149_v39 = vpop.f32.mrb[195].mxu1 }
 0x2d1   : > { %2687 = vst [vmem:[%s3823_s20 + $0xc08] sm:$0xff] %v1473_v32  ;;  %2689 = vst [vmem:[%s3823_s20 + $0xc18] sm:$0xff] %v2146_v33  ;;  %v1477_v40 = vadd.f32 %v1476_v38, %v3812_v53  ;;  %v2150_v41 = vadd.f32 %v2149_v39, %v3814_v54 }
 0x2d2   : > { %2690 = vst [vmem:[%s3823_s20 + $0xc20] sm:$0xff] %v1475_v36  ;;  %2692 = vst [vmem:[%s3823_s20 + $0xc30] sm:$0xff] %v2148_v37 }
 0x2d3   : > { %2691 = vst [vmem:[%s3823_s20 + $0xc28] sm:$0xff] %v1477_v40  ;;  %2693 = vst [vmem:[%s3823_s20 + $0xc38] sm:$0xff] %v2150_v41 }
 0x2d5   : > { %v1480_v42 = vpop.f32.mrb[196].mxu0  ;;  %v2153_v43 = vpop.f32.mrb[196].mxu1 }
 0x2d6   : > { %v1481_v44 = vadd.f32 %v1480_v42, %v3808_v51  ;;  %v2154_v45 = vadd.f32 %v2153_v43, %v3810_v52  ;;  %v1482_v46 = vpop.f32.mrb[197].mxu0  ;;  %v2155_v47 = vpop.f32.mrb[197].mxu1 }
 0x2d7   : > { %v1483_v48 = vadd.f32 %v1482_v46, %v3812_v53  ;;  %v2156_v49 = vadd.f32 %v2155_v47, %v3814_v54  ;;  %v1484_v50 = vpop.f32.mrb[198].mxu0  ;;  %v2157_v55 = vpop.f32.mrb[198].mxu1 }
 0x2d8   : > { %2694 = vst [vmem:[%s3823_s20 + $0xc40] sm:$0xff] %v1481_v44  ;;  %2696 = vst [vmem:[%s3823_s20 + $0xc50] sm:$0xff] %v2154_v45  ;;  %v1485_v56 = vadd.f32 %v1484_v50, %v3808_v51  ;;  %v2158_v57 = vadd.f32 %v2157_v55, %v3810_v52  ;;  %v1486_v58 = vpop.f32.mrb[199].mxu0  ;;  %v2159_v59 = vpop.f32.mrb[199].mxu1 }
 0x2d9   : > { %2695 = vst [vmem:[%s3823_s20 + $0xc48] sm:$0xff] %v1483_v48  ;;  %2697 = vst [vmem:[%s3823_s20 + $0xc58] sm:$0xff] %v2156_v49  ;;  %v1487_v60 = vadd.f32 %v1486_v58, %v3812_v53  ;;  %v2160_v61 = vadd.f32 %v2159_v59, %v3814_v54 }
 0x2da   : > { %2698 = vst [vmem:[%s3823_s20 + $0xc60] sm:$0xff] %v1485_v56  ;;  %2700 = vst [vmem:[%s3823_s20 + $0xc70] sm:$0xff] %v2158_v57 }
 0x2db   : > { %2699 = vst [vmem:[%s3823_s20 + $0xc68] sm:$0xff] %v1487_v60  ;;  %2701 = vst [vmem:[%s3823_s20 + $0xc78] sm:$0xff] %v2160_v61 }
 0x2dd   : > { %v1490_v62 = vpop.f32.mrb[200].mxu0  ;;  %v2163_v63 = vpop.f32.mrb[200].mxu1 }
 0x2de   : > { %v1491_v1 = vadd.f32 %v1490_v62, %v3808_v51  ;;  %v2164_v2 = vadd.f32 %v2163_v63, %v3810_v52  ;;  %v1492_v3 = vpop.f32.mrb[201].mxu0  ;;  %v2165_v4 = vpop.f32.mrb[201].mxu1 }
 0x2df   : > { %v1493_v5 = vadd.f32 %v1492_v3, %v3812_v53  ;;  %v2166_v6 = vadd.f32 %v2165_v4, %v3814_v54  ;;  %v1494_v7 = vpop.f32.mrb[202].mxu0  ;;  %v2167_v8 = vpop.f32.mrb[202].mxu1 }
 0x2e0   : > { %2702 = vst [vmem:[%s3823_s20 + $0xc80] sm:$0xff] %v1491_v1  ;;  %2704 = vst [vmem:[%s3823_s20 + $0xc90] sm:$0xff] %v2164_v2  ;;  %v1495_v9 = vadd.f32 %v1494_v7, %v3808_v51  ;;  %v2168_v10 = vadd.f32 %v2167_v8, %v3810_v52  ;;  %v1496_v11 = vpop.f32.mrb[203].mxu0  ;;  %v2169_v12 = vpop.f32.mrb[203].mxu1 }
 0x2e1   : > { %2703 = vst [vmem:[%s3823_s20 + $0xc88] sm:$0xff] %v1493_v5  ;;  %2705 = vst [vmem:[%s3823_s20 + $0xc98] sm:$0xff] %v2166_v6  ;;  %v1497_v13 = vadd.f32 %v1496_v11, %v3812_v53  ;;  %v2170_v14 = vadd.f32 %v2169_v12, %v3814_v54 }
 0x2e2   : > { %2706 = vst [vmem:[%s3823_s20 + $0xca0] sm:$0xff] %v1495_v9  ;;  %2708 = vst [vmem:[%s3823_s20 + $0xcb0] sm:$0xff] %v2168_v10 }
 0x2e3   : > { %2707 = vst [vmem:[%s3823_s20 + $0xca8] sm:$0xff] %v1497_v13  ;;  %2709 = vst [vmem:[%s3823_s20 + $0xcb8] sm:$0xff] %v2170_v14 }
 0x2e5   : > { %v1500_v15 = vpop.f32.mrb[204].mxu0  ;;  %v2173_v16 = vpop.f32.mrb[204].mxu1 }
 0x2e6   : > { %v1501_v17 = vadd.f32 %v1500_v15, %v3808_v51  ;;  %v2174_v18 = vadd.f32 %v2173_v16, %v3810_v52  ;;  %v1502_v19 = vpop.f32.mrb[205].mxu0  ;;  %v2175_v20 = vpop.f32.mrb[205].mxu1 }
 0x2e7   : > { %v1503_v21 = vadd.f32 %v1502_v19, %v3812_v53  ;;  %v2176_v22 = vadd.f32 %v2175_v20, %v3814_v54  ;;  %v1504_v23 = vpop.f32.mrb[206].mxu0  ;;  %v2177_v0 = vpop.f32.mrb[206].mxu1 }
 0x2e8   : > { %2710 = vst [vmem:[%s3823_s20 + $0xcc0] sm:$0xff] %v1501_v17  ;;  %2712 = vst [vmem:[%s3823_s20 + $0xcd0] sm:$0xff] %v2174_v18  ;;  %v1505_v24 = vadd.f32 %v1504_v23, %v3808_v51  ;;  %v2178_v25 = vadd.f32 %v2177_v0, %v3810_v52  ;;  %v1506_v26 = vpop.f32.mrb[207].mxu0  ;;  %v2179_v27 = vpop.f32.mrb[207].mxu1 }
 0x2e9   : > { %2711 = vst [vmem:[%s3823_s20 + $0xcc8] sm:$0xff] %v1503_v21  ;;  %2713 = vst [vmem:[%s3823_s20 + $0xcd8] sm:$0xff] %v2176_v22  ;;  %v1507_v28 = vadd.f32 %v1506_v26, %v3812_v53  ;;  %v2180_v29 = vadd.f32 %v2179_v27, %v3814_v54 }
 0x2ea   : > { %2714 = vst [vmem:[%s3823_s20 + $0xce0] sm:$0xff] %v1505_v24  ;;  %2716 = vst [vmem:[%s3823_s20 + $0xcf0] sm:$0xff] %v2178_v25 }
 0x2eb   : > { %2715 = vst [vmem:[%s3823_s20 + $0xce8] sm:$0xff] %v1507_v28  ;;  %2717 = vst [vmem:[%s3823_s20 + $0xcf8] sm:$0xff] %v2180_v29 }
 0x2ed   : > { %v1510_v30 = vpop.f32.mrb[208].mxu0  ;;  %v2183_v31 = vpop.f32.mrb[208].mxu1 }
 0x2ee   : > { %v1511_v32 = vadd.f32 %v1510_v30, %v3808_v51  ;;  %v2184_v33 = vadd.f32 %v2183_v31, %v3810_v52  ;;  %v1512_v34 = vpop.f32.mrb[209].mxu0  ;;  %v2185_v35 = vpop.f32.mrb[209].mxu1 }
 0x2ef   : > { %v1513_v36 = vadd.f32 %v1512_v34, %v3812_v53  ;;  %v2186_v37 = vadd.f32 %v2185_v35, %v3814_v54  ;;  %v1514_v38 = vpop.f32.mrb[210].mxu0  ;;  %v2187_v39 = vpop.f32.mrb[210].mxu1 }
 0x2f0   : > { %2718 = vst [vmem:[%s3823_s20 + $0xd00] sm:$0xff] %v1511_v32  ;;  %2720 = vst [vmem:[%s3823_s20 + $0xd10] sm:$0xff] %v2184_v33  ;;  %v1515_v40 = vadd.f32 %v1514_v38, %v3808_v51  ;;  %v2188_v41 = vadd.f32 %v2187_v39, %v3810_v52  ;;  %v1516_v42 = vpop.f32.mrb[211].mxu0  ;;  %v2189_v43 = vpop.f32.mrb[211].mxu1 }
 0x2f1   : > { %2719 = vst [vmem:[%s3823_s20 + $0xd08] sm:$0xff] %v1513_v36  ;;  %2721 = vst [vmem:[%s3823_s20 + $0xd18] sm:$0xff] %v2186_v37  ;;  %v1517_v44 = vadd.f32 %v1516_v42, %v3812_v53  ;;  %v2190_v45 = vadd.f32 %v2189_v43, %v3814_v54 }
 0x2f2   : > { %2722 = vst [vmem:[%s3823_s20 + $0xd20] sm:$0xff] %v1515_v40  ;;  %2724 = vst [vmem:[%s3823_s20 + $0xd30] sm:$0xff] %v2188_v41 }
 0x2f3   : > { %2723 = vst [vmem:[%s3823_s20 + $0xd28] sm:$0xff] %v1517_v44  ;;  %2725 = vst [vmem:[%s3823_s20 + $0xd38] sm:$0xff] %v2190_v45 }
 0x2f5   : > { %v1520_v46 = vpop.f32.mrb[212].mxu0  ;;  %v2193_v47 = vpop.f32.mrb[212].mxu1 }
 0x2f6   : > { %v1521_v48 = vadd.f32 %v1520_v46, %v3808_v51  ;;  %v2194_v49 = vadd.f32 %v2193_v47, %v3810_v52  ;;  %v1522_v50 = vpop.f32.mrb[213].mxu0  ;;  %v2195_v55 = vpop.f32.mrb[213].mxu1 }
 0x2f7   : > { %v1523_v56 = vadd.f32 %v1522_v50, %v3812_v53  ;;  %v2196_v57 = vadd.f32 %v2195_v55, %v3814_v54  ;;  %v1524_v58 = vpop.f32.mrb[214].mxu0  ;;  %v2197_v59 = vpop.f32.mrb[214].mxu1 }
 0x2f8   : > { %2726 = vst [vmem:[%s3823_s20 + $0xd40] sm:$0xff] %v1521_v48  ;;  %2728 = vst [vmem:[%s3823_s20 + $0xd50] sm:$0xff] %v2194_v49  ;;  %v1525_v60 = vadd.f32 %v1524_v58, %v3808_v51  ;;  %v2198_v61 = vadd.f32 %v2197_v59, %v3810_v52  ;;  %v1526_v62 = vpop.f32.mrb[215].mxu0  ;;  %v2199_v63 = vpop.f32.mrb[215].mxu1 }
 0x2f9   : > { %2727 = vst [vmem:[%s3823_s20 + $0xd48] sm:$0xff] %v1523_v56  ;;  %2729 = vst [vmem:[%s3823_s20 + $0xd58] sm:$0xff] %v2196_v57  ;;  %v1527_v1 = vadd.f32 %v1526_v62, %v3812_v53  ;;  %v2200_v2 = vadd.f32 %v2199_v63, %v3814_v54 }
 0x2fa   : > { %2730 = vst [vmem:[%s3823_s20 + $0xd60] sm:$0xff] %v1525_v60  ;;  %2732 = vst [vmem:[%s3823_s20 + $0xd70] sm:$0xff] %v2198_v61 }
 0x2fb   : > { %2731 = vst [vmem:[%s3823_s20 + $0xd68] sm:$0xff] %v1527_v1  ;;  %2733 = vst [vmem:[%s3823_s20 + $0xd78] sm:$0xff] %v2200_v2 }
 0x2fd   : > { %v1530_v3 = vpop.f32.mrb[216].mxu0  ;;  %v2203_v4 = vpop.f32.mrb[216].mxu1 }
 0x2fe   : > { %v1531_v5 = vadd.f32 %v1530_v3, %v3808_v51  ;;  %v2204_v6 = vadd.f32 %v2203_v4, %v3810_v52  ;;  %v1532_v7 = vpop.f32.mrb[217].mxu0  ;;  %v2205_v8 = vpop.f32.mrb[217].mxu1 }
 0x2ff   : > { %v1533_v9 = vadd.f32 %v1532_v7, %v3812_v53  ;;  %v2206_v10 = vadd.f32 %v2205_v8, %v3814_v54  ;;  %v1534_v11 = vpop.f32.mrb[218].mxu0  ;;  %v2207_v12 = vpop.f32.mrb[218].mxu1 }
 0x300   : > { %2734 = vst [vmem:[%s3823_s20 + $0xd80] sm:$0xff] %v1531_v5  ;;  %2736 = vst [vmem:[%s3823_s20 + $0xd90] sm:$0xff] %v2204_v6  ;;  %v1535_v13 = vadd.f32 %v1534_v11, %v3808_v51  ;;  %v2208_v14 = vadd.f32 %v2207_v12, %v3810_v52  ;;  %v1536_v15 = vpop.f32.mrb[219].mxu0  ;;  %v2209_v16 = vpop.f32.mrb[219].mxu1 }
 0x301   : > { %2735 = vst [vmem:[%s3823_s20 + $0xd88] sm:$0xff] %v1533_v9  ;;  %2737 = vst [vmem:[%s3823_s20 + $0xd98] sm:$0xff] %v2206_v10  ;;  %v1537_v17 = vadd.f32 %v1536_v15, %v3812_v53  ;;  %v2210_v18 = vadd.f32 %v2209_v16, %v3814_v54 }
 0x302   : > { %2738 = vst [vmem:[%s3823_s20 + $0xda0] sm:$0xff] %v1535_v13  ;;  %2740 = vst [vmem:[%s3823_s20 + $0xdb0] sm:$0xff] %v2208_v14 }
 0x303   : > { %2739 = vst [vmem:[%s3823_s20 + $0xda8] sm:$0xff] %v1537_v17  ;;  %2741 = vst [vmem:[%s3823_s20 + $0xdb8] sm:$0xff] %v2210_v18 }
 0x305   : > { %v1540_v19 = vpop.f32.mrb[220].mxu0  ;;  %v2213_v20 = vpop.f32.mrb[220].mxu1 }
 0x306   : > { %v1541_v21 = vadd.f32 %v1540_v19, %v3808_v51  ;;  %v2214_v22 = vadd.f32 %v2213_v20, %v3810_v52  ;;  %v1542_v23 = vpop.f32.mrb[221].mxu0  ;;  %v2215_v0 = vpop.f32.mrb[221].mxu1 }
 0x307   : > { %v1543_v24 = vadd.f32 %v1542_v23, %v3812_v53  ;;  %v2216_v25 = vadd.f32 %v2215_v0, %v3814_v54  ;;  %v1544_v26 = vpop.f32.mrb[222].mxu0  ;;  %v2217_v27 = vpop.f32.mrb[222].mxu1 }
 0x308   : > { %2742 = vst [vmem:[%s3823_s20 + $0xdc0] sm:$0xff] %v1541_v21  ;;  %2744 = vst [vmem:[%s3823_s20 + $0xdd0] sm:$0xff] %v2214_v22  ;;  %v1545_v28 = vadd.f32 %v1544_v26, %v3808_v51  ;;  %v2218_v29 = vadd.f32 %v2217_v27, %v3810_v52  ;;  %v1546_v30 = vpop.f32.mrb[223].mxu0  ;;  %v2219_v31 = vpop.f32.mrb[223].mxu1 }
 0x309   : > { %2743 = vst [vmem:[%s3823_s20 + $0xdc8] sm:$0xff] %v1543_v24  ;;  %2745 = vst [vmem:[%s3823_s20 + $0xdd8] sm:$0xff] %v2216_v25  ;;  %v1547_v32 = vadd.f32 %v1546_v30, %v3812_v53  ;;  %v2220_v33 = vadd.f32 %v2219_v31, %v3814_v54 }
 0x30a   : > { %2746 = vst [vmem:[%s3823_s20 + $0xde0] sm:$0xff] %v1545_v28  ;;  %2748 = vst [vmem:[%s3823_s20 + $0xdf0] sm:$0xff] %v2218_v29 }
 0x30b   : > { %2747 = vst [vmem:[%s3823_s20 + $0xde8] sm:$0xff] %v1547_v32  ;;  %2749 = vst [vmem:[%s3823_s20 + $0xdf8] sm:$0xff] %v2220_v33 }
 0x30d   : > { %v1550_v34 = vpop.f32.mrb[224].mxu0  ;;  %v2223_v35 = vpop.f32.mrb[224].mxu1 }
 0x30e   : > { %v1551_v36 = vadd.f32 %v1550_v34, %v3808_v51  ;;  %v2224_v37 = vadd.f32 %v2223_v35, %v3810_v52  ;;  %v1552_v38 = vpop.f32.mrb[225].mxu0  ;;  %v2225_v39 = vpop.f32.mrb[225].mxu1 }
 0x30f   : > { %v1553_v40 = vadd.f32 %v1552_v38, %v3812_v53  ;;  %v2226_v41 = vadd.f32 %v2225_v39, %v3814_v54  ;;  %v1554_v42 = vpop.f32.mrb[226].mxu0  ;;  %v2227_v43 = vpop.f32.mrb[226].mxu1 }
 0x310   : > { %2750 = vst [vmem:[%s3823_s20 + $0xe00] sm:$0xff] %v1551_v36  ;;  %2752 = vst [vmem:[%s3823_s20 + $0xe10] sm:$0xff] %v2224_v37  ;;  %v1555_v44 = vadd.f32 %v1554_v42, %v3808_v51  ;;  %v2228_v45 = vadd.f32 %v2227_v43, %v3810_v52  ;;  %v1556_v46 = vpop.f32.mrb[227].mxu0  ;;  %v2229_v47 = vpop.f32.mrb[227].mxu1 }
 0x311   : > { %2751 = vst [vmem:[%s3823_s20 + $0xe08] sm:$0xff] %v1553_v40  ;;  %2753 = vst [vmem:[%s3823_s20 + $0xe18] sm:$0xff] %v2226_v41  ;;  %v1557_v48 = vadd.f32 %v1556_v46, %v3812_v53  ;;  %v2230_v49 = vadd.f32 %v2229_v47, %v3814_v54 }
 0x312   : > { %2754 = vst [vmem:[%s3823_s20 + $0xe20] sm:$0xff] %v1555_v44  ;;  %2756 = vst [vmem:[%s3823_s20 + $0xe30] sm:$0xff] %v2228_v45 }
 0x313   : > { %2755 = vst [vmem:[%s3823_s20 + $0xe28] sm:$0xff] %v1557_v48  ;;  %2757 = vst [vmem:[%s3823_s20 + $0xe38] sm:$0xff] %v2230_v49 }
 0x315   : > { %v1560_v50 = vpop.f32.mrb[228].mxu0  ;;  %v2233_v55 = vpop.f32.mrb[228].mxu1 }
 0x316   : > { %v1561_v56 = vadd.f32 %v1560_v50, %v3808_v51  ;;  %v2234_v57 = vadd.f32 %v2233_v55, %v3810_v52  ;;  %v1562_v58 = vpop.f32.mrb[229].mxu0  ;;  %v2235_v59 = vpop.f32.mrb[229].mxu1 }
 0x317   : > { %v1563_v60 = vadd.f32 %v1562_v58, %v3812_v53  ;;  %v2236_v61 = vadd.f32 %v2235_v59, %v3814_v54  ;;  %v1564_v62 = vpop.f32.mrb[230].mxu0  ;;  %v2237_v63 = vpop.f32.mrb[230].mxu1 }
 0x318   : > { %2758 = vst [vmem:[%s3823_s20 + $0xe40] sm:$0xff] %v1561_v56  ;;  %2760 = vst [vmem:[%s3823_s20 + $0xe50] sm:$0xff] %v2234_v57  ;;  %v1565_v1 = vadd.f32 %v1564_v62, %v3808_v51  ;;  %v2238_v2 = vadd.f32 %v2237_v63, %v3810_v52  ;;  %v1566_v3 = vpop.f32.mrb[231].mxu0  ;;  %v2239_v4 = vpop.f32.mrb[231].mxu1 }
 0x319   : > { %2759 = vst [vmem:[%s3823_s20 + $0xe48] sm:$0xff] %v1563_v60  ;;  %2761 = vst [vmem:[%s3823_s20 + $0xe58] sm:$0xff] %v2236_v61  ;;  %v1567_v5 = vadd.f32 %v1566_v3, %v3812_v53  ;;  %v2240_v6 = vadd.f32 %v2239_v4, %v3814_v54 }
 0x31a   : > { %2762 = vst [vmem:[%s3823_s20 + $0xe60] sm:$0xff] %v1565_v1  ;;  %2764 = vst [vmem:[%s3823_s20 + $0xe70] sm:$0xff] %v2238_v2 }
 0x31b   : > { %2763 = vst [vmem:[%s3823_s20 + $0xe68] sm:$0xff] %v1567_v5  ;;  %2765 = vst [vmem:[%s3823_s20 + $0xe78] sm:$0xff] %v2240_v6 }
 0x31d   : > { %v1570_v7 = vpop.f32.mrb[232].mxu0  ;;  %v2243_v8 = vpop.f32.mrb[232].mxu1 }
 0x31e   : > { %v1571_v9 = vadd.f32 %v1570_v7, %v3808_v51  ;;  %v2244_v10 = vadd.f32 %v2243_v8, %v3810_v52  ;;  %v1572_v11 = vpop.f32.mrb[233].mxu0  ;;  %v2245_v12 = vpop.f32.mrb[233].mxu1 }
 0x31f   : > { %v1573_v13 = vadd.f32 %v1572_v11, %v3812_v53  ;;  %v2246_v14 = vadd.f32 %v2245_v12, %v3814_v54  ;;  %v1574_v15 = vpop.f32.mrb[234].mxu0  ;;  %v2247_v16 = vpop.f32.mrb[234].mxu1 }
 0x320   : > { %2766 = vst [vmem:[%s3823_s20 + $0xe80] sm:$0xff] %v1571_v9  ;;  %2768 = vst [vmem:[%s3823_s20 + $0xe90] sm:$0xff] %v2244_v10  ;;  %v1575_v17 = vadd.f32 %v1574_v15, %v3808_v51  ;;  %v2248_v18 = vadd.f32 %v2247_v16, %v3810_v52  ;;  %v1576_v19 = vpop.f32.mrb[235].mxu0  ;;  %v2249_v20 = vpop.f32.mrb[235].mxu1 }
 0x321   : > { %2767 = vst [vmem:[%s3823_s20 + $0xe88] sm:$0xff] %v1573_v13  ;;  %2769 = vst [vmem:[%s3823_s20 + $0xe98] sm:$0xff] %v2246_v14  ;;  %v1577_v21 = vadd.f32 %v1576_v19, %v3812_v53  ;;  %v2250_v22 = vadd.f32 %v2249_v20, %v3814_v54 }
 0x322   : > { %2770 = vst [vmem:[%s3823_s20 + $0xea0] sm:$0xff] %v1575_v17  ;;  %2772 = vst [vmem:[%s3823_s20 + $0xeb0] sm:$0xff] %v2248_v18 }
 0x323   : > { %2771 = vst [vmem:[%s3823_s20 + $0xea8] sm:$0xff] %v1577_v21  ;;  %2773 = vst [vmem:[%s3823_s20 + $0xeb8] sm:$0xff] %v2250_v22 }
 0x325   : > { %v1580_v23 = vpop.f32.mrb[236].mxu0  ;;  %v2253_v0 = vpop.f32.mrb[236].mxu1 }
 0x326   : > { %v1581_v24 = vadd.f32 %v1580_v23, %v3808_v51  ;;  %v2254_v25 = vadd.f32 %v2253_v0, %v3810_v52  ;;  %v1582_v26 = vpop.f32.mrb[237].mxu0  ;;  %v2255_v27 = vpop.f32.mrb[237].mxu1 }
 0x327   : > { %v1583_v28 = vadd.f32 %v1582_v26, %v3812_v53  ;;  %v2256_v29 = vadd.f32 %v2255_v27, %v3814_v54  ;;  %v1584_v30 = vpop.f32.mrb[238].mxu0  ;;  %v2257_v31 = vpop.f32.mrb[238].mxu1 }
 0x328   : > { %2774 = vst [vmem:[%s3823_s20 + $0xec0] sm:$0xff] %v1581_v24  ;;  %2776 = vst [vmem:[%s3823_s20 + $0xed0] sm:$0xff] %v2254_v25  ;;  %v1585_v32 = vadd.f32 %v1584_v30, %v3808_v51  ;;  %v2258_v33 = vadd.f32 %v2257_v31, %v3810_v52  ;;  %v1586_v34 = vpop.f32.mrb[239].mxu0  ;;  %v2259_v35 = vpop.f32.mrb[239].mxu1 }
 0x329   : > { %2775 = vst [vmem:[%s3823_s20 + $0xec8] sm:$0xff] %v1583_v28  ;;  %2777 = vst [vmem:[%s3823_s20 + $0xed8] sm:$0xff] %v2256_v29  ;;  %v1587_v36 = vadd.f32 %v1586_v34, %v3812_v53  ;;  %v2260_v37 = vadd.f32 %v2259_v35, %v3814_v54 }
 0x32a   : > { %2778 = vst [vmem:[%s3823_s20 + $0xee0] sm:$0xff] %v1585_v32  ;;  %2780 = vst [vmem:[%s3823_s20 + $0xef0] sm:$0xff] %v2258_v33 }
 0x32b   : > { %2779 = vst [vmem:[%s3823_s20 + $0xee8] sm:$0xff] %v1587_v36  ;;  %2781 = vst [vmem:[%s3823_s20 + $0xef8] sm:$0xff] %v2260_v37 }
 0x32d   : > { %v1590_v38 = vpop.f32.mrb[240].mxu0  ;;  %v2263_v39 = vpop.f32.mrb[240].mxu1 }
 0x32e   : > { %v1591_v40 = vadd.f32 %v1590_v38, %v3808_v51  ;;  %v2264_v41 = vadd.f32 %v2263_v39, %v3810_v52  ;;  %v1592_v42 = vpop.f32.mrb[241].mxu0  ;;  %v2265_v43 = vpop.f32.mrb[241].mxu1 }
 0x32f   : > { %v1593_v44 = vadd.f32 %v1592_v42, %v3812_v53  ;;  %v2266_v45 = vadd.f32 %v2265_v43, %v3814_v54  ;;  %v1594_v46 = vpop.f32.mrb[242].mxu0  ;;  %v2267_v47 = vpop.f32.mrb[242].mxu1 }
 0x330   : > { %2782 = vst [vmem:[%s3823_s20 + $0xf00] sm:$0xff] %v1591_v40  ;;  %2784 = vst [vmem:[%s3823_s20 + $0xf10] sm:$0xff] %v2264_v41  ;;  %v1595_v48 = vadd.f32 %v1594_v46, %v3808_v51  ;;  %v2268_v49 = vadd.f32 %v2267_v47, %v3810_v52  ;;  %v1596_v50 = vpop.f32.mrb[243].mxu0  ;;  %v2269_v55 = vpop.f32.mrb[243].mxu1 }
 0x331   : > { %2783 = vst [vmem:[%s3823_s20 + $0xf08] sm:$0xff] %v1593_v44  ;;  %2785 = vst [vmem:[%s3823_s20 + $0xf18] sm:$0xff] %v2266_v45  ;;  %v1597_v56 = vadd.f32 %v1596_v50, %v3812_v53  ;;  %v2270_v57 = vadd.f32 %v2269_v55, %v3814_v54 }
 0x332   : > { %2786 = vst [vmem:[%s3823_s20 + $0xf20] sm:$0xff] %v1595_v48  ;;  %2788 = vst [vmem:[%s3823_s20 + $0xf30] sm:$0xff] %v2268_v49 }
 0x333   : > { %2787 = vst [vmem:[%s3823_s20 + $0xf28] sm:$0xff] %v1597_v56  ;;  %2789 = vst [vmem:[%s3823_s20 + $0xf38] sm:$0xff] %v2270_v57 }
 0x335   : > { %v1600_v58 = vpop.f32.mrb[244].mxu0  ;;  %v2273_v59 = vpop.f32.mrb[244].mxu1 }
 0x336   : > { %v1601_v60 = vadd.f32 %v1600_v58, %v3808_v51  ;;  %v2274_v61 = vadd.f32 %v2273_v59, %v3810_v52  ;;  %v1602_v62 = vpop.f32.mrb[245].mxu0  ;;  %v2275_v63 = vpop.f32.mrb[245].mxu1 }
 0x337   : > { %v1603_v1 = vadd.f32 %v1602_v62, %v3812_v53  ;;  %v2276_v2 = vadd.f32 %v2275_v63, %v3814_v54  ;;  %v1604_v3 = vpop.f32.mrb[246].mxu0  ;;  %v2277_v4 = vpop.f32.mrb[246].mxu1 }
 0x338   : > { %2790 = vst [vmem:[%s3823_s20 + $0xf40] sm:$0xff] %v1601_v60  ;;  %2792 = vst [vmem:[%s3823_s20 + $0xf50] sm:$0xff] %v2274_v61  ;;  %v1605_v5 = vadd.f32 %v1604_v3, %v3808_v51  ;;  %v2278_v6 = vadd.f32 %v2277_v4, %v3810_v52  ;;  %v1606_v7 = vpop.f32.mrb[247].mxu0  ;;  %v2279_v8 = vpop.f32.mrb[247].mxu1 }
 0x339   : > { %2791 = vst [vmem:[%s3823_s20 + $0xf48] sm:$0xff] %v1603_v1  ;;  %2793 = vst [vmem:[%s3823_s20 + $0xf58] sm:$0xff] %v2276_v2  ;;  %v1607_v9 = vadd.f32 %v1606_v7, %v3812_v53  ;;  %v2280_v10 = vadd.f32 %v2279_v8, %v3814_v54 }
 0x33a   : > { %2794 = vst [vmem:[%s3823_s20 + $0xf60] sm:$0xff] %v1605_v5  ;;  %2796 = vst [vmem:[%s3823_s20 + $0xf70] sm:$0xff] %v2278_v6 }
 0x33b   : > { %2795 = vst [vmem:[%s3823_s20 + $0xf68] sm:$0xff] %v1607_v9  ;;  %2797 = vst [vmem:[%s3823_s20 + $0xf78] sm:$0xff] %v2280_v10 }
 0x33d   : > { %v1610_v11 = vpop.f32.mrb[248].mxu0  ;;  %v2283_v12 = vpop.f32.mrb[248].mxu1 }
 0x33e   : > { %v1611_v13 = vadd.f32 %v1610_v11, %v3808_v51  ;;  %v2284_v14 = vadd.f32 %v2283_v12, %v3810_v52  ;;  %v1612_v15 = vpop.f32.mrb[249].mxu0  ;;  %v2285_v16 = vpop.f32.mrb[249].mxu1 }
 0x33f   : > { %v1613_v17 = vadd.f32 %v1612_v15, %v3812_v53  ;;  %v2286_v18 = vadd.f32 %v2285_v16, %v3814_v54  ;;  %v1614_v19 = vpop.f32.mrb[250].mxu0  ;;  %v2287_v20 = vpop.f32.mrb[250].mxu1 }
 0x340   : > { %2798 = vst [vmem:[%s3823_s20 + $0xf80] sm:$0xff] %v1611_v13  ;;  %2800 = vst [vmem:[%s3823_s20 + $0xf90] sm:$0xff] %v2284_v14  ;;  %v1615_v21 = vadd.f32 %v1614_v19, %v3808_v51  ;;  %v2288_v22 = vadd.f32 %v2287_v20, %v3810_v52  ;;  %v1616_v23 = vpop.f32.mrb[251].mxu0  ;;  %v2289_v0 = vpop.f32.mrb[251].mxu1 }
 0x341   : > { %2799 = vst [vmem:[%s3823_s20 + $0xf88] sm:$0xff] %v1613_v17  ;;  %2801 = vst [vmem:[%s3823_s20 + $0xf98] sm:$0xff] %v2286_v18  ;;  %v1617_v24 = vadd.f32 %v1616_v23, %v3812_v53  ;;  %v2290_v25 = vadd.f32 %v2289_v0, %v3814_v54 }
 0x342   : > { %2802 = vst [vmem:[%s3823_s20 + $0xfa0] sm:$0xff] %v1615_v21  ;;  %2804 = vst [vmem:[%s3823_s20 + $0xfb0] sm:$0xff] %v2288_v22 }
 0x343   : > { %2803 = vst [vmem:[%s3823_s20 + $0xfa8] sm:$0xff] %v1617_v24  ;;  %2805 = vst [vmem:[%s3823_s20 + $0xfb8] sm:$0xff] %v2290_v25 }
 0x345   : > { %v1620_v26 = vpop.f32.mrb[252].mxu0  ;;  %v2293_v27 = vpop.f32.mrb[252].mxu1 }
 0x346   : > { %v1621_v28 = vadd.f32 %v1620_v26, %v3808_v51  ;;  %v2294_v29 = vadd.f32 %v2293_v27, %v3810_v52  ;;  %v1622_v30 = vpop.f32.mrb[253].mxu0  ;;  %v2295_v31 = vpop.f32.mrb[253].mxu1 }
 0x347   : > { %v1623_v32 = vadd.f32 %v1622_v30, %v3812_v53  ;;  %v2296_v33 = vadd.f32 %v2295_v31, %v3814_v54  ;;  %v1624_v34 = vpop.f32.mrb[254].mxu0  ;;  %v2297_v35 = vpop.f32.mrb[254].mxu1 }
 0x348   : > { %2806 = vst [vmem:[%s3823_s20 + $0xfc0] sm:$0xff] %v1621_v28  ;;  %2808 = vst [vmem:[%s3823_s20 + $0xfd0] sm:$0xff] %v2294_v29  ;;  %v1625_v36 = vadd.f32 %v1624_v34, %v3808_v51  ;;  %v2298_v37 = vadd.f32 %v2297_v35, %v3810_v52  ;;  %v1626_v38 = vpop.f32.mrb[255].mxu0  ;;  %v2299_v39 = vpop.f32.mrb[255].mxu1 }
 0x349   : > { %2807 = vst [vmem:[%s3823_s20 + $0xfc8] sm:$0xff] %v1623_v32  ;;  %2809 = vst [vmem:[%s3823_s20 + $0xfd8] sm:$0xff] %v2296_v33  ;;  %v1627_v40 = vadd.f32 %v1626_v38, %v3812_v53  ;;  %v2300_v51 = vadd.f32 %v2299_v39, %v3814_v54 }
 0x34a   : > { %2810 = vst [vmem:[%s3823_s20 + $0xfe0] sm:$0xff] %v1625_v36  ;;  %2812 = vst [vmem:[%s3823_s20 + $0xff0] sm:$0xff] %v2298_v37 }
 0x34b   : > { %2811 = vst [vmem:[%s3823_s20 + $0xfe8] sm:$0xff] %v1627_v40  ;;  %2813 = vst [vmem:[%s3823_s20 + $0xff8] sm:$0xff] %v2300_v51 }
 0x34c   : > { %3404 = shalt.err (!%p3401_p7)
}
 0x34d   : > { %s3405_s10 = scalar_lea.hbm %s5024_s27, 65536  ;;  %s3409_s22 = scalar_lea.hbm %s5080_s3, 262144 }
 0x34e   : > { %p3406_p9 = scmp.ne.s32.totalorder %s5024_s27, %s3405_s10  ;;  %p3410_p5 = scmp.lt.u32.totalorder %s5024_s27, %s5080_s3 }
 0x34f   : > { %p3411_p10 = scmp.lt.u32.totalorder %s3409_s22, %s3405_s10  ;;  %p3413_p1 = scmp.lt.u32.totalorder %s3405_s10, %s5024_s27 }
 0x350   : > { %p3407_p12 = pnand %p3406_p9, %p3606_p4 }
 0x351   : > { %p3412_p11 = por %p3411_p10, %p3410_p5 }
 0x352   : > { %p3408_p0 = pneg %p3407_p12 }
 0x353   : > { %p3414_p2 = por %p3413_p1, %p3412_p11 }
 0x355   : > { %p3415_p6 = pnand %p3414_p2, %p3408_p0 }
 0x357   : > { %3418 = shalt.err (!%p3415_p6)
}
 0x358   : > { %s3472_s18 = smov 512   ;;  %s3473_s20 = smov 32  }
 0x359   : > { %3161 = dma.vmem_to_hbm [thread:$0]  (%p3606_p4), %s5026_s24, 65536, %s5024_s27, %s2815_s23, %s3472_s18, %s3472_s18, %s3473_s20  }
 0x35a PF: > { %p3183_p8 = scmp.ge.s32.totalorder %s3461_s15, 2  ;;  %s2844_s17 = sand.u32 1, %s3449_s12  }
 0x35b   : > { %p5095_p13 = scmp.ne.s32.totalorder %s5085_s19, 0  ;;  %s2845_s16 = scalar_lea.sflag [#allocation4], %s2844_s17 }
 0x35d   : > { %p3175_p3 = pnand %p3183_p8, %p5095_p13 }
 0x35f   : > { %3444 = dma.done.wait (!%p3175_p3), %s2845_s16, 65536  }
 0x360   : > { %3446 = vsyncadd (!%p3175_p3), %s2845_s16, 4294901760  ;;  %p17_p7 = scmp.ge.s32.totalorder %s3596_s4, 6   ;;  %s5096_s12 = smov %s3453_s13 }
 0x361   : > { %s5097_s13 = smov %s3457_s14  ;;  %s5098_s14 = smov %s3612_s7 }
 0x362   : > { %s5099_s15 = smov %s3596_s4  ;;  %19 = sbr.rel (!%p17_p7) target bundleno = 6 (0x6), region = 85 }
 0x369   :  { %2850 = vsyncpa [#allocation3], 1 }
 0x36a   :  { %2852 = vsyncpa [#allocation3 + $0x1], 1 }
 0x36b   :  { %2853 = vsyncpa [#allocation6], 1 }
 0x36c   :  { %2854 = vsyncpa [#allocation4], 1 }
 0x36d   :  { %2856 = vsyncpa [#allocation4 + $0x1], 1 }

</bundles_post_ra>
